<compile_context>
chip_gen: v5e
topology: v5e:2x2
jax: 0.10.0
libtpu: 0.0.40
codegen_flags: <defaults>
</compile_context>

<pallas_src>
import functools

import jax
import jax.numpy as jnp
from jax import lax
from jax.experimental import pallas as pl
from jax.experimental.pallas import tpu as pltpu

# Logical sizes (from the PyTorch module) and lane-padded sizes.
TAB = 163          # tabular input features
HID1 = 128         # reg hidden width (already lane-dense)
REG = 16           # reg output features
FEAT = 16          # backbone output features (num_classes=16)
HID3 = 16          # out_layer hidden width
OUT = 6            # final output
CHID = 8           # stand-in backbone conv channels

LANE = 128
TAB_PAD = 256
CHID_PAD = LANE
FEAT_PAD = LANE
REG_PAD = LANE
HID3_PAD = LANE
OUT_PAD = LANE


# ----------------------------------------------------------------------------
# Fused kernel: backbone stand-in + reg MLP + out_layer, one sample per step.
# ----------------------------------------------------------------------------
def fused_kernel(img_ref, cw_ref, cb_ref, hw_ref, hb_ref,
                 tab_ref,
                 w1_ref, b1_ref, g1_ref, be1_ref, rm1_ref, rv1_ref,
                 w2_ref, b2_ref,
                 w3f_ref, w3r_ref, b3_ref, g3_ref, be3_ref, rm3_ref, rv3_ref,
                 w4_ref, b4_ref,
                 out_ref, *, h, w, cin, eps):
    f32 = jnp.float32

    # ---- stand-in backbone: 3x3 / pad-1 conv as 9 shifted matmuls (bf16 -> f32 acc)
    img = img_ref[0]                                      # (h+2, w+2, cin) bf16
    acc = jnp.zeros((h * w, CHID_PAD), f32)
    for t in range(9):                                    # unrolled: static slices
        dh, dw = t // 3, t % 3
        xs = img[dh:dh + h, dw:dw + w, :]                 # (h, w, cin)
        xs = xs.reshape(h * w, cin)                       # flat 2-D MXU operand
        acc = acc + jnp.dot(xs, cw_ref[t], preferred_element_type=f32)
    conv = jnp.maximum(acc + cb_ref[...], 0.0)            # ReLU, (h*w, 128)
    pooled = jnp.mean(conv, axis=0, keepdims=True)        # global avg pool, (1, 128)
    feat = jnp.dot(pooled, hw_ref[...], preferred_element_type=f32) + hb_ref[...]

    # ---- reg head: Linear(163,128) -> BN(128) -> ReLU -> Dropout(id) -> Linear(128,16)
    xt = tab_ref[0]                                       # (1, TAB_PAD)
    hdn = jnp.dot(xt, w1_ref[...], preferred_element_type=f32) + b1_ref[...]
    hdn = (hdn - rm1_ref[...]) * lax.rsqrt(rv1_ref[...] + eps) * g1_ref[...] + be1_ref[...]
    hdn = jnp.maximum(hdn, 0.0)
    # TODO(synk): Dropout(0.4) is identity in eval mode; train-mode masking omitted.
    xreg = jnp.dot(hdn, w2_ref[...], preferred_element_type=f32) + b2_ref[...]

    # ---- out_layer: concat(feat, xreg) replaced by split-weight matmuls
    o = (jnp.dot(feat, w3f_ref[...], preferred_element_type=f32)
         + jnp.dot(xreg, w3r_ref[...], preferred_element_type=f32)
         + b3_ref[...])
    o = (o - rm3_ref[...]) * lax.rsqrt(rv3_ref[...] + eps) * g3_ref[...] + be3_ref[...]
    o = jnp.maximum(o, 0.0)
    out_ref[0] = jnp.dot(o, w4_ref[...], preferred_element_type=f32) + b4_ref[...]


# ----------------------------------------------------------------------------
# Wrapper
# ----------------------------------------------------------------------------
def custom_effnet_mm_forward(x, params, eps=1e-5):
    """x = (images NCHW, tabular (B,163)) -> (B, 6)."""
    x_img, x_tab = x
    B, Cin, H, W = x_img.shape

    # Glue (plain JAX): NCHW -> NHWC, cast bf16, pad spatially by 1 (3x3, pad=1).
    x_nhwc = jnp.transpose(x_img, (0, 2, 3, 1)).astype(jnp.bfloat16)
    x_pad = jnp.pad(x_nhwc, ((0, 0), (1, 1), (1, 1), (0, 0)))

    # Tabular input: zero-pad 163 -> TAB_PAD lanes, laid out (B, 1, TAB_PAD).
    tab = jnp.zeros((B, 1, TAB_PAD), jnp.float32)
    tab = tab.at[:, 0, :x_tab.shape[1]].set(x_tab.astype(jnp.float32))

    def full_spec(shape):
        n = len(shape)
        return pl.BlockSpec(shape, lambda b: (0,) * n)   # resident in VMEM, DMA'd once

    weight_keys = ("w1", "b1", "g1", "be1", "rm1", "rv1", "w2", "b2",
                   "w3f", "w3r", "b3", "g3", "be3", "rm3", "rv3", "w4", "b4")

    in_specs = [
        pl.BlockSpec((1, H + 2, W + 2, Cin), lambda b: (b, 0, 0, 0)),   # image, per sample
        full_spec(params["cw"].shape),
        full_spec(params["cb"].shape),
        full_spec(params["hw"].shape),
        full_spec(params["hb"].shape),
        pl.BlockSpec((1, 1, TAB_PAD), lambda b: (b, 0, 0)),             # tabular, per sample
    ] + [full_spec(params[k].shape) for k in weight_keys]

    kernel = functools.partial(fused_kernel, h=H, w=W, cin=Cin, eps=eps)
    out_pad = pl.pallas_call(
        kernel,
        out_shape=jax.ShapeDtypeStruct((B, 1, OUT_PAD), jnp.float32),
        grid_spec=pltpu.PrefetchScalarGridSpec(
            num_scalar_prefetch=0,
            grid=(B,),
            in_specs=in_specs,
            out_specs=pl.BlockSpec((1, 1, OUT_PAD), lambda b: (b, 0, 0)),
        ),
        compiler_params=pltpu.CompilerParams(
            dimension_semantics=("parallel",),          # v7x: both TCs split the batch
            vmem_limit_bytes=32 * 1024 * 1024,          # safe on v5e/v6e/v7x
        ),
    )(x_pad, params["cw"], params["cb"], params["hw"], params["hb"], tab,
      *[params[k] for k in weight_keys])

    return out_pad[:, 0, :OUT]                           # lane-dense store, slice in wrapper


# ----------------------------------------------------------------------------
# Deterministic parameter init (synthetic; no checkpoint load). All weights are
# zero-padded to lane-dense shapes so the padded math is numerically exact.
# ----------------------------------------------------------------------------
def _pad2(a, shape):
    out = jnp.zeros(shape, jnp.float32)
    return out.at[:a.shape[0], :a.shape[1]].set(a)


def init_params(key, cin=3):
    ks = jax.random.split(key, 8)
    f32 = jnp.float32

    def wgt(k, shape, fan_in):
        return (jax.random.normal(k, shape, f32) / jnp.sqrt(fan_in)).astype(f32)

    # Stand-in backbone: conv3x3 (cin -> CHID), ReLU, GAP, Linear(CHID -> FEAT=16).
    cw_l = wgt(ks[0], (9, cin, CHID), 9 * cin)
    cw = (jnp.zeros((9, cin, CHID_PAD), f32).at[..., :CHID].set(cw_l)
          .astype(jnp.bfloat16))                                   # bf16 conv weights
    hw = _pad2(wgt(ks[1], (CHID, FEAT), CHID), (CHID_PAD, FEAT_PAD))

    # reg head.
    w1 = _pad2(wgt(ks[2], (TAB, HID1), TAB), (TAB_PAD, HID1))
    w2 = _pad2(wgt(ks[3], (HID1, REG), HID1), (HID1, REG_PAD))

    # out_layer; w3 split into feat / reg halves (replaces torch.concat).
    w3 = wgt(ks[4], (FEAT + REG, HID3), FEAT + REG)
    w3f = _pad2(w3[:FEAT], (FEAT_PAD, HID3_PAD))
    w3r = _pad2(w3[FEAT:], (REG_PAD, HID3_PAD))
    w4 = _pad2(wgt(ks[5], (HID3, OUT), HID3), (HID3_PAD, OUT_PAD))

    zeros = lambda n: jnp.zeros((1, n), f32)
    ones = lambda n: jnp.ones((1, n), f32)

    return {
        "cw": cw, "cb": zeros(CHID_PAD), "hw": hw, "hb": zeros(FEAT_PAD),
        "w1": w1, "b1": zeros(HID1),
        "g1": ones(HID1), "be1": zeros(HID1), "rm1": zeros(HID1), "rv1": ones(HID1),
        "w2": w2, "b2": zeros(REG_PAD),
        "w3f": w3f, "w3r": w3r, "b3": zeros(HID3_PAD),
        "g3": ones(HID3_PAD), "be3": zeros(HID3_PAD),
        "rm3": zeros(HID3_PAD), "rv3": ones(HID3_PAD),
        "w4": w4, "b4": zeros(OUT_PAD),
    }


if __name__ == "__main__":
    key = jax.random.PRNGKey(0)
    k_img, k_tab, k_par = jax.random.split(key, 3)

    B, Cin, H, W = 2, 3, 16, 16
    x_img = jax.random.normal(k_img, (B, Cin, H, W), jnp.float32)   # NCHW like PyTorch
    x_tab = jax.random.normal(k_tab, (B, TAB), jnp.float32)

    params = init_params(k_par, cin=Cin)

    out = custom_effnet_mm_forward((x_img, x_tab), params)
    out = jax.block_until_ready(out)
    assert out.shape == (B, OUT) and out.dtype == jnp.float32
    print("KERNEL_OK")
</pallas_src>

<mosaic_0001>
module attributes {stable_mosaic.version = 11 : i64} {
  func.func @fused_kernel(%arg0: i32, %arg1: memref<1x18x18x3xbf16, #tpu.memory_space<vmem>>, %arg2: memref<9x3x128xbf16, #tpu.memory_space<vmem>>, %arg3: memref<1x128xf32, #tpu.memory_space<vmem>>, %arg4: memref<128x128xf32, #tpu.memory_space<vmem>>, %arg5: memref<1x128xf32, #tpu.memory_space<vmem>>, %arg6: memref<1x1x256xf32, #tpu.memory_space<vmem>>, %arg7: memref<256x128xf32, #tpu.memory_space<vmem>>, %arg8: memref<1x128xf32, #tpu.memory_space<vmem>>, %arg9: memref<1x128xf32, #tpu.memory_space<vmem>>, %arg10: memref<1x128xf32, #tpu.memory_space<vmem>>, %arg11: memref<1x128xf32, #tpu.memory_space<vmem>>, %arg12: memref<1x128xf32, #tpu.memory_space<vmem>>, %arg13: memref<128x128xf32, #tpu.memory_space<vmem>>, %arg14: memref<1x128xf32, #tpu.memory_space<vmem>>, %arg15: memref<128x128xf32, #tpu.memory_space<vmem>>, %arg16: memref<128x128xf32, #tpu.memory_space<vmem>>, %arg17: memref<1x128xf32, #tpu.memory_space<vmem>>, %arg18: memref<1x128xf32, #tpu.memory_space<vmem>>, %arg19: memref<1x128xf32, #tpu.memory_space<vmem>>, %arg20: memref<1x128xf32, #tpu.memory_space<vmem>>, %arg21: memref<1x128xf32, #tpu.memory_space<vmem>>, %arg22: memref<128x128xf32, #tpu.memory_space<vmem>>, %arg23: memref<1x128xf32, #tpu.memory_space<vmem>>, %arg24: memref<1x1x128xf32, #tpu.memory_space<vmem>>) attributes {dimension_semantics = [#tpu.dimension_semantics<parallel>], iteration_bounds = array<i64: 2>, scalar_prefetch = 0 : i64, scratch_operands = 0 : i64, tpu.core_type = #tpu.core_type<tc>, window_params = [{transform_indices = @transform_0, window_bounds = array<i64: 1, 18, 18, 3>}, {pipeline_mode = #tpu.pipeline_mode<synchronous>, transform_indices = @transform_1, window_bounds = array<i64: 9, 3, 128>}, {pipeline_mode = #tpu.pipeline_mode<synchronous>, transform_indices = @transform_2, window_bounds = array<i64: 1, 128>}, {pipeline_mode = #tpu.pipeline_mode<synchronous>, transform_indices = @transform_3, window_bounds = array<i64: 128, 128>}, {pipeline_mode = #tpu.pipeline_mode<synchronous>, transform_indices = @transform_4, window_bounds = array<i64: 1, 128>}, {transform_indices = @transform_5, window_bounds = array<i64: 1, 1, 256>}, {pipeline_mode = #tpu.pipeline_mode<synchronous>, transform_indices = @transform_6, window_bounds = array<i64: 256, 128>}, {pipeline_mode = #tpu.pipeline_mode<synchronous>, transform_indices = @transform_7, window_bounds = array<i64: 1, 128>}, {pipeline_mode = #tpu.pipeline_mode<synchronous>, transform_indices = @transform_8, window_bounds = array<i64: 1, 128>}, {pipeline_mode = #tpu.pipeline_mode<synchronous>, transform_indices = @transform_9, window_bounds = array<i64: 1, 128>}, {pipeline_mode = #tpu.pipeline_mode<synchronous>, transform_indices = @transform_10, window_bounds = array<i64: 1, 128>}, {pipeline_mode = #tpu.pipeline_mode<synchronous>, transform_indices = @transform_11, window_bounds = array<i64: 1, 128>}, {pipeline_mode = #tpu.pipeline_mode<synchronous>, transform_indices = @transform_12, window_bounds = array<i64: 128, 128>}, {pipeline_mode = #tpu.pipeline_mode<synchronous>, transform_indices = @transform_13, window_bounds = array<i64: 1, 128>}, {pipeline_mode = #tpu.pipeline_mode<synchronous>, transform_indices = @transform_14, window_bounds = array<i64: 128, 128>}, {pipeline_mode = #tpu.pipeline_mode<synchronous>, transform_indices = @transform_15, window_bounds = array<i64: 128, 128>}, {pipeline_mode = #tpu.pipeline_mode<synchronous>, transform_indices = @transform_16, window_bounds = array<i64: 1, 128>}, {pipeline_mode = #tpu.pipeline_mode<synchronous>, transform_indices = @transform_17, window_bounds = array<i64: 1, 128>}, {pipeline_mode = #tpu.pipeline_mode<synchronous>, transform_indices = @transform_18, window_bounds = array<i64: 1, 128>}, {pipeline_mode = #tpu.pipeline_mode<synchronous>, transform_indices = @transform_19, window_bounds = array<i64: 1, 128>}, {pipeline_mode = #tpu.pipeline_mode<synchronous>, transform_indices = @transform_20, window_bounds = array<i64: 1, 128>}, {pipeline_mode = #tpu.pipeline_mode<synchronous>, transform_indices = @transform_21, window_bounds = array<i64: 128, 128>}, {pipeline_mode = #tpu.pipeline_mode<synchronous>, transform_indices = @transform_22, window_bounds = array<i64: 1, 128>}, {transform_indices = @transform_23, window_bounds = array<i64: 1, 1, 128>}]} {
    %c0 = arith.constant 0 : index
    %c0_0 = arith.constant 0 : index
    %c0_1 = arith.constant 0 : index
    %c0_2 = arith.constant 0 : index
    %0 = vector.load %arg1[%c0, %c0_0, %c0_1, %c0_2] : memref<1x18x18x3xbf16, #tpu.memory_space<vmem>>, vector<1x18x18x3xbf16>
    %1 = vector.shape_cast %0 : vector<1x18x18x3xbf16> to vector<18x18x3xbf16>
    %cst = arith.constant 0.000000e+00 : f32
    %2 = vector.broadcast %cst : f32 to vector<256x128xf32>
    %3 = vector.extract_strided_slice %1 {offsets = [0, 0, 0], sizes = [16, 16, 3], strides = [1, 1, 1]} : vector<18x18x3xbf16> to vector<16x16x3xbf16>
    %4 = vector.shape_cast %3 : vector<16x16x3xbf16> to vector<256x3xbf16>
    %c0_3 = arith.constant 0 : index
    %c0_4 = arith.constant 0 : index
    %c0_5 = arith.constant 0 : index
    %5 = vector.load %arg2[%c0_3, %c0_4, %c0_5] : memref<9x3x128xbf16, #tpu.memory_space<vmem>>, vector<1x3x128xbf16>
    %6 = vector.shape_cast %5 : vector<1x3x128xbf16> to vector<3x128xbf16>
    %cst_6 = arith.constant dense<0.000000e+00> : vector<256x128xf32>
    %7 = tpu.matmul %4, %6, %cst_6 {dimension_numbers = #tpu.dot_dimension_numbers<[1], [0], [0], [1], [0, 0, 1, 1], [], []>} : vector<256x3xbf16>, vector<3x128xbf16>, vector<256x128xf32> -> vector<256x128xf32>
    %8 = arith.addf %2, %7 : vector<256x128xf32>
    %9 = vector.extract_strided_slice %1 {offsets = [0, 1, 0], sizes = [16, 16, 3], strides = [1, 1, 1]} : vector<18x18x3xbf16> to vector<16x16x3xbf16>
    %10 = vector.shape_cast %9 : vector<16x16x3xbf16> to vector<256x3xbf16>
    %c1 = arith.constant 1 : index
    %c0_7 = arith.constant 0 : index
    %c0_8 = arith.constant 0 : index
    %11 = vector.load %arg2[%c1, %c0_7, %c0_8] : memref<9x3x128xbf16, #tpu.memory_space<vmem>>, vector<1x3x128xbf16>
    %12 = vector.shape_cast %11 : vector<1x3x128xbf16> to vector<3x128xbf16>
    %cst_9 = arith.constant dense<0.000000e+00> : vector<256x128xf32>
    %13 = tpu.matmul %10, %12, %cst_9 {dimension_numbers = #tpu.dot_dimension_numbers<[1], [0], [0], [1], [0, 0, 1, 1], [], []>} : vector<256x3xbf16>, vector<3x128xbf16>, vector<256x128xf32> -> vector<256x128xf32>
    %14 = arith.addf %8, %13 : vector<256x128xf32>
    %15 = vector.extract_strided_slice %1 {offsets = [0, 2, 0], sizes = [16, 16, 3], strides = [1, 1, 1]} : vector<18x18x3xbf16> to vector<16x16x3xbf16>
    %16 = vector.shape_cast %15 : vector<16x16x3xbf16> to vector<256x3xbf16>
    %c2 = arith.constant 2 : index
    %c0_10 = arith.constant 0 : index
    %c0_11 = arith.constant 0 : index
    %17 = vector.load %arg2[%c2, %c0_10, %c0_11] : memref<9x3x128xbf16, #tpu.memory_space<vmem>>, vector<1x3x128xbf16>
    %18 = vector.shape_cast %17 : vector<1x3x128xbf16> to vector<3x128xbf16>
    %cst_12 = arith.constant dense<0.000000e+00> : vector<256x128xf32>
    %19 = tpu.matmul %16, %18, %cst_12 {dimension_numbers = #tpu.dot_dimension_numbers<[1], [0], [0], [1], [0, 0, 1, 1], [], []>} : vector<256x3xbf16>, vector<3x128xbf16>, vector<256x128xf32> -> vector<256x128xf32>
    %20 = arith.addf %14, %19 : vector<256x128xf32>
    %21 = vector.extract_strided_slice %1 {offsets = [1, 0, 0], sizes = [16, 16, 3], strides = [1, 1, 1]} : vector<18x18x3xbf16> to vector<16x16x3xbf16>
    %22 = vector.shape_cast %21 : vector<16x16x3xbf16> to vector<256x3xbf16>
    %c3 = arith.constant 3 : index
    %c0_13 = arith.constant 0 : index
    %c0_14 = arith.constant 0 : index
    %23 = vector.load %arg2[%c3, %c0_13, %c0_14] : memref<9x3x128xbf16, #tpu.memory_space<vmem>>, vector<1x3x128xbf16>
    %24 = vector.shape_cast %23 : vector<1x3x128xbf16> to vector<3x128xbf16>
    %cst_15 = arith.constant dense<0.000000e+00> : vector<256x128xf32>
    %25 = tpu.matmul %22, %24, %cst_15 {dimension_numbers = #tpu.dot_dimension_numbers<[1], [0], [0], [1], [0, 0, 1, 1], [], []>} : vector<256x3xbf16>, vector<3x128xbf16>, vector<256x128xf32> -> vector<256x128xf32>
    %26 = arith.addf %20, %25 : vector<256x128xf32>
    %27 = vector.extract_strided_slice %1 {offsets = [1, 1, 0], sizes = [16, 16, 3], strides = [1, 1, 1]} : vector<18x18x3xbf16> to vector<16x16x3xbf16>
    %28 = vector.shape_cast %27 : vector<16x16x3xbf16> to vector<256x3xbf16>
    %c4 = arith.constant 4 : index
    %c0_16 = arith.constant 0 : index
    %c0_17 = arith.constant 0 : index
    %29 = vector.load %arg2[%c4, %c0_16, %c0_17] : memref<9x3x128xbf16, #tpu.memory_space<vmem>>, vector<1x3x128xbf16>
    %30 = vector.shape_cast %29 : vector<1x3x128xbf16> to vector<3x128xbf16>
    %cst_18 = arith.constant dense<0.000000e+00> : vector<256x128xf32>
    %31 = tpu.matmul %28, %30, %cst_18 {dimension_numbers = #tpu.dot_dimension_numbers<[1], [0], [0], [1], [0, 0, 1, 1], [], []>} : vector<256x3xbf16>, vector<3x128xbf16>, vector<256x128xf32> -> vector<256x128xf32>
    %32 = arith.addf %26, %31 : vector<256x128xf32>
    %33 = vector.extract_strided_slice %1 {offsets = [1, 2, 0], sizes = [16, 16, 3], strides = [1, 1, 1]} : vector<18x18x3xbf16> to vector<16x16x3xbf16>
    %34 = vector.shape_cast %33 : vector<16x16x3xbf16> to vector<256x3xbf16>
    %c5 = arith.constant 5 : index
    %c0_19 = arith.constant 0 : index
    %c0_20 = arith.constant 0 : index
    %35 = vector.load %arg2[%c5, %c0_19, %c0_20] : memref<9x3x128xbf16, #tpu.memory_space<vmem>>, vector<1x3x128xbf16>
    %36 = vector.shape_cast %35 : vector<1x3x128xbf16> to vector<3x128xbf16>
    %cst_21 = arith.constant dense<0.000000e+00> : vector<256x128xf32>
    %37 = tpu.matmul %34, %36, %cst_21 {dimension_numbers = #tpu.dot_dimension_numbers<[1], [0], [0], [1], [0, 0, 1, 1], [], []>} : vector<256x3xbf16>, vector<3x128xbf16>, vector<256x128xf32> -> vector<256x128xf32>
    %38 = arith.addf %32, %37 : vector<256x128xf32>
    %39 = vector.extract_strided_slice %1 {offsets = [2, 0, 0], sizes = [16, 16, 3], strides = [1, 1, 1]} : vector<18x18x3xbf16> to vector<16x16x3xbf16>
    %40 = vector.shape_cast %39 : vector<16x16x3xbf16> to vector<256x3xbf16>
    %c6 = arith.constant 6 : index
    %c0_22 = arith.constant 0 : index
    %c0_23 = arith.constant 0 : index
    %41 = vector.load %arg2[%c6, %c0_22, %c0_23] : memref<9x3x128xbf16, #tpu.memory_space<vmem>>, vector<1x3x128xbf16>
    %42 = vector.shape_cast %41 : vector<1x3x128xbf16> to vector<3x128xbf16>
    %cst_24 = arith.constant dense<0.000000e+00> : vector<256x128xf32>
    %43 = tpu.matmul %40, %42, %cst_24 {dimension_numbers = #tpu.dot_dimension_numbers<[1], [0], [0], [1], [0, 0, 1, 1], [], []>} : vector<256x3xbf16>, vector<3x128xbf16>, vector<256x128xf32> -> vector<256x128xf32>
    %44 = arith.addf %38, %43 : vector<256x128xf32>
    %45 = vector.extract_strided_slice %1 {offsets = [2, 1, 0], sizes = [16, 16, 3], strides = [1, 1, 1]} : vector<18x18x3xbf16> to vector<16x16x3xbf16>
    %46 = vector.shape_cast %45 : vector<16x16x3xbf16> to vector<256x3xbf16>
    %c7 = arith.constant 7 : index
    %c0_25 = arith.constant 0 : index
    %c0_26 = arith.constant 0 : index
    %47 = vector.load %arg2[%c7, %c0_25, %c0_26] : memref<9x3x128xbf16, #tpu.memory_space<vmem>>, vector<1x3x128xbf16>
    %48 = vector.shape_cast %47 : vector<1x3x128xbf16> to vector<3x128xbf16>
    %cst_27 = arith.constant dense<0.000000e+00> : vector<256x128xf32>
    %49 = tpu.matmul %46, %48, %cst_27 {dimension_numbers = #tpu.dot_dimension_numbers<[1], [0], [0], [1], [0, 0, 1, 1], [], []>} : vector<256x3xbf16>, vector<3x128xbf16>, vector<256x128xf32> -> vector<256x128xf32>
    %50 = arith.addf %44, %49 : vector<256x128xf32>
    %51 = vector.extract_strided_slice %1 {offsets = [2, 2, 0], sizes = [16, 16, 3], strides = [1, 1, 1]} : vector<18x18x3xbf16> to vector<16x16x3xbf16>
    %52 = vector.shape_cast %51 : vector<16x16x3xbf16> to vector<256x3xbf16>
    %c8 = arith.constant 8 : index
    %c0_28 = arith.constant 0 : index
    %c0_29 = arith.constant 0 : index
    %53 = vector.load %arg2[%c8, %c0_28, %c0_29] : memref<9x3x128xbf16, #tpu.memory_space<vmem>>, vector<1x3x128xbf16>
    %54 = vector.shape_cast %53 : vector<1x3x128xbf16> to vector<3x128xbf16>
    %cst_30 = arith.constant dense<0.000000e+00> : vector<256x128xf32>
    %55 = tpu.matmul %52, %54, %cst_30 {dimension_numbers = #tpu.dot_dimension_numbers<[1], [0], [0], [1], [0, 0, 1, 1], [], []>} : vector<256x3xbf16>, vector<3x128xbf16>, vector<256x128xf32> -> vector<256x128xf32>
    %56 = arith.addf %50, %55 : vector<256x128xf32>
    %c0_31 = arith.constant 0 : index
    %c0_32 = arith.constant 0 : index
    %57 = vector.load %arg3[%c0_31, %c0_32] : memref<1x128xf32, #tpu.memory_space<vmem>>, vector<1x128xf32>
    %58 = vector.broadcast %57 : vector<1x128xf32> to vector<256x128xf32>
    %59 = arith.addf %56, %58 : vector<256x128xf32>
    %cst_33 = arith.constant 0.000000e+00 : f32
    %60 = vector.broadcast %cst_33 : f32 to vector<256x128xf32>
    %61 = arith.maximumf %59, %60 : vector<256x128xf32>
    %cst_34 = arith.constant dense<0.000000e+00> : vector<128xf32>
    %62 = vector.multi_reduction <add>, %61, %cst_34 [0] : vector<256x128xf32> to vector<128xf32>
    %63 = vector.shape_cast %62 : vector<128xf32> to vector<1x128xf32>
    %cst_35 = arith.constant 2.560000e+02 : f32
    %64 = vector.broadcast %cst_35 : f32 to vector<1x128xf32>
    %65 = arith.divf %63, %64 : vector<1x128xf32>
    %c0_36 = arith.constant 0 : index
    %c0_37 = arith.constant 0 : index
    %66 = vector.load %arg4[%c0_36, %c0_37] : memref<128x128xf32, #tpu.memory_space<vmem>>, vector<128x128xf32>
    %cst_38 = arith.constant dense<0.000000e+00> : vector<1x128xf32>
    %67 = tpu.matmul %65, %66, %cst_38 {dimension_numbers = #tpu.dot_dimension_numbers<[1], [0], [0], [1], [0, 0, 1, 1], [], []>} : vector<1x128xf32>, vector<128x128xf32>, vector<1x128xf32> -> vector<1x128xf32>
    %c0_39 = arith.constant 0 : index
    %c0_40 = arith.constant 0 : index
    %68 = vector.load %arg5[%c0_39, %c0_40] : memref<1x128xf32, #tpu.memory_space<vmem>>, vector<1x128xf32>
    %69 = arith.addf %67, %68 : vector<1x128xf32>
    %c0_41 = arith.constant 0 : index
    %c0_42 = arith.constant 0 : index
    %c0_43 = arith.constant 0 : index
    %70 = vector.load %arg6[%c0_41, %c0_42, %c0_43] : memref<1x1x256xf32, #tpu.memory_space<vmem>>, vector<1x1x256xf32>
    %71 = vector.shape_cast %70 : vector<1x1x256xf32> to vector<1x256xf32>
    %c0_44 = arith.constant 0 : index
    %c0_45 = arith.constant 0 : index
    %72 = vector.load %arg7[%c0_44, %c0_45] : memref<256x128xf32, #tpu.memory_space<vmem>>, vector<256x128xf32>
    %cst_46 = arith.constant dense<0.000000e+00> : vector<1x128xf32>
    %73 = tpu.matmul %71, %72, %cst_46 {dimension_numbers = #tpu.dot_dimension_numbers<[1], [0], [0], [1], [0, 0, 1, 1], [], []>} : vector<1x256xf32>, vector<256x128xf32>, vector<1x128xf32> -> vector<1x128xf32>
    %c0_47 = arith.constant 0 : index
    %c0_48 = arith.constant 0 : index
    %74 = vector.load %arg8[%c0_47, %c0_48] : memref<1x128xf32, #tpu.memory_space<vmem>>, vector<1x128xf32>
    %75 = arith.addf %73, %74 : vector<1x128xf32>
    %c0_49 = arith.constant 0 : index
    %c0_50 = arith.constant 0 : index
    %76 = vector.load %arg11[%c0_49, %c0_50] : memref<1x128xf32, #tpu.memory_space<vmem>>, vector<1x128xf32>
    %77 = arith.subf %75, %76 : vector<1x128xf32>
    %c0_51 = arith.constant 0 : index
    %c0_52 = arith.constant 0 : index
    %78 = vector.load %arg12[%c0_51, %c0_52] : memref<1x128xf32, #tpu.memory_space<vmem>>, vector<1x128xf32>
    %cst_53 = arith.constant 9.99999974E-6 : f32
    %79 = vector.broadcast %cst_53 : f32 to vector<1x128xf32>
    %80 = arith.addf %78, %79 : vector<1x128xf32>
    %81 = math.rsqrt %80 : vector<1x128xf32>
    %82 = arith.mulf %77, %81 : vector<1x128xf32>
    %c0_54 = arith.constant 0 : index
    %c0_55 = arith.constant 0 : index
    %83 = vector.load %arg9[%c0_54, %c0_55] : memref<1x128xf32, #tpu.memory_space<vmem>>, vector<1x128xf32>
    %84 = arith.mulf %82, %83 : vector<1x128xf32>
    %c0_56 = arith.constant 0 : index
    %c0_57 = arith.constant 0 : index
    %85 = vector.load %arg10[%c0_56, %c0_57] : memref<1x128xf32, #tpu.memory_space<vmem>>, vector<1x128xf32>
    %86 = arith.addf %84, %85 : vector<1x128xf32>
    %cst_58 = arith.constant 0.000000e+00 : f32
    %87 = vector.broadcast %cst_58 : f32 to vector<1x128xf32>
    %88 = arith.maximumf %86, %87 : vector<1x128xf32>
    %c0_59 = arith.constant 0 : index
    %c0_60 = arith.constant 0 : index
    %89 = vector.load %arg13[%c0_59, %c0_60] : memref<128x128xf32, #tpu.memory_space<vmem>>, vector<128x128xf32>
    %cst_61 = arith.constant dense<0.000000e+00> : vector<1x128xf32>
    %90 = tpu.matmul %88, %89, %cst_61 {dimension_numbers = #tpu.dot_dimension_numbers<[1], [0], [0], [1], [0, 0, 1, 1], [], []>} : vector<1x128xf32>, vector<128x128xf32>, vector<1x128xf32> -> vector<1x128xf32>
    %c0_62 = arith.constant 0 : index
    %c0_63 = arith.constant 0 : index
    %91 = vector.load %arg14[%c0_62, %c0_63] : memref<1x128xf32, #tpu.memory_space<vmem>>, vector<1x128xf32>
    %92 = arith.addf %90, %91 : vector<1x128xf32>
    %c0_64 = arith.constant 0 : index
    %c0_65 = arith.constant 0 : index
    %93 = vector.load %arg15[%c0_64, %c0_65] : memref<128x128xf32, #tpu.memory_space<vmem>>, vector<128x128xf32>
    %cst_66 = arith.constant dense<0.000000e+00> : vector<1x128xf32>
    %94 = tpu.matmul %69, %93, %cst_66 {dimension_numbers = #tpu.dot_dimension_numbers<[1], [0], [0], [1], [0, 0, 1, 1], [], []>} : vector<1x128xf32>, vector<128x128xf32>, vector<1x128xf32> -> vector<1x128xf32>
    %c0_67 = arith.constant 0 : index
    %c0_68 = arith.constant 0 : index
    %95 = vector.load %arg16[%c0_67, %c0_68] : memref<128x128xf32, #tpu.memory_space<vmem>>, vector<128x128xf32>
    %cst_69 = arith.constant dense<0.000000e+00> : vector<1x128xf32>
    %96 = tpu.matmul %92, %95, %cst_69 {dimension_numbers = #tpu.dot_dimension_numbers<[1], [0], [0], [1], [0, 0, 1, 1], [], []>} : vector<1x128xf32>, vector<128x128xf32>, vector<1x128xf32> -> vector<1x128xf32>
    %97 = arith.addf %94, %96 : vector<1x128xf32>
    %c0_70 = arith.constant 0 : index
    %c0_71 = arith.constant 0 : index
    %98 = vector.load %arg17[%c0_70, %c0_71] : memref<1x128xf32, #tpu.memory_space<vmem>>, vector<1x128xf32>
    %99 = arith.addf %97, %98 : vector<1x128xf32>
    %c0_72 = arith.constant 0 : index
    %c0_73 = arith.constant 0 : index
    %100 = vector.load %arg20[%c0_72, %c0_73] : memref<1x128xf32, #tpu.memory_space<vmem>>, vector<1x128xf32>
    %101 = arith.subf %99, %100 : vector<1x128xf32>
    %c0_74 = arith.constant 0 : index
    %c0_75 = arith.constant 0 : index
    %102 = vector.load %arg21[%c0_74, %c0_75] : memref<1x128xf32, #tpu.memory_space<vmem>>, vector<1x128xf32>
    %cst_76 = arith.constant 9.99999974E-6 : f32
    %103 = vector.broadcast %cst_76 : f32 to vector<1x128xf32>
    %104 = arith.addf %102, %103 : vector<1x128xf32>
    %105 = math.rsqrt %104 : vector<1x128xf32>
    %106 = arith.mulf %101, %105 : vector<1x128xf32>
    %c0_77 = arith.constant 0 : index
    %c0_78 = arith.constant 0 : index
    %107 = vector.load %arg18[%c0_77, %c0_78] : memref<1x128xf32, #tpu.memory_space<vmem>>, vector<1x128xf32>
    %108 = arith.mulf %106, %107 : vector<1x128xf32>
    %c0_79 = arith.constant 0 : index
    %c0_80 = arith.constant 0 : index
    %109 = vector.load %arg19[%c0_79, %c0_80] : memref<1x128xf32, #tpu.memory_space<vmem>>, vector<1x128xf32>
    %110 = arith.addf %108, %109 : vector<1x128xf32>
    %cst_81 = arith.constant 0.000000e+00 : f32
    %111 = vector.broadcast %cst_81 : f32 to vector<1x128xf32>
    %112 = arith.maximumf %110, %111 : vector<1x128xf32>
    %c0_82 = arith.constant 0 : index
    %c0_83 = arith.constant 0 : index
    %113 = vector.load %arg22[%c0_82, %c0_83] : memref<128x128xf32, #tpu.memory_space<vmem>>, vector<128x128xf32>
    %cst_84 = arith.constant dense<0.000000e+00> : vector<1x128xf32>
    %114 = tpu.matmul %112, %113, %cst_84 {dimension_numbers = #tpu.dot_dimension_numbers<[1], [0], [0], [1], [0, 0, 1, 1], [], []>} : vector<1x128xf32>, vector<128x128xf32>, vector<1x128xf32> -> vector<1x128xf32>
    %c0_85 = arith.constant 0 : index
    %c0_86 = arith.constant 0 : index
    %115 = vector.load %arg23[%c0_85, %c0_86] : memref<1x128xf32, #tpu.memory_space<vmem>>, vector<1x128xf32>
    %116 = arith.addf %114, %115 : vector<1x128xf32>
    %c0_87 = arith.constant 0 : index
    %c0_88 = arith.constant 0 : index
    %c0_89 = arith.constant 0 : index
    %117 = vector.load %arg24[%c0_87, %c0_88, %c0_89] : memref<1x1x128xf32, #tpu.memory_space<vmem>>, vector<1x1x128xf32>
    %118 = vector.shape_cast %117 : vector<1x1x128xf32> to vector<1x128xf32>
    %119 = vector.shape_cast %116 : vector<1x128xf32> to vector<1x1x128xf32>
    tpu.vector_store %arg24[%c0_87, %c0_88, %c0_89], %119 {strides = array<i32>} : memref<1x1x128xf32, #tpu.memory_space<vmem>>, vector<1x1x128xf32>,
    return
  }
  func.func @transform_0(%arg0: i32) -> (i32, i32, i32, i32) {
    %c0_i32 = arith.constant 0 : i32
    %c0_i32_0 = arith.constant 0 : i32
    %c0_i32_1 = arith.constant 0 : i32
    %c0_i32_2 = arith.constant 0 : i32
    return %arg0, %c0_i32, %c0_i32_0, %c0_i32_1 : i32, i32, i32, i32
  }
  func.func @transform_1(%arg0: i32) -> (i32, i32, i32) {
    %c0_i32 = arith.constant 0 : i32
    %c0_i32_0 = arith.constant 0 : i32
    %c0_i32_1 = arith.constant 0 : i32
    %c0_i32_2 = arith.constant 0 : i32
    return %c0_i32, %c0_i32_0, %c0_i32_1 : i32, i32, i32
  }
  func.func @transform_2(%arg0: i32) -> (i32, i32) {
    %c0_i32 = arith.constant 0 : i32
    %c0_i32_0 = arith.constant 0 : i32
    %c0_i32_1 = arith.constant 0 : i32
    return %c0_i32, %c0_i32_0 : i32, i32
  }
  func.func @transform_3(%arg0: i32) -> (i32, i32) {
    %c0_i32 = arith.constant 0 : i32
    %c0_i32_0 = arith.constant 0 : i32
    %c0_i32_1 = arith.constant 0 : i32
    return %c0_i32, %c0_i32_0 : i32, i32
  }
  func.func @transform_4(%arg0: i32) -> (i32, i32) {
    %c0_i32 = arith.constant 0 : i32
    %c0_i32_0 = arith.constant 0 : i32
    %c0_i32_1 = arith.constant 0 : i32
    return %c0_i32, %c0_i32_0 : i32, i32
  }
  func.func @transform_5(%arg0: i32) -> (i32, i32, i32) {
    %c0_i32 = arith.constant 0 : i32
    %c0_i32_0 = arith.constant 0 : i32
    %c0_i32_1 = arith.constant 0 : i32
    return %arg0, %c0_i32, %c0_i32_0 : i32, i32, i32
  }
  func.func @transform_6(%arg0: i32) -> (i32, i32) {
    %c0_i32 = arith.constant 0 : i32
    %c0_i32_0 = arith.constant 0 : i32
    %c0_i32_1 = arith.constant 0 : i32
    return %c0_i32, %c0_i32_0 : i32, i32
  }
  func.func @transform_7(%arg0: i32) -> (i32, i32) {
    %c0_i32 = arith.constant 0 : i32
    %c0_i32_0 = arith.constant 0 : i32
    %c0_i32_1 = arith.constant 0 : i32
    return %c0_i32, %c0_i32_0 : i32, i32
  }
  func.func @transform_8(%arg0: i32) -> (i32, i32) {
    %c0_i32 = arith.constant 0 : i32
    %c0_i32_0 = arith.constant 0 : i32
    %c0_i32_1 = arith.constant 0 : i32
    return %c0_i32, %c0_i32_0 : i32, i32
  }
  func.func @transform_9(%arg0: i32) -> (i32, i32) {
    %c0_i32 = arith.constant 0 : i32
    %c0_i32_0 = arith.constant 0 : i32
    %c0_i32_1 = arith.constant 0 : i32
    return %c0_i32, %c0_i32_0 : i32, i32
  }
  func.func @transform_10(%arg0: i32) -> (i32, i32) {
    %c0_i32 = arith.constant 0 : i32
    %c0_i32_0 = arith.constant 0 : i32
    %c0_i32_1 = arith.constant 0 : i32
    return %c0_i32, %c0_i32_0 : i32, i32
  }
  func.func @transform_11(%arg0: i32) -> (i32, i32) {
    %c0_i32 = arith.constant 0 : i32
    %c0_i32_0 = arith.constant 0 : i32
    %c0_i32_1 = arith.constant 0 : i32
    return %c0_i32, %c0_i32_0 : i32, i32
  }
  func.func @transform_12(%arg0: i32) -> (i32, i32) {
    %c0_i32 = arith.constant 0 : i32
    %c0_i32_0 = arith.constant 0 : i32
    %c0_i32_1 = arith.constant 0 : i32
    return %c0_i32, %c0_i32_0 : i32, i32
  }
  func.func @transform_13(%arg0: i32) -> (i32, i32) {
    %c0_i32 = arith.constant 0 : i32
    %c0_i32_0 = arith.constant 0 : i32
    %c0_i32_1 = arith.constant 0 : i32
    return %c0_i32, %c0_i32_0 : i32, i32
  }
  func.func @transform_14(%arg0: i32) -> (i32, i32) {
    %c0_i32 = arith.constant 0 : i32
    %c0_i32_0 = arith.constant 0 : i32
    %c0_i32_1 = arith.constant 0 : i32
    return %c0_i32, %c0_i32_0 : i32, i32
  }
  func.func @transform_15(%arg0: i32) -> (i32, i32) {
    %c0_i32 = arith.constant 0 : i32
    %c0_i32_0 = arith.constant 0 : i32
    %c0_i32_1 = arith.constant 0 : i32
    return %c0_i32, %c0_i32_0 : i32, i32
  }
  func.func @transform_16(%arg0: i32) -> (i32, i32) {
    %c0_i32 = arith.constant 0 : i32
    %c0_i32_0 = arith.constant 0 : i32
    %c0_i32_1 = arith.constant 0 : i32
    return %c0_i32, %c0_i32_0 : i32, i32
  }
  func.func @transform_17(%arg0: i32) -> (i32, i32) {
    %c0_i32 = arith.constant 0 : i32
    %c0_i32_0 = arith.constant 0 : i32
    %c0_i32_1 = arith.constant 0 : i32
    return %c0_i32, %c0_i32_0 : i32, i32
  }
  func.func @transform_18(%arg0: i32) -> (i32, i32) {
    %c0_i32 = arith.constant 0 : i32
    %c0_i32_0 = arith.constant 0 : i32
    %c0_i32_1 = arith.constant 0 : i32
    return %c0_i32, %c0_i32_0 : i32, i32
  }
  func.func @transform_19(%arg0: i32) -> (i32, i32) {
    %c0_i32 = arith.constant 0 : i32
    %c0_i32_0 = arith.constant 0 : i32
    %c0_i32_1 = arith.constant 0 : i32
    return %c0_i32, %c0_i32_0 : i32, i32
  }
  func.func @transform_20(%arg0: i32) -> (i32, i32) {
    %c0_i32 = arith.constant 0 : i32
    %c0_i32_0 = arith.constant 0 : i32
    %c0_i32_1 = arith.constant 0 : i32
    return %c0_i32, %c0_i32_0 : i32, i32
  }
  func.func @transform_21(%arg0: i32) -> (i32, i32) {
    %c0_i32 = arith.constant 0 : i32
    %c0_i32_0 = arith.constant 0 : i32
    %c0_i32_1 = arith.constant 0 : i32
    return %c0_i32, %c0_i32_0 : i32, i32
  }
  func.func @transform_22(%arg0: i32) -> (i32, i32) {
    %c0_i32 = arith.constant 0 : i32
    %c0_i32_0 = arith.constant 0 : i32
    %c0_i32_1 = arith.constant 0 : i32
    return %c0_i32, %c0_i32_0 : i32, i32
  }
  func.func @transform_23(%arg0: i32) -> (i32, i32, i32) {
    %c0_i32 = arith.constant 0 : i32
    %c0_i32_0 = arith.constant 0 : i32
    %c0_i32_1 = arith.constant 0 : i32
    return %arg0, %c0_i32, %c0_i32_0 : i32, i32, i32
  }
}

</mosaic_0001>

<bundles_post_ra>
// kernel: tpu_custom_call.1
= control target key start
LH: loop header
LB: loop body
LE: loop exit
PB: predicated region body
PF: predicated region fallthrough
CT: control target
= control target key end

     0   :  { %s5696_s0 = inlined_call_operand.vmem [shape: bf16[2,18,18,3], index: 0, kind: input, shape index: {}]   ;;  %s5697_s1 = inlined_call_operand.vmem [shape: bf16[9,3,128], index: 1, kind: input, shape index: {}]   ;;  %s5698_s2 = inlined_call_operand.vmem [shape: f32[1,128], index: 2, kind: input, shape index: {}]   ;;  %s5699_s3 = inlined_call_operand.vmem [shape: f32[128,128], index: 3, kind: input, shape index: {}]   ;;  %s5700_s4 = inlined_call_operand.vmem [shape: f32[1,128], index: 4, kind: input, shape index: {}]   ;;  %s5701_s5 = inlined_call_operand.vmem [shape: f32[2,1,256], index: 5, kind: input, shape index: {}]   ;;  %s5702_s6 = inlined_call_operand.vmem [shape: f32[256,128], index: 6, kind: input, shape index: {}]   ;;  %s5703_s7 = inlined_call_operand.vmem [shape: f32[1,128], index: 7, kind: input, shape index: {}]   ;;  %s5704_s8 = inlined_call_operand.vmem [shape: f32[1,128], index: 8, kind: input, shape index: {}]   ;;  %s5705_s9 = inlined_call_operand.vmem [shape: f32[1,128], index: 9, kind: input, shape index: {}]   ;;  %s5706_s10 = inlined_call_operand.vmem [shape: f32[1,128], index: 10, kind: input, shape index: {}]   ;;  %s5707_s11 = inlined_call_operand.vmem [shape: f32[1,128], index: 11, kind: input, shape index: {}]   ;;  %s5708_s12 = inlined_call_operand.hbm [shape: f32[128,128], index: 12, kind: input, shape index: {}]   ;;  %s5709_s13 = inlined_call_operand.vmem [shape: f32[1,128], index: 13, kind: input, shape index: {}]   ;;  %s5710_s14 = inlined_call_operand.hbm [shape: f32[128,128], index: 14, kind: input, shape index: {}]   ;;  %s5711_s15 = inlined_call_operand.hbm [shape: f32[128,128], index: 15, kind: input, shape index: {}]   ;;  %s5712_s16 = inlined_call_operand.vmem [shape: f32[1,128], index: 16, kind: input, shape index: {}]   ;;  %s5713_s17 = inlined_call_operand.vmem [shape: f32[1,128], index: 17, kind: input, shape index: {}]   ;;  %s5714_s18 = inlined_call_operand.vmem [shape: f32[1,128], index: 18, kind: input, shape index: {}]   ;;  %s5715_s19 = inlined_call_operand.vmem [shape: f32[1,128], index: 19, kind: input, shape index: {}]   ;;  %s5716_s20 = inlined_call_operand.vmem [shape: f32[1,128], index: 20, kind: input, shape index: {}]   ;;  %s5717_s21 = inlined_call_operand.hbm [shape: f32[128,128], index: 21, kind: input, shape index: {}]   ;;  %s5718_s22 = inlined_call_operand.vmem [shape: f32[1,128], index: 22, kind: input, shape index: {}]   ;;  %s5719_s23 = inlined_call_operand.hbm [shape: f32[2,1,128], index: 23, kind: output, shape index: {}]  }
   0x1   :  { %5774 = sst [smem:[#allocation63_spill]] %s5696_s0 }
   0x2   :  { %5775 = sst [smem:[#allocation64_spill]] %s5697_s1 }
   0x3   :  { %5776 = sst [smem:[#allocation65_spill]] %s5698_s2 }
   0x4   :  { %5777 = sst [smem:[#allocation66_spill]] %s5699_s3 }
   0x5   :  { %5778 = sst [smem:[#allocation67_spill]] %s5700_s4 }
   0x6   :  { %5779 = sst [smem:[#allocation68_spill]] %s5701_s5 }
   0x7   :  { %5780 = sst [smem:[#allocation69_spill]] %s5702_s6 }
   0x8   :  { %5781 = sst [smem:[#allocation70_spill]] %s5703_s7 }
   0x9   :  { %5782 = sst [smem:[#allocation71_spill]] %s5708_s12 }
   0xa   :  { %5783 = sst [smem:[#allocation72_spill]] %s5710_s14 }
   0xb   :  { %5784 = sst [smem:[#allocation73_spill]] %s5718_s22 }
   0xc   :  { %5785 = sst [smem:[#allocation74_spill]] %s5719_s23 }
   0xd   :  { %28 = vsyncpa [#allocation3], 0 }
   0xe   :  { %29 = vsyncpa [#allocation6], 0 }
   0xf   :  { %30 = vsyncpa [#allocation9], 0 }
  0x10   :  { %31 = vsyncpa [#allocation4], 0 }
  0x11   :  { %33 = vsyncpa [#allocation4 + $0x1], 0  ;;  %s4107_s4 = smov 0   ;;  %s4109_s30 = smov 0  }
  0x12   :  { %s4111_s24 = smov 0   ;;  %s4113_s25 = smov 0  }
  0x13 LB: > { %5786 = sst [smem:[#allocation15_spill]] %s3965_s4  ;;  %s4128_s5 = sadd.s32 4294967295, %s3977_s25   ;;  %s3977_s25 = sphi %s4113_s25, %s5912_s25   ;;  %s3973_s24 = sphi %s4111_s24, %s5914_s24   ;;  %s3969_s30 = sphi %s4109_s30, %s5916_s30   ;;  %s3965_s4 = sphi %s4107_s4, %s5915_s4  }
  0x14   : > { %5787 = sst [smem:[#allocation16_spill]] %s3973_s24  ;;  %s3402_s1 = sadd.s32 4294967294, %s3977_s25  }
  0x15   : > { %5788 = sst [smem:[#allocation17_spill]] %s3977_s25  ;;  %s4132_s26 = sadd.s32 1, %s3977_s25  }
  0x16   : > { %5789 = sst [smem:[#allocation18_spill]] %s4132_s26  ;;  %s539_s2 = sadd.s32 1, %s3973_s24 }
  0x17   : > { %s536_s6 = ssub.s32 %s3977_s25, %s4132_s26  ;;  %p549_p0 = scmp.ne.s32.totalorder %s3973_s24, %s3969_s30 }
  0x18   : > { %p537_p1 = scmp.eq.s32.totalorder %s536_s6, 0  ;;  %p550_p2 = scmp.eq.s32.totalorder %s4128_s5, 1 }
  0x19   : > { %p555_p3 = scmp.ne.s32.totalorder %s3969_s30, %s3965_s4  ;;  %p556_p4 = scmp.eq.s32.totalorder %s3402_s1, 1 }
  0x1a   : > { %s4143_s27 = scalar_select %p537_p1, %s3973_s24, %s539_s2  }
  0x1b   : > { %p4145_p5 = por %p550_p2, %p549_p0  ;;  %p4149_p6 = por %p556_p4, %p555_p3 }
  0x1c   : > { %5790 = sst [smem:[#allocation19_spill]] %s4143_s27  ;;  %p3403_p7 = scmp.ge.s32.totalorder %s3977_s25, 1 }
  0x1d   : > { %s5791_s7 = scalar_select %p4145_p5, 1, 0 }
  0x1e   : > { %s5793_s28 = scalar_select %p4149_p6, 1, 0 }
  0x1f   : > { %5792 = sst [smem:[#allocation20_spill]] %s5791_s7  ;;  %p563_p8 = scmp.lt.s32.totalorder %s3977_s25, 3 }
  0x20   : > { %5794 = sst [smem:[#allocation21_spill]] %s5793_s28  ;;  %p3717_p9 = scmp.eq.s32.totalorder %s4128_s5, 0 }
  0x21   : > { %p4156_p10 = pnand %p3403_p7, %p563_p8  ;;  %s5796_s14 = sld [smem:[#allocation72_spill]] }
  0x22   : > { %s5797_s12 = sld [smem:[#allocation71_spill]]  ;;  %s3979_s26 = smov [#allocation5]  }
  0x23   : > { %p3700_p11 = pneg %p4156_p10  ;;  %s623_s28 = sshll.u32 %s3979_s26, 4  ;;  %s624_s28 = int_to_ptr.vmem [resolvable:$true] %s623_s28 }
  0x24   : > { %s3980_s3 = smov 128   ;;  %s3981_s0 = smov 8  }
  0x25   : > { %p4170_p12 = pnand %p3717_p9, %p3700_p11  ;;  %s635_s4 = sshll.u32 %s5711_s15, 4  ;;  %s636_s4 = int_to_ptr.hbm [resolvable:$true] %s635_s4 }
  0x26   : > { %s664_s22 = sshll.u32 %s5717_s21, 4  ;;  %s3983_s7 = smov [#allocation7]   ;;  %s665_s22 = int_to_ptr.hbm [resolvable:$true] %s664_s22 }
  0x27   : > { %s621_s1 = sshll.u32 %s5796_s14, 4  ;;  %s3982_s14 = smov [#allocation2]   ;;  %s622_s1 = int_to_ptr.hbm [resolvable:$true] %s621_s1 }
  0x28   : > { %s604_s27 = sshll.u32 %s5797_s12, 4  ;;  %s606_s2 = sshll.u32 %s3982_s14, 4  ;;  %s605_s27 = int_to_ptr.hbm [resolvable:$true] %s604_s27  ;;  %s607_s2 = int_to_ptr.vmem [resolvable:$true] %s606_s2 }
  0x29   : > { %3706 = dma.hbm_to_vmem [thread:$0]  (!%p4170_p12), %s622_s1, 2048, %s624_s28, [#allocation6], %s3980_s3, %s3980_s3, %s3981_s0  }
  0x2a   : > { %3703 = dma.hbm_to_vmem [thread:$0]  (!%p4170_p12), %s605_s27, 2048, %s607_s2, [#allocation3], %s3980_s3, %s3980_s3, %s3981_s0  }
  0x2b   : > { %s637_s23 = sshll.u32 %s3983_s7, 4  ;;  %s3984_s28 = smov [#allocation8]   ;;  %s638_s23 = int_to_ptr.vmem [resolvable:$true] %s637_s23 }
  0x2c   : > { %3709 = dma.hbm_to_vmem [thread:$0]  (!%p4170_p12), %s636_s4, 2048, %s638_s23, [#allocation6], %s3980_s3, %s3980_s3, %s3981_s0  }
  0x2d   : > { %s666_s14 = sshll.u32 %s3984_s28, 4  ;;  %700 = sbr.rel (%p4156_p10) target bundleno = 1257 (0x4e9), region = 112  ;;  %s667_s14 = int_to_ptr.vmem [resolvable:$true] %s666_s14 }
  0x2e   : > { %3712 = dma.hbm_to_vmem [thread:$0]  (!%p4170_p12), %s665_s22, 2048, %s667_s14, [#allocation9], %s3980_s3, %s3980_s3, %s3981_s0  }
  0x32   : > { %3948 = dma.done.wait (%p3717_p9), [#allocation3], 2048  }
  0x33   : > { %3950 = vsyncadd (%p3717_p9), [#allocation3], 4294965248 }
  0x34   : > { %3952 = dma.done.wait (%p3717_p9), [#allocation6], 4096  }
  0x35   : > { %3954 = vsyncadd (%p3717_p9), [#allocation6], 4294963200 }
  0x36   : > { %3956 = dma.done.wait (%p3717_p9), [#allocation9], 2048  }
  0x37   : > { %3958 = vsyncadd (%p3717_p9), [#allocation9], 4294965248  ;;  %vm1334_vm0 = vcmask 1040384   ;;  %p783_p13 = scmp.lt.s32.totalorder %s4128_s5, 1  ;;  %vm1335_vm1 = vcmask 1041408   ;;  %v3985_v0 = vmov 65535  }
  0x38   : > { %v1336_v1 = vsel %vm1334_vm0, 4294967295, %v3985_v0  ;;  %s5799_s24 = sld [smem:[#allocation63_spill]]  ;;  %vm848_vm2 = vsmask.f32 3328  ;;  %vm849_vm3 = vsmask.f32 7440 }
  0x39   : > { %s4204_s12 = scalar_select %p783_p13, %s4128_s5, 1  ;;  %v4207_v2 = vsel %vm1335_vm1, %v1336_v1, 0  ;;  %vm4245_vm4 = vmor %vm848_vm2, %vm849_vm3  ;;  %vm1285_vm5 = vcmask 23552   ;;  %vm1666_vm6 = vcmask 1042432   ;;  %vm1667_vm7 = vcmask 1046532  }
  0x3a   : > { %s5800_s29 = sld [smem:[#allocation64_spill]]  ;;  %vm4513_vm8 = vmor %vm1666_vm6, %vm1667_vm7 }
  0x3b   : > { %s3681_s22 = smul.u32 216, %s4204_s12  ;;  %s5857_s6 = sld [smem:[#allocation69_spill]] }
  0x3c   : > { %s5884_s3 = sld [smem:[#allocation66_spill]] }
  0x3d   : > { %s5901_s7 = sld [smem:[#allocation68_spill]] }
  0x3e   : > { %s4212_s25 = scalar_lea.vmem %s5799_s24, %s3681_s22  ;;  %s5890_s24 = sld [smem:[#allocation65_spill]] }
  0x3f   : > { %v4218_v4 = vld [vmem:[%s4212_s25] sm:$0xf]  ;;  %v4221_v5 = vld [vmem:[%s4212_s25 + $0x4] sm:$0xf]  ;;  %v4225_v7 = vld [vmem:[%s4212_s25 + $0x8] sm:$0x1] }
  0x40   : > { %v3416_v3 = vld [vmem:[%s5800_s29 + $0x2] sm:$0x3]  ;;  %v852_v8 = vshrl.u32 %v4218_v4, 16  ;;  %v855_v9 = vshll.u32 %v4218_v4, 16  ;;  %v861_v10 = vshll.u32 %v4221_v5, 16  ;;  %v865_v11 = vshrl.u32 %v4221_v5, 16 }
  0x41   : > { %v1339_v6 = vand.u32 %v3416_v3, %v4207_v2  ;;  %v871_v12 = vshll.u32 %v4225_v7, 16  ;;  %v814_v13 = vld [vmem:[%s4212_s25 + $0x54] sm:$0xf]  ;;  %v4234_v17 = vld [vmem:[%s4212_s25 + $0x58] sm:$0xf]  ;;  %s5902_s22 = sld [smem:[#allocation70_spill]] }
  0x42   : > { %v854_v14 = vrot.slane %v852_v8, 4  ;;  %v857_v15 = vrot.slane %v855_v9, 5  ;;  %v863_v16 = vrot.slane %v861_v10, 5  ;;  %v1020_v18 = vshrl.u32 %v814_v13, 16  ;;  %v4237_v20 = vld [vmem:[%s4212_s25 + $0x5c] sm:$0x1] }
  0x43   : > { %1348 = vmatpush.bf16.msra.mxu0 %v1339_v6  ;;  %3678 = vmatpush.bf16.msra.mxu1 %v1339_v6  ;;  %v867_v19 = vrot.slane %v865_v11, 4  ;;  %v1023_v21 = vshll.u32 %v814_v13, 16  ;;  %v1029_v22 = vshll.u32 %v4234_v17, 16  ;;  %v1033_v25 = vshrl.u32 %v4234_v17, 16  ;;  %v817_v27 = vld [vmem:[%s4212_s25 + $0x60] sm:$0xf] }
  0x44   : > { %3679 = vmatpush.bf16.msra.mxu2 %v1339_v6  ;;  %3680 = vmatpush.bf16.msra.mxu3 %v1339_v6  ;;  %v858_v23 = vor.u32 %v857_v15, %v854_v14  ;;  %v1022_v24 = vrot.slane %v1020_v18, 4  ;;  %v1039_v26 = vshll.u32 %v4237_v20, 16  ;;  %v873_v30 = vrot.slane %v871_v12, 5  ;;  %v818_v33 = vld [vmem:[%s4212_s25 + $0x64] sm:$0xf]  ;;  %s5905_s0 = sld [smem:[#allocation67_spill]] }
  0x45   : > { %v868_v29 = vor.u32 %v867_v19, %v863_v16  ;;  %v1025_v31 = vrot.slane %v1023_v21, 5  ;;  %v1031_v32 = vrot.slane %v1029_v22, 5  ;;  %v1035_v35 = vrot.slane %v1033_v25, 4  ;;  %v4253_v44 = vld [vmem:[%s4212_s25 + $0x68] sm:$0x1]  ;;  %s5906_s26 = sld [smem:[#allocation74_spill]] }
  0x46   : > { %v859_v34 = vrot.slane %v858_v23, 4  ;;  %v1041_v36 = vrot.slane %v1039_v26, 5  ;;  %v1044_v37 = vshrl.u32 %v817_v27, 16  ;;  %v1047_v40 = vshll.u32 %v817_v27, 16  ;;  %v3567_v55 = vld [vmem:[%s5800_s29 + $0x8] sm:$0x3] }
  0x47   : > { %v869_v38 = vrot.slane %v868_v29, 4  ;;  %v1026_v39 = vor.u32 %v1025_v31, %v1022_v24  ;;  %v1053_v41 = vshll.u32 %v818_v33, 16  ;;  %v1036_v43 = vor.u32 %v1035_v35, %v1031_v32  ;;  %v829_v59 = vld [vmem:[%s4212_s25 + $0x90] sm:$0xf]  ;;  %v830_v60 = vld [vmem:[%s4212_s25 + $0x94] sm:$0xf] }
  0x48   : > { %v864_v42 = vsel %vm4245_vm4, %v859_v34, %v863_v16  ;;  %v1046_v45 = vrot.slane %v1044_v37, 4  ;;  %v1057_v46 = vshrl.u32 %v818_v33, 16  ;;  %v1049_v50 = vrot.slane %v1047_v40, 5  ;;  %v831_v1 = vld [vmem:[%s4212_s25 + $0x98] sm:$0x1]  ;;  %s5908_s4 = sld [smem:[#allocation73_spill]] }
  0x49   : > { %v874_v47 = vsel %vm4245_vm4, %v869_v38, %v873_v30  ;;  %v1237_v48 = vunpack.c.l.b16 %v864_v42  ;;  %v1027_v49 = vrot.slane %v1026_v39, 4  ;;  %v1037_v52 = vrot.slane %v1036_v43, 4  ;;  %v847_v19 = vld [vmem:[%s5800_s29] sm:$0x3]  ;;  %v4278_v21 = vld [vmem:[%s4212_s25 + $0xc] sm:$0xf] }
  0x4a   : > { %v1238_v51 = vunpack.c.l.b16 %v874_v47  ;;  %v1055_v53 = vrot.slane %v1053_v41, 5  ;;  %v1059_v54 = vrot.slane %v1057_v46, 4  ;;  %v1050_v57 = vor.u32 %v1049_v50, %v1046_v45  ;;  %v4283_v26 = vld [vmem:[%s4212_s25 + $0x10] sm:$0xf]  ;;  %v4288_v31 = vld [vmem:[%s4212_s25 + $0x14] sm:$0x1] }
  0x4b   : > { %v1032_v56 = vsel %vm4245_vm4, %v1027_v49, %v1031_v32  ;;  %v1063_v58 = vshll.u32 %v4253_v44, 16  ;;  %v1042_v62 = vsel %vm4245_vm4, %v1037_v52, %v1041_v36  ;;  %v2170_v9 = vand.u32 %v3567_v55, %v4207_v2  ;;  %v4293_v36 = vld [vmem:[%s4212_s25 + $0x6c] sm:$0xf]  ;;  %v4304_v49 = vld [vmem:[%s4212_s25 + $0x70] sm:$0xf]  ;;  %s3290_s14 = scalar_lea.hbm %s5906_s26, %s4128_s5  ;;  %s3923_s2 = scalar_lea.hbm %s5906_s26, 2 }
  0x4c   : > { %v1269_v61 = vpack.c.b16 %v1238_v51, %v1237_v48  ;;  %v1251_v63 = vunpack.c.l.b16 %v1032_v56  ;;  %v1060_v0 = vor.u32 %v1059_v54, %v1055_v53  ;;  %v1252_v3 = vunpack.c.l.b16 %v1042_v62  ;;  %v4310_v54 = vld [vmem:[%s4212_s25 + $0x74] sm:$0x1] }
  0x4d   : > { %v1051_v6 = vrot.slane %v1050_v57, 4  ;;  %v1065_v8 = vrot.slane %v1063_v58, 5  ;;  %v1140_v11 = vshrl.u32 %v829_v59, 16  ;;  %v1143_v12 = vshll.u32 %v829_v59, 16  ;;  %2179 = vmatpush.bf16.msrb.mxu0 %v2170_v9 }
  0x4e   : > { %3417 = vmatmul.msk.bf16.vlgmr.msra.gmra.mxu0 %vm1285_vm5, %v1269_v61  ;;  %v1061_v10 = vrot.slane %v1060_v0, 4  ;;  %v1149_v13 = vshll.u32 %v830_v60, 16  ;;  %v4270_v14 = vpack.c.b16 %v1252_v3, %v1251_v63  ;;  %v1153_v16 = vshrl.u32 %v830_v60, 16  ;;  %v832_v0 = vld [vmem:[%s4212_s25 + $0x9c] sm:$0xf] }
  0x4f   : > { %v1056_v15 = vsel %vm4245_vm4, %v1051_v6, %v1055_v53  ;;  %v1159_v18 = vshll.u32 %v831_v1, 16  ;;  %v1142_v24 = vrot.slane %v1140_v11, 4  ;;  %v1145_v25 = vrot.slane %v1143_v12, 5  ;;  %v833_v12 = vld [vmem:[%s4212_s25 + $0xa0] sm:$0xf] }
  0x50   : > { %v1066_v22 = vsel %vm4245_vm4, %v1061_v10, %v1065_v8  ;;  %v1253_v23 = vunpack.c.l.b16 %v1056_v15  ;;  %3424 = vmatmul.msk.bf16.vlgmr.msra.gmra.mxu1 %vm1285_vm5, %v4270_v14  ;;  %v1151_v29 = vrot.slane %v1149_v13, 5  ;;  %v1155_v30 = vrot.slane %v1153_v16, 4 }
  0x51   : > { %v1254_v27 = vunpack.c.l.b16 %v1066_v22  ;;  %v1146_v32 = vor.u32 %v1145_v25, %v1142_v24  ;;  %v1161_v33 = vrot.slane %v1159_v18, 5  ;;  %v1559_v34 = vand.u32 %v4207_v2, %v847_v19  ;;  %v834_v18 = vld [vmem:[%s4212_s25 + $0xa4] sm:$0x1] }
  0x52   : > { %v876_v35 = vshrl.u32 %v4278_v21, 16  ;;  %v1156_v38 = vor.u32 %v1155_v30, %v1151_v29  ;;  %v879_v39 = vshll.u32 %v4278_v21, 16  ;;  %v885_v40 = vshll.u32 %v4283_v26, 16  ;;  %v3660_v30 = vld [vmem:[%s4212_s25] sm:$0xff] }
  0x53   : > { %v4295_v37 = vpack.c.b16 %v1254_v27, %v1253_v23  ;;  %v1147_v41 = vrot.slane %v1146_v32, 4  ;;  %1568 = vmatpush.bf16.msrb.mxu1 %v1559_v34  ;;  %v889_v43 = vshrl.u32 %v4283_v26, 16  ;;  %v895_v45 = vshll.u32 %v4288_v31, 16  ;;  %v4331_v34 = vld [vmem:[%s4212_s25 + $0x18] sm:$0xf] }
  0x54   : > { %v878_v42 = vrot.slane %v876_v35, 4  ;;  %v1157_v46 = vrot.slane %v1156_v38, 4  ;;  %v881_v47 = vrot.slane %v879_v39, 5  ;;  %v887_v48 = vrot.slane %v885_v40, 5 }
  0x55   : > { %3425 = vmatmul.msk.bf16.vlgmr.msra.gmra.mxu2 %vm1285_vm5, %v4295_v37  ;;  %v1068_v50 = vshrl.u32 %v4293_v36, 16  ;;  %v1152_v51 = vsel %vm4245_vm4, %v1147_v41, %v1151_v29  ;;  %v891_v52 = vrot.slane %v889_v43, 4  ;;  %v897_v53 = vrot.slane %v895_v45, 5  ;;  %v4336_v41 = vld [vmem:[%s4212_s25 + $0x1c] sm:$0xf] }
  0x56   : > { %v1071_v55 = vshll.u32 %v4293_v36, 16  ;;  %v1162_v56 = vsel %vm4245_vm4, %v1157_v46, %v1161_v33  ;;  %v1261_v57 = vunpack.c.l.b16 %v1152_v51  ;;  %v882_v58 = vor.u32 %v881_v47, %v878_v42  ;;  %v4341_v51 = vld [vmem:[%s4212_s25 + $0x20] sm:$0x1] }
  0x57   : > { %v1070_v59 = vrot.slane %v1068_v50, 4  ;;  %v1262_v60 = vunpack.c.l.b16 %v1162_v56  ;;  %v892_v61 = vor.u32 %v891_v52, %v887_v48  ;;  %v1077_v63 = vshll.u32 %v4304_v49, 16 }
  0x58   : > { %v1073_v62 = vrot.slane %v1071_v55, 5  ;;  %v883_v1 = vrot.slane %v882_v58, 4  ;;  %v1081_v3 = vshrl.u32 %v4304_v49, 16  ;;  %v1087_v6 = vshll.u32 %v4310_v54, 16 }
  0x59   : > { %v4319_v8 = vpack.c.b16 %v1262_v60, %v1261_v57  ;;  %v893_v9 = vrot.slane %v892_v61, 4  ;;  %v1079_v11 = vrot.slane %v1077_v63, 5  ;;  %v1164_v19 = vshrl.u32 %v832_v0, 16  ;;  %v4353_v61 = vld [vmem:[%s4212_s25 + $0x78] sm:$0xf] }
  0x5a   : > { %v1074_v10 = vor.u32 %v1073_v62, %v1070_v59  ;;  %v888_v13 = vsel %vm4245_vm4, %v883_v1, %v887_v48  ;;  %v1083_v15 = vrot.slane %v1081_v3, 4  ;;  %v1089_v16 = vrot.slane %v1087_v6, 5  ;;  %v4357_v3 = vld [vmem:[%s4212_s25 + $0x7c] sm:$0xf] }
  0x5b   : > { %5803 = vst [vmem:[#allocation22_spill] sm:$0xff] %v4319_v8  ;;  %3429 = vmatmul.msk.bf16.vlgmr.msra.gmra.mxu3 %vm1285_vm5, %v4319_v8  ;;  %v898_v22 = vsel %vm4245_vm4, %v893_v9, %v897_v53  ;;  %v1239_v23 = vunpack.c.l.b16 %v888_v13  ;;  %v1167_v25 = vshll.u32 %v832_v0, 16  ;;  %v1166_v32 = vrot.slane %v1164_v19, 4 }
  0x5c   : > { %v1075_v24 = vrot.slane %v1074_v10, 4  ;;  %v1240_v27 = vunpack.c.l.b16 %v898_v22  ;;  %v1084_v29 = vor.u32 %v1083_v15, %v1079_v11  ;;  %v1173_v33 = vshll.u32 %v833_v12, 16 }
  0x5d   : > { %v1169_v38 = vrot.slane %v1167_v25, 5  ;;  %v1177_v39 = vshrl.u32 %v833_v12, 16  ;;  %v1183_v40 = vshll.u32 %v834_v18, 16  ;;  %v900_v53 = vshrl.u32 %v4331_v34, 16 }
  0x5e   : > { %v1080_v35 = vsel %vm4245_vm4, %v1075_v24, %v1079_v11  ;;  %v4338_v42 = vpack.c.b16 %v1240_v27, %v1239_v23  ;;  %v1085_v43 = vrot.slane %v1084_v29, 4  ;;  %v1175_v45 = vrot.slane %v1173_v33, 5 }
  0x5f   : > { %v1255_v46 = vunpack.c.l.b16 %v1080_v35  ;;  %v1170_v47 = vor.u32 %v1169_v38, %v1166_v32  ;;  %v1179_v48 = vrot.slane %v1177_v39, 4  ;;  %v1185_v50 = vrot.slane %v1183_v40, 5  ;;  %v835_v39 = vld [vmem:[%s4212_s25 + $0xa8] sm:$0xf] }
  0x60   : > { %3418 = vmatmul.msk.bf16.gmra.mxu0 %vm1285_vm5, %v4338_v42  ;;  %v1090_v52 = vsel %vm4245_vm4, %v1085_v43, %v1089_v16  ;;  %3497 = vmatmul.msk.bf16.vlgmr.msrb.gmra.mxu1 %vm1285_vm5, %v3660_v30  ;;  %v903_v55 = vshll.u32 %v4331_v34, 16  ;;  %v909_v56 = vshll.u32 %v4336_v41, 16  ;;  %v913_v60 = vshrl.u32 %v4336_v41, 16  ;;  %v4364_v16 = vld [vmem:[%s4212_s25 + $0x80] sm:$0x1] }
  0x61   : > { %v1256_v57 = vunpack.c.l.b16 %v1090_v52  ;;  %v1171_v58 = vrot.slane %v1170_v47, 4  ;;  %v1180_v59 = vor.u32 %v1179_v48, %v1175_v45  ;;  %v902_v62 = vrot.slane %v900_v53, 4  ;;  %v4384_v47 = vld [vmem:[%s4212_s25 + $0xb0] sm:$0x1] }
  0x62   : > { %v905_v63 = vrot.slane %v903_v55, 5  ;;  %v911_v0 = vrot.slane %v909_v56, 5  ;;  %v919_v1 = vshll.u32 %v4341_v51, 16  ;;  %v915_v11 = vrot.slane %v913_v60, 4  ;;  %5806 = vst [vmem:[#allocation25_spill] sm:$0xff] %v4384_v47 }
  0x63   : > { %v4359_v6 = vpack.c.b16 %v1256_v57, %v1255_v46  ;;  %v1176_v9 = vsel %vm4245_vm4, %v1171_v58, %v1175_v45  ;;  %v1181_v10 = vrot.slane %v1180_v59, 4  ;;  %v1092_v18 = vshrl.u32 %v4353_v61, 16  ;;  %v4381_v46 = vld [vmem:[%s4212_s25 + $0xac] sm:$0xf] }
  0x64   : > { %v1263_v12 = vunpack.c.l.b16 %v1176_v9  ;;  %v906_v13 = vor.u32 %v905_v63, %v902_v62  ;;  %v921_v15 = vrot.slane %v919_v1, 5  ;;  %v916_v22 = vor.u32 %v915_v11, %v911_v0 }
  0x65   : > { %5804 = vst [vmem:[#allocation23_spill] sm:$0xff] %v4359_v6  ;;  %3426 = vmatmul.msk.bf16.gmra.mxu2 %vm1285_vm5, %v4359_v6  ;;  %v1186_v19 = vsel %vm4245_vm4, %v1181_v10, %v1185_v50  ;;  %v1095_v23 = vshll.u32 %v4353_v61, 16  ;;  %v1101_v24 = vshll.u32 %v4357_v3, 16  ;;  %v1094_v29 = vrot.slane %v1092_v18, 4  ;;  %v4399_v10 = vld [vmem:[%s4212_s25 + $0xc] sm:$0xff] }
  0x66   : > { %v1264_v25 = vunpack.c.l.b16 %v1186_v19  ;;  %v907_v27 = vrot.slane %v906_v13, 4  ;;  %v1105_v30 = vshrl.u32 %v4357_v3, 16  ;;  %v917_v32 = vrot.slane %v916_v22, 4  ;;  %v3546_v13 = vld [vmem:[%s5800_s29 + $0x6] sm:$0x3] }
  0x67   : > { %v1097_v33 = vrot.slane %v1095_v23, 5  ;;  %v1103_v35 = vrot.slane %v1101_v24, 5  ;;  %v1111_v38 = vshll.u32 %v4364_v16, 16  ;;  %v1188_v57 = vshrl.u32 %v835_v39, 16  ;;  %v4407_v22 = vld [vmem:[%s4212_s25 + $0x24] sm:$0xf] }
  0x68   : > { %v4376_v40 = vpack.c.b16 %v1264_v25, %v1263_v12  ;;  %v912_v43 = vsel %vm4245_vm4, %v907_v27, %v911_v0  ;;  %v1107_v45 = vrot.slane %v1105_v30, 4  ;;  %v922_v48 = vsel %vm4245_vm4, %v917_v32, %v921_v15  ;;  %v3529_v0 = vld [vmem:[%s5800_s29 + $0x4] sm:$0x3]  ;;  %v4410_v23 = vld [vmem:[%s4212_s25 + $0x28] sm:$0xf] }
  0x69   : > { %v1241_v50 = vunpack.c.l.b16 %v912_v43  ;;  %v1098_v52 = vor.u32 %v1097_v33, %v1094_v29  ;;  %v1113_v53 = vrot.slane %v1111_v38, 5  ;;  %v1242_v55 = vunpack.c.l.b16 %v922_v48  ;;  %v4415_v30 = vld [vmem:[%s4212_s25 + $0x2c] sm:$0x1] }
  0x6a   : > { %5805 = vst [vmem:[#allocation24_spill] sm:$0xff] %v4376_v40  ;;  %v1108_v56 = vor.u32 %v1107_v45, %v1103_v35  ;;  %v1191_v58 = vshll.u32 %v835_v39, 16  ;;  %v1197_v60 = vshll.u32 %v4381_v46, 16  ;;  %v1201_v62 = vshrl.u32 %v4381_v46, 16 }
  0x6b   : > { %3430 = vmatmul.msk.bf16.gmra.mxu3 %vm1285_vm5, %v4376_v40  ;;  %v1099_v59 = vrot.slane %v1098_v52, 4  ;;  %v1207_v63 = vshll.u32 %v4384_v47, 16  ;;  %v4396_v1 = vpack.c.b16 %v1242_v55, %v1241_v50  ;;  %v1190_v11 = vrot.slane %v1188_v57, 4  ;;  %v4427_v50 = vld [vmem:[%s4212_s25 + $0x84] sm:$0xf] }
  0x6c   : > { %v1109_v9 = vrot.slane %v1108_v56, 4  ;;  %v1193_v12 = vrot.slane %v1191_v58, 5  ;;  %v1199_v18 = vrot.slane %v1197_v60, 5  ;;  %v1203_v19 = vrot.slane %v1201_v62, 4  ;;  %v4434_v57 = vld [vmem:[%s4212_s25 + $0x88] sm:$0xf] }
  0x6d   : > { %v1104_v15 = vsel %vm4245_vm4, %v1099_v59, %v1103_v35  ;;  %v1209_v29 = vrot.slane %v1207_v63, 5  ;;  %v1880_v35 = vand.u32 %v3529_v0, %v4207_v2  ;;  %v2014_v38 = vand.u32 %v3546_v13, %v4207_v2  ;;  %v4439_v63 = vld [vmem:[%s4212_s25 + $0x8c] sm:$0x1] }
  0x6e   : > { %v1114_v24 = vsel %vm4245_vm4, %v1109_v9, %v1113_v53  ;;  %v1257_v25 = vunpack.c.l.b16 %v1104_v15  ;;  %v1194_v27 = vor.u32 %v1193_v12, %v1190_v11  ;;  %v1204_v33 = vor.u32 %v1203_v19, %v1199_v18 }
  0x6f   : > { %v1258_v32 = vunpack.c.l.b16 %v1114_v24  ;;  %v924_v43 = vshrl.u32 %v4407_v22, 16  ;;  %v927_v45 = vshll.u32 %v4407_v22, 16  ;;  %v933_v48 = vshll.u32 %v4410_v23, 16  ;;  %1889 = vmatpush.bf16.msrb.mxu2 %v1880_v35  ;;  %2023 = vmatpush.bf16.msrb.mxu3 %v2014_v38 }
  0x70   : > { %3419 = vmatmul.msk.bf16.gmra.mxu0 %vm1285_vm5, %v4396_v1  ;;  %3498 = vmatmul.msk.bf16.gmra.mxu1 %vm1285_vm5, %v4399_v10  ;;  %v1195_v39 = vrot.slane %v1194_v27, 4  ;;  %v1205_v53 = vrot.slane %v1204_v33, 4  ;;  %v937_v55 = vshrl.u32 %v4410_v23, 16  ;;  %v943_v56 = vshll.u32 %v4415_v30, 16 }
  0x71   : > { %v4429_v52 = vpack.c.b16 %v1258_v32, %v1257_v25  ;;  %v926_v59 = vrot.slane %v924_v43, 4  ;;  %v929_v60 = vrot.slane %v927_v45, 5  ;;  %v935_v62 = vrot.slane %v933_v48, 5  ;;  %v4451_v32 = vld [vmem:[%s4212_s25 + $0xb4] sm:$0xf] }
  0x72   : > { %v1200_v58 = vsel %vm4245_vm4, %v1195_v39, %v1199_v18  ;;  %v1210_v0 = vsel %vm4245_vm4, %v1205_v53, %v1209_v29  ;;  %v939_v11 = vrot.slane %v937_v55, 4  ;;  %v945_v12 = vrot.slane %v943_v56, 5  ;;  %5808 = vst [vmem:[#allocation27_spill] sm:$0xff] %v4451_v32  ;;  %v4456_v53 = vld [vmem:[%s4212_s25 + $0xb8] sm:$0xf] }
  0x73   : > { %5807 = vst [vmem:[#allocation26_spill] sm:$0xff] %v4429_v52  ;;  %v1265_v9 = vunpack.c.l.b16 %v1200_v58  ;;  %v1266_v13 = vunpack.c.l.b16 %v1210_v0  ;;  %v930_v15 = vor.u32 %v929_v60, %v926_v59  ;;  %v1116_v19 = vshrl.u32 %v4427_v50, 16  ;;  %v4461_v59 = vld [vmem:[%s4212_s25 + $0xbc] sm:$0x1] }
  0x74   : > { %v1119_v24 = vshll.u32 %v4427_v50, 16  ;;  %v940_v18 = vor.u32 %v939_v11, %v935_v62  ;;  %v1125_v25 = vshll.u32 %v4434_v57, 16  ;;  %v1129_v27 = vshrl.u32 %v4434_v57, 16  ;;  %5810 = vst [vmem:[#allocation29_spill] sm:$0xff] %v4456_v53 }
  0x75   : > { %3427 = vmatmul.msk.bf16.gmra.mxu2 %vm1285_vm5, %v4429_v52  ;;  %v1135_v29 = vshll.u32 %v4439_v63, 16  ;;  %v931_v33 = vrot.slane %v930_v15, 4  ;;  %v1118_v35 = vrot.slane %v1116_v19, 4  ;;  %v4453_v39 = vpack.c.b16 %v1266_v13, %v1265_v9  ;;  %5811 = vst [vmem:[#allocation30_spill] sm:$0xff] %v4461_v59 }
  0x76   : > { %v1121_v38 = vrot.slane %v1119_v24, 5  ;;  %v941_v43 = vrot.slane %v940_v18, 4  ;;  %v1127_v45 = vrot.slane %v1125_v25, 5  ;;  %v1131_v48 = vrot.slane %v1129_v27, 4 }
  0x77   : > { %5809 = vst [vmem:[#allocation28_spill] sm:$0xff] %v4453_v39  ;;  %v936_v55 = vsel %vm4245_vm4, %v931_v33, %v935_v62  ;;  %v1137_v58 = vrot.slane %v1135_v29, 5  ;;  %v1212_v60 = vshrl.u32 %v4451_v32, 16  ;;  %v1215_v13 = vshll.u32 %v4451_v32, 16  ;;  %v4473_v29 = vld [vmem:[%s4212_s25 + $0x30] sm:$0xf] }
  0x78   : > { %v1122_v56 = vor.u32 %v1121_v38, %v1118_v35  ;;  %v946_v0 = vsel %vm4245_vm4, %v941_v43, %v945_v12  ;;  %v1243_v9 = vunpack.c.l.b16 %v936_v55  ;;  %v1132_v11 = vor.u32 %v1131_v48, %v1127_v45  ;;  %v4481_v43 = vld [vmem:[%s4212_s25 + $0x18] sm:$0xff]  ;;  %v4484_v55 = vld [vmem:[%s4212_s25 + $0x34] sm:$0xf] }
  0x79   : > { %v1244_v15 = vunpack.c.l.b16 %v946_v0  ;;  %v1214_v24 = vrot.slane %v1212_v60, 4  ;;  %v1221_v62 = vshll.u32 %v4456_v53, 16  ;;  %v1217_v25 = vrot.slane %v1215_v13, 5  ;;  %v4489_v13 = vld [vmem:[%s4212_s25 + $0x38] sm:$0x1] }
  0x7a   : > { %v1123_v19 = vrot.slane %v1122_v56, 4  ;;  %v1133_v18 = vrot.slane %v1132_v11, 4  ;;  %v1225_v27 = vshrl.u32 %v4456_v53, 16  ;;  %v1231_v12 = vshll.u32 %v4461_v59, 16 }
  0x7b   : > { %3431 = vmatmul.msk.bf16.gmra.mxu3 %vm1285_vm5, %v4453_v39  ;;  %v1674_v33 = vrot.slane %v4225_v7, 5  ;;  %v4476_v35 = vpack.c.b16 %v1244_v15, %v1243_v9  ;;  %v1223_v48 = vrot.slane %v1221_v62, 5  ;;  %v1218_v0 = vor.u32 %v1217_v25, %v1214_v24 }
  0x7c   : > { %v1128_v38 = vsel %vm4245_vm4, %v1123_v19, %v1127_v45  ;;  %v1138_v56 = vsel %vm4245_vm4, %v1133_v18, %v1137_v58  ;;  %v1227_v11 = vrot.slane %v1225_v27, 4  ;;  %v1233_v7 = vrot.slane %v1231_v12, 5 }
  0x7d   : > { %v1259_v60 = vunpack.c.l.b16 %v1128_v38  ;;  %v1260_v39 = vunpack.c.l.b16 %v1138_v56  ;;  %v948_v9 = vshrl.u32 %v4473_v29, 16  ;;  %v951_v45 = vshll.u32 %v4473_v29, 16 }
  0x7e   : > { %v1219_v15 = vrot.slane %v1218_v0, 4  ;;  %v1228_v19 = vor.u32 %v1227_v11, %v1223_v48  ;;  %v957_v62 = vshll.u32 %v4484_v55, 16  ;;  %v961_v40 = vshrl.u32 %v4484_v55, 16  ;;  %v4505_v0 = vld [vmem:[%s4212_s25 + $0x3c] sm:$0xf] }
  0x7f   : > { %v4497_v58 = vpack.c.b16 %v1260_v39, %v1259_v60  ;;  %v950_v24 = vrot.slane %v948_v9, 4  ;;  %v953_v18 = vrot.slane %v951_v45, 5  ;;  %v967_v25 = vshll.u32 %v4489_v13, 16  ;;  %v4508_v39 = vld [vmem:[%s4212_s25 + $0x40] sm:$0xf] }
  0x80   : > { %3420 = vmatmul.msk.bf16.gmra.mxu0 %vm1285_vm5, %v4476_v35  ;;  %3499 = vmatmul.msk.bf16.gmra.mxu1 %vm1285_vm5, %v4481_v43  ;;  %v1224_v27 = vsel %vm4245_vm4, %v1219_v15, %v1223_v48  ;;  %v1229_v12 = vrot.slane %v1228_v19, 4  ;;  %v959_v38 = vrot.slane %v957_v62, 5  ;;  %v963_v56 = vrot.slane %v961_v40, 4 }
  0x81   : > { %5812 = vst [vmem:[#allocation31_spill] sm:$0xff] %v4497_v58  ;;  %v1267_v11 = vunpack.c.l.b16 %v1224_v27  ;;  %v954_v32 = vor.u32 %v953_v18, %v950_v24  ;;  %v969_v59 = vrot.slane %v967_v25, 5  ;;  %v3513_v45 = vrot.slane %v4218_v4, 9 }
  0x82   : > { %v1234_v60 = vsel %vm4245_vm4, %v1229_v12, %v1233_v7  ;;  %v964_v9 = vor.u32 %v963_v56, %v959_v38  ;;  %v5813_v15 = vmov 0  ;;  %v1671_v40 = vrot.slane %v4221_v5, 5 }
  0x83   : > { %v1268_v53 = vunpack.c.l.b16 %v1234_v60  ;;  %v955_v48 = vrot.slane %v954_v32, 4  ;;  %v5814_v15 = vsel %vm4513_vm8, 4294967295, %v5813_v15  ;;  %v972_v19 = vshrl.u32 %v4505_v0, 16 }
  0x84   : > { %5815 = vst [vmem:[#allocation32_spill] sm:$0xff] %v5814_v15  ;;  %v965_v62 = vrot.slane %v964_v9, 4  ;;  %v975_v7 = vshll.u32 %v4505_v0, 16  ;;  %v981_v24 = vshll.u32 %v4508_v39, 16  ;;  %v985_v4 = vshrl.u32 %v4508_v39, 16 }
  0x85   : > { %3428 = vmatmul.msk.bf16.gmra.mxu2 %vm1285_vm5, %v4497_v58  ;;  %v960_v32 = vsel %vm4245_vm4, %v955_v48, %v959_v38  ;;  %v1673_v18 = vrot.slane %v1671_v40, 4  ;;  %v4526_v25 = vpack.c.b16 %v1268_v53, %v1267_v11  ;;  %v1672_v12 = vsel %vm4513_vm8, %v3513_v45, %v1671_v40  ;;  %v4535_v9 = vld [vmem:[%s4212_s25 + $0x44] sm:$0x1]  ;;  %v5035_v15 = vld [vmem:[%s4212_s25 + $0xc8] sm:$0x1] }
  0x86   : > { %v970_v5 = vsel %vm4245_vm4, %v965_v62, %v969_v59  ;;  %v1245_v27 = vunpack.c.l.b16 %v960_v32  ;;  %v974_v8 = vrot.slane %v972_v19, 4  ;;  %v977_v47 = vrot.slane %v975_v7, 5  ;;  %v4546_v19 = vld [vmem:[%s4212_s25 + $0x24] sm:$0xff] }
  0x87   : > { %v1246_v56 = vunpack.c.l.b16 %v970_v5  ;;  %v1675_v60 = vsel %vm4513_vm8, %v1673_v18, %v1674_v33  ;;  %v983_v38 = vrot.slane %v981_v24, 5  ;;  %v987_v48 = vrot.slane %v985_v4, 4 }
  0x88   : > { %v3514_v53 = vrot.slane %v4278_v21, 9  ;;  %v1678_v11 = vrot.slane %v4283_v26, 5  ;;  %v1681_v59 = vrot.slane %v4288_v31, 5  ;;  %v1783_v45 = vunpack.c.l.b16 %v1672_v12 }
  0x89   : > { %v1784_v40 = vunpack.c.l.b16 %v1675_v60  ;;  %v991_v33 = vshll.u32 %v4535_v9, 16  ;;  %v4543_v62 = vpack.c.b16 %v1246_v56, %v1245_v27  ;;  %v978_v7 = vor.u32 %v977_v47, %v974_v8  ;;  %v4557_v8 = vld [vmem:[%s4212_s25 + $0x48] sm:$0xf]  ;;  %v4562_v56 = vld [vmem:[%s4212_s25 + $0x4c] sm:$0xf] }
  0x8a   : > { %v1679_v21 = vsel %vm4513_vm8, %v3514_v53, %v1678_v11  ;;  %v1680_v26 = vrot.slane %v1678_v11, 4  ;;  %v988_v24 = vor.u32 %v987_v48, %v983_v38  ;;  %v3515_v60 = vrot.slane %v4331_v34, 9 }
  0x8b   : > { %3432 = vmatmul.msk.bf16.gmra.mxu3 %vm1285_vm5, %v4526_v25  ;;  %v1785_v31 = vunpack.c.l.b16 %v1679_v21  ;;  %v1815_v18 = vpack.c.b16 %v1784_v40, %v1783_v45  ;;  %v979_v5 = vrot.slane %v978_v7, 4  ;;  %v993_v27 = vrot.slane %v991_v33, 5 }
  0x8c   : > { %v1682_v4 = vsel %vm4513_vm8, %v1680_v26, %v1681_v59  ;;  %v989_v47 = vrot.slane %v988_v24, 4  ;;  %v1685_v48 = vrot.slane %v4336_v41, 5  ;;  %v1688_v53 = vrot.slane %v4341_v51, 5 }
  0x8d   : > { %v1786_v32 = vunpack.c.l.b16 %v1682_v4  ;;  %v996_v45 = vshrl.u32 %v4557_v8, 16  ;;  %v999_v40 = vshll.u32 %v4557_v8, 16  ;;  %v1005_v33 = vshll.u32 %v4562_v56, 16 }
  0x8e   : > { %v1686_v11 = vsel %vm4513_vm8, %v3515_v60, %v1685_v48  ;;  %v1687_v59 = vrot.slane %v1685_v48, 4  ;;  %v984_v34 = vsel %vm4245_vm4, %v979_v5, %v983_v38  ;;  %v994_v41 = vsel %vm4245_vm4, %v989_v47, %v993_v27  ;;  %v3602_v38 = vld [vmem:[%s5800_s29 + $0xc] sm:$0x3]  ;;  %v3623_v5 = vld [vmem:[%s5800_s29 + $0xe] sm:$0x3] }
  0x8f   : > { %v4559_v12 = vpack.c.b16 %v1786_v32, %v1785_v31  ;;  %v1787_v7 = vunpack.c.l.b16 %v1686_v11  ;;  %v1009_v51 = vshrl.u32 %v4562_v56, 16  ;;  %v1247_v24 = vunpack.c.l.b16 %v984_v34  ;;  %v4583_v11 = vld [vmem:[%s4212_s25 + $0x50] sm:$0x1]  ;;  %v3585_v27 = vld [vmem:[%s5800_s29 + $0xa] sm:$0x3] }
  0x90   : > { %3421 = vmatmul.msk.bf16.gmra.mxu0 %vm1285_vm5, %v4543_v62  ;;  %3500 = vmatmul.msk.bf16.gmra.mxu1 %vm1285_vm5, %v4546_v19  ;;  %v1689_v21 = vsel %vm4513_vm8, %v1687_v59, %v1688_v53  ;;  %v1248_v31 = vunpack.c.l.b16 %v994_v41  ;;  %v998_v32 = vrot.slane %v996_v45, 4  ;;  %v1001_v60 = vrot.slane %v999_v40, 5  ;;  %v4599_v53 = vld [vmem:[%s4212_s25 + $0x30] sm:$0xff] }
  0x91   : > { %v1788_v26 = vunpack.c.l.b16 %v1689_v21  ;;  %v1011_v48 = vrot.slane %v1009_v51, 4  ;;  %v2444_v59 = vand.u32 %v3602_v38, %v4207_v2  ;;  %v2310_v45 = vand.u32 %v3585_v27, %v4207_v2  ;;  %v3641_v38 = vld [vmem:[%s5800_s29 + $0x10] sm:$0x3] }
  0x92   : > { %v4596_v47 = vpack.c.b16 %v1248_v31, %v1247_v24  ;;  %v1002_v40 = vor.u32 %v1001_v60, %v998_v32  ;;  %v3516_v34 = vrot.slane %v4407_v22, 9  ;;  %v1692_v41 = vrot.slane %v4410_v23, 5 }
  0x93   : > { %v4580_v4 = vpack.c.b16 %v1788_v26, %v1787_v7  ;;  %v1015_v7 = vshll.u32 %v4583_v11, 16  ;;  %2453 = vmatpush.bf16.msra.mxu2 %v2444_v59  ;;  %2319 = vmatpush.bf16.msra.mxu1 %v2310_v45  ;;  %v1695_v51 = vrot.slane %v4415_v30, 5  ;;  %v4633_v45 = vld [vmem:[%s4212_s25 + $0x3c] sm:$0xff] }
  0x94   : > { %5816 = vst [vmem:[#allocation33_spill] sm:$0xff] %v4596_v47  ;;  %v1003_v21 = vrot.slane %v1002_v40, 4  ;;  %v1693_v31 = vsel %vm4513_vm8, %v3516_v34, %v1692_v41  ;;  %v1694_v32 = vrot.slane %v1692_v41, 4  ;;  %v1699_v40 = vrot.slane %v4484_v55, 5 }
  0x95   : > { %3530 = vmatmul.msk.bf16.vlgmr.msrb.gmra.mxu2 %vm1285_vm5, %v1815_v18  ;;  %v1007_v18 = vrot.slane %v1005_v33, 5  ;;  %v1017_v24 = vrot.slane %v1015_v7, 5  ;;  %v1789_v60 = vunpack.c.l.b16 %v1693_v31  ;;  %5818 = vst [vmem:[#allocation35_spill] sm:$0xff] %v4633_v45  ;;  %v1706_v55 = vrot.slane %v4508_v39, 5 }
  0x96   : > { %v1701_v34 = vrot.slane %v1699_v40, 4  ;;  %v1709_v31 = vrot.slane %v4535_v9, 5 }
  0x97   : > { %v1012_v33 = vor.u32 %v1011_v48, %v1007_v18  ;;  %v1696_v48 = vsel %vm4513_vm8, %v1694_v32, %v1695_v51  ;;  %v1008_v22 = vsel %vm4245_vm4, %v1003_v21, %v1007_v18 }
  0x98   : > { %v1790_v30 = vunpack.c.l.b16 %v1696_v48  ;;  %v1249_v59 = vunpack.c.l.b16 %v1008_v22 }
  0x99   : > { %v1013_v26 = vrot.slane %v1012_v33, 4  ;;  %v1702_v33 = vrot.slane %v4489_v13, 5  ;;  %v3518_v13 = vrot.slane %v4505_v0, 9  ;;  %v4673_v0 = vld [vmem:[%s4212_s25 + $0x54] sm:$0xff] }
  0x9a   : > { %v4626_v27 = vpack.c.b16 %v1790_v30, %v1789_v60  ;;  %5820 = vst [vmem:[#allocation37_spill] sm:$0xff] %v4673_v0 }
  0x9b   : > { %3551 = vmatmul.msk.bf16.vlgmr.msrb.gmra.mxu3 %vm1285_vm5, %v4399_v10  ;;  %v2600_v10 = vand.u32 %v3623_v5, %v4207_v2  ;;  %v1018_v23 = vsel %vm4245_vm4, %v1013_v26, %v1017_v24  ;;  %v2740_v5 = vand.u32 %v3641_v38, %v4207_v2  ;;  %v3517_v2 = vrot.slane %v4473_v29, 9  ;;  %v4653_v29 = vld [vmem:[%s4212_s25 + $0x48] sm:$0xff] }
  0x9c   : > { %v1703_v51 = vsel %vm4513_vm8, %v1701_v34, %v1702_v33  ;;  %5819 = vst [vmem:[#allocation36_spill] sm:$0xff] %v4653_v29  ;;  %v1708_v24 = vrot.slane %v1706_v55, 4  ;;  %v1707_v32 = vsel %vm4513_vm8, %v3518_v13, %v1706_v55  ;;  %v3519_v55 = vrot.slane %v4557_v8, 9 }
  0x9d   : > { %2609 = vmatpush.bf16.msra.mxu3 %v2600_v10  ;;  %v1250_v10 = vunpack.c.l.b16 %v1018_v23  ;;  %2749 = vmatpush.bf16.msra.mxu0 %v2740_v5  ;;  %v1700_v7 = vsel %vm4513_vm8, %v3517_v2, %v1699_v40  ;;  %v1792_v21 = vunpack.c.l.b16 %v1703_v51  ;;  %v1793_v48 = vunpack.c.l.b16 %v1707_v32  ;;  %v4690_v5 = vld [vmem:[%s4212_s25 + $0x60] sm:$0xff] }
  0x9e   : > { %v1791_v41 = vunpack.c.l.b16 %v1700_v7  ;;  %v1710_v60 = vsel %vm4513_vm8, %v1708_v24, %v1709_v31  ;;  %5821 = vst [vmem:[#allocation38_spill] sm:$0xff] %v4690_v5  ;;  %v1713_v7 = vrot.slane %v4562_v56, 5  ;;  %v1716_v24 = vrot.slane %v4583_v11, 5 }
  0x9f   : > { %v4630_v18 = vpack.c.b16 %v1250_v10, %v1249_v59  ;;  %v1794_v22 = vunpack.c.l.b16 %v1710_v60  ;;  %v4720_v60 = vld [vmem:[%s4212_s25 + $0x6c] sm:$0xff] }
  0xa0   : > { %3422 = vmatmul.msk.bf16.gmra.mxu0 %vm1285_vm5, %v4596_v47  ;;  %3501 = vmatmul.msk.bf16.gmra.mxu1 %vm1285_vm5, %v4599_v53  ;;  %v4648_v26 = vpack.c.b16 %v1792_v21, %v1791_v41  ;;  %v1715_v13 = vrot.slane %v1713_v7, 4  ;;  %v1714_v32 = vsel %vm4513_vm8, %v3519_v55, %v1713_v7  ;;  %5824 = vst [vmem:[#allocation41_spill] sm:$0xff] %v4720_v60 }
  0xa1   : > { %5817 = vst [vmem:[#allocation34_spill] sm:$0xff] %v4630_v18  ;;  %v1795_v8 = vunpack.c.l.b16 %v1714_v32  ;;  %v3773_v32 = vld [vmem:[%s4212_s25 + $0x54] sm:$0xf] }
  0xa2   : > { %v1717_v56 = vsel %vm4513_vm8, %v1715_v13, %v1716_v24 }
  0xa5   : > { %3531 = vmatmul.msk.bf16.gmra.mxu2 %vm1285_vm5, %v4559_v12 }
  0xab   : > { %3552 = vmatmul.msk.bf16.gmra.mxu3 %vm1285_vm5, %v4481_v43 }
  0xb0   : > { %3423 = vmatmul.msk.bf16.gmra.mxu0 %vm1285_vm5, %v4630_v18  ;;  %3502 = vmatmul.msk.bf16.gmra.mxu1 %vm1285_vm5, %v4633_v45 }
  0xb5   : > { %3532 = vmatmul.msk.bf16.gmra.mxu2 %vm1285_vm5, %v4580_v4 }
  0xbb   : > { %3553 = vmatmul.msk.bf16.gmra.mxu3 %vm1285_vm5, %v4546_v19 }
  0xc0   : > { %3503 = vmatmul.msk.bf16.gmra.mxu1 %vm1285_vm5, %v4653_v29  ;;  %3568 = vmatmul.msk.bf16.vlgmr.msrb.gmra.mxu0 %vm1285_vm5, %v4338_v42  ;;  %v4668_v42 = vpack.c.b16 %v1794_v22, %v1793_v48 }
  0xc5   : > { %3533 = vmatmul.msk.bf16.gmra.mxu2 %vm1285_vm5, %v4626_v27 }
  0xcb   : > { %v1350_v39 = vpop.f32.mrf.mxu0  ;;  %3554 = vmatmul.msk.bf16.gmra.mxu3 %vm1285_vm5, %v4599_v53 }
  0xcd   : > { %v4675_v9 = vpop.f32.mrf.mxu1 }
  0xd0   : > { %3504 = vmatmul.msk.bf16.gmra.mxu1 %vm1285_vm5, %v4673_v0  ;;  %3569 = vmatmul.msk.bf16.gmra.mxu0 %vm1285_vm5, %v4396_v1 }
  0xd3   : > { %v1352_v23 = vpop.f32.mrf.mxu0 }
  0xd5   : > { %3534 = vmatmul.msk.bf16.gmra.mxu2 %vm1285_vm5, %v4648_v26  ;;  %v4683_v30 = vpop.f32.mrf.mxu1 }
  0xd8   : > { %v4685_v38 = vpop.f32.mrf.mxu2 }
  0xdb   : > { %3555 = vmatmul.msk.bf16.gmra.mxu3 %vm1285_vm5, %v4633_v45 }
  0xdd   : > { %v1355_v59 = vpop.f32.mrf.mxu0  ;;  %v1570_v10 = vpop.f32.mrf.mxu1 }
  0xde   : > { %v4692_v2 = vpop.f32.mrf.mxu3  ;;  %v4694_v40 = vadd.f32 %v1570_v10, %v1350_v39  ;;  %v1796_v39 = vunpack.c.l.b16 %v1717_v56  ;;  %v3520_v56 = vrot.slane %v3773_v32, 9 }
  0xdf   : > { %5822 = vst [vmem:[#allocation39_spill] sm:$0xff] %v4692_v2 }
  0xe0   : > { %v4696_v33 = vpop.f32.mrf.mxu2  ;;  %3505 = vmatmul.msk.bf16.gmra.mxu1 %vm1285_vm5, %v4690_v5  ;;  %3570 = vmatmul.msk.bf16.gmra.mxu0 %vm1285_vm5, %v4476_v35  ;;  %v4732_v7 = vpack.c.b16 %v1796_v39, %v1795_v8  ;;  %v4752_v39 = vld [vmem:[%s4212_s25 + $0x78] sm:$0xff] }
  0xe1   : > { %5827 = vst [vmem:[#allocation44_spill] sm:$0xff] %v4752_v39 }
  0xe5   : > { %3535 = vmatmul.msk.bf16.gmra.mxu2 %vm1285_vm5, %v4668_v42  ;;  %v1357_v34 = vpop.f32.mrf.mxu0  ;;  %v1572_v41 = vpop.f32.mrf.mxu1 }
  0xe6   : > { %v4705_v51 = vpop.f32.mrf.mxu3  ;;  %v4707_v21 = vadd.f32 %v1572_v41, %v1352_v23  ;;  %v1720_v41 = vrot.slane %v4234_v17, 5 }
  0xe7   : > { %5823 = vst [vmem:[#allocation40_spill] sm:$0xff] %v4705_v51 }
  0xe8   : > { %v4711_v31 = vpop.f32.mrf.mxu2  ;;  %v1721_v17 = vsel %vm4513_vm8, %v3520_v56, %v1720_v41 }
  0xe9   : > { %v1797_v32 = vunpack.c.l.b16 %v1721_v17 }
  0xeb   : > { %3556 = vmatmul.msk.bf16.gmra.mxu3 %vm1285_vm5, %v4653_v29 }
  0xed   : > { %v1360_v48 = vpop.f32.mrf.mxu0  ;;  %v1575_v22 = vpop.f32.mrf.mxu1 }
  0xee   : > { %v4722_v23 = vpop.f32.mrf.mxu3  ;;  %v4724_v11 = vadd.f32 %v1575_v22, %v1355_v59  ;;  %v1722_v22 = vrot.slane %v1720_v41, 4  ;;  %v3774_v41 = vld [vmem:[%s4212_s25 + $0x64] sm:$0xf] }
  0xef   : > { %5825 = vst [vmem:[#allocation42_spill] sm:$0xff] %v4722_v23  ;;  %v1723_v23 = vrot.slane %v4237_v20, 5  ;;  %v1727_v56 = vrot.slane %v3774_v41, 5  ;;  %v4784_v41 = vld [vmem:[%s4212_s25 + $0x84] sm:$0xff] }
  0xf0   : > { %v4726_v10 = vpop.f32.mrf.mxu2  ;;  %3506 = vmatmul.msk.bf16.gmra.mxu1 %vm1285_vm5, %v4720_v60  ;;  %3571 = vmatmul.msk.bf16.gmra.mxu0 %vm1285_vm5, %v4543_v62  ;;  %5832 = vst [vmem:[#allocation49_spill] sm:$0xff] %v4784_v41 }
  0xf1   : > { %v1724_v8 = vsel %vm4513_vm8, %v1722_v22, %v1723_v23  ;;  %v1729_v45 = vrot.slane %v1727_v56, 4 }
  0xf5   : > { %3536 = vmatmul.msk.bf16.gmra.mxu2 %vm1285_vm5, %v4732_v7  ;;  %v1362_v55 = vpop.f32.mrf.mxu0  ;;  %v1577_v13 = vpop.f32.mrf.mxu1 }
  0xf6   : > { %v4737_v59 = vpop.f32.mrf.mxu3  ;;  %v4739_v24 = vadd.f32 %v1577_v13, %v1357_v34 }
  0xf7   : > { %5826 = vst [vmem:[#allocation43_spill] sm:$0xff] %v4737_v59  ;;  %v1798_v59 = vunpack.c.l.b16 %v1724_v8 }
  0xf8   : > { %v4743_v51 = vpop.f32.mrf.mxu2 }
  0xf9   : > { %v4764_v23 = vpack.c.b16 %v1798_v59, %v1797_v32 }
  0xfb   : > { %3557 = vmatmul.msk.bf16.gmra.mxu3 %vm1285_vm5, %v4673_v0  ;;  %5829 = vst [vmem:[#allocation46_spill] sm:$0xff] %v4764_v23 }
  0xfd   : > { %v1365_v34 = vpop.f32.mrf.mxu0  ;;  %v1580_v13 = vpop.f32.mrf.mxu1 }
  0xfe   : > { %v4754_v20 = vpop.f32.mrf.mxu3  ;;  %v4756_v2 = vadd.f32 %v1580_v13, %v1360_v48  ;;  %v1730_v48 = vrot.slane %v4253_v44, 5 }
  0xff   : > { %5828 = vst [vmem:[#allocation45_spill] sm:$0xff] %v4754_v20  ;;  %v3775_v20 = vld [vmem:[%s4212_s25 + $0x60] sm:$0xf] }
 0x100   : > { %v4758_v29 = vpop.f32.mrf.mxu2  ;;  %3507 = vmatmul.msk.bf16.gmra.mxu1 %vm1285_vm5, %v4752_v39  ;;  %3572 = vmatmul.msk.bf16.gmra.mxu0 %vm1285_vm5, %v4596_v47  ;;  %v3521_v0 = vrot.slane %v3775_v20, 9  ;;  %v1731_v32 = vsel %vm4513_vm8, %v1729_v45, %v1730_v48 }
 0x102   : > { %v1728_v59 = vsel %vm4513_vm8, %v3521_v0, %v1727_v56  ;;  %v1734_v0 = vrot.slane %v4304_v49, 5 }
 0x105   : > { %3537 = vmatmul.msk.bf16.gmra.mxu2 %vm1285_vm5, %v4764_v23  ;;  %v1367_v22 = vpop.f32.mrf.mxu0  ;;  %v1582_v17 = vpop.f32.mrf.mxu1 }
 0x106   : > { %v4770_v8 = vpop.f32.mrf.mxu3  ;;  %v4772_v13 = vadd.f32 %v1582_v17, %v1362_v55  ;;  %v1799_v55 = vunpack.c.l.b16 %v1728_v59  ;;  %v1800_v17 = vunpack.c.l.b16 %v1731_v32  ;;  %v3522_v32 = vrot.slane %v4293_v36, 9 }
 0x107   : > { %5830 = vst [vmem:[#allocation47_spill] sm:$0xff] %v4770_v8 }
 0x108   : > { %v4775_v47 = vpop.f32.mrf.mxu2  ;;  %v4796_v45 = vpack.c.b16 %v1800_v17, %v1799_v55  ;;  %v1735_v49 = vsel %vm4513_vm8, %v3522_v32, %v1734_v0  ;;  %v1744_v32 = vrot.slane %v4364_v16, 5  ;;  %v4841_v16 = vld [vmem:[%s4212_s25 + $0x9c] sm:$0xff] }
 0x109   : > { %5831 = vst [vmem:[#allocation48_spill] sm:$0xff] %v4775_v47 }
 0x10a   : > { %5835 = vst [vmem:[#allocation52_spill] sm:$0xff] %v4796_v45 }
 0x10b   : > { %3558 = vmatmul.msk.bf16.gmra.mxu3 %vm1285_vm5, %v4690_v5  ;;  %5838 = vst [vmem:[#allocation55_spill] sm:$0xff] %v4841_v16 }
 0x10d   : > { %v1370_v44 = vpop.f32.mrf.mxu0  ;;  %v1585_v8 = vpop.f32.mrf.mxu1 }
 0x10e   : > { %v4786_v23 = vpop.f32.mrf.mxu3  ;;  %v4788_v20 = vadd.f32 %v1585_v8, %v1365_v34  ;;  %v1737_v34 = vrot.slane %v4310_v54, 5  ;;  %v4815_v54 = vld [vmem:[%s4212_s25 + $0x90] sm:$0xff] }
 0x10f   : > { %5833 = vst [vmem:[#allocation50_spill] sm:$0xff] %v4786_v23  ;;  %v1736_v23 = vrot.slane %v1734_v0, 4  ;;  %v1741_v0 = vrot.slane %v4357_v3, 5 }
 0x110   : > { %v4790_v47 = vpop.f32.mrf.mxu2  ;;  %3508 = vmatmul.msk.bf16.gmra.mxu1 %vm1285_vm5, %v4784_v41  ;;  %3573 = vmatmul.msk.bf16.gmra.mxu0 %vm1285_vm5, %v4630_v18  ;;  %5837 = vst [vmem:[#allocation54_spill] sm:$0xff] %v4815_v54 }
 0x111   : > { %5834 = vst [vmem:[#allocation51_spill] sm:$0xff] %v4790_v47  ;;  %v1738_v17 = vsel %vm4513_vm8, %v1736_v23, %v1737_v34 }
 0x112   : > { %v1802_v18 = vunpack.c.l.b16 %v1738_v17  ;;  %v3523_v17 = vrot.slane %v4353_v61, 9 }
 0x114   : > { %v1742_v3 = vsel %vm4513_vm8, %v3523_v17, %v1741_v0  ;;  %v1748_v17 = vrot.slane %v4434_v57, 5 }
 0x115   : > { %3538 = vmatmul.msk.bf16.gmra.mxu2 %vm1285_vm5, %v4796_v45  ;;  %v1372_v56 = vpop.f32.mrf.mxu0  ;;  %v1587_v48 = vpop.f32.mrf.mxu1 }
 0x116   : > { %v4802_v8 = vpop.f32.mrf.mxu3  ;;  %v4804_v59 = vadd.f32 %v1587_v48, %v1367_v22  ;;  %v1801_v48 = vunpack.c.l.b16 %v1735_v49 }
 0x117   : > { %5836 = vst [vmem:[#allocation53_spill] sm:$0xff] %v4802_v8 }
 0x118   : > { %v1891_v5 = vpop.f32.mrf.mxu2  ;;  %v4824_v23 = vpack.c.b16 %v1802_v18, %v1801_v48 }
 0x119   : > { %v1971_v55 = vadd.f32 %v1891_v5, %v4694_v40 }
 0x11b   : > { %3559 = vmatmul.msk.bf16.gmra.mxu3 %vm1285_vm5, %v4720_v60 }
 0x11d   : > { %v1375_v8 = vpop.f32.mrf.mxu0  ;;  %v1590_v22 = vpop.f32.mrf.mxu1 }
 0x11e   : > { %v2025_v36 = vpop.f32.mrf.mxu3  ;;  %v4817_v45 = vadd.f32 %v1590_v22, %v1370_v44  ;;  %v1743_v22 = vrot.slane %v1741_v0, 4 }
 0x11f   : > { %v2105_v47 = vadd.f32 %v2025_v36, %v1971_v55 }
 0x120   : > { %v1893_v5 = vpop.f32.mrf.mxu2  ;;  %3509 = vmatmul.msk.bf16.gmra.mxu1 %vm1285_vm5, %v4815_v54  ;;  %3574 = vmatmul.msk.bf16.gmra.mxu0 %vm1285_vm5, %v4270_v14  ;;  %v1745_v48 = vsel %vm4513_vm8, %v1743_v22, %v1744_v32 }
 0x121   : > { %v1972_v40 = vadd.f32 %v1893_v5, %v4707_v21  ;;  %v1804_v61 = vunpack.c.l.b16 %v1745_v48  ;;  %v1750_v48 = vrot.slane %v1748_v17, 4 }
 0x125   : > { %3539 = vmatmul.msk.bf16.gmra.mxu2 %vm1285_vm5, %v4824_v23  ;;  %v1377_v44 = vpop.f32.mrf.mxu0  ;;  %v1592_v34 = vpop.f32.mrf.mxu1 }
 0x126   : > { %v2027_v55 = vpop.f32.mrf.mxu3  ;;  %v4830_v49 = vadd.f32 %v1592_v34, %v1372_v56  ;;  %v1803_v34 = vunpack.c.l.b16 %v1742_v3  ;;  %v3524_v3 = vrot.slane %v4427_v50, 9 }
 0x127   : > { %v2106_v36 = vadd.f32 %v2027_v55, %v1972_v40 }
 0x128   : > { %v1896_v21 = vpop.f32.mrf.mxu2  ;;  %v4850_v32 = vpack.c.b16 %v1804_v61, %v1803_v34  ;;  %v1749_v57 = vsel %vm4513_vm8, %v3524_v3, %v1748_v17 }
 0x129   : > { %v1973_v18 = vadd.f32 %v1896_v21, %v4724_v11 }
 0x12b   : > { %3560 = vmatmul.msk.bf16.gmra.mxu3 %vm1285_vm5, %v4752_v39 }
 0x12d   : > { %v1380_v56 = vpop.f32.mrf.mxu0  ;;  %v1595_v5 = vpop.f32.mrf.mxu1 }
 0x12e   : > { %v2030_v60 = vpop.f32.mrf.mxu3  ;;  %v4843_v40 = vadd.f32 %v1595_v5, %v1375_v8 }
 0x12f   : > { %v2107_v55 = vadd.f32 %v2030_v60, %v1973_v18  ;;  %v1751_v60 = vrot.slane %v4439_v63, 5  ;;  %v4867_v63 = vld [vmem:[%s4212_s25 + $0xa8] sm:$0xff] }
 0x130   : > { %v1898_v11 = vpop.f32.mrf.mxu2  ;;  %3510 = vmatmul.msk.bf16.gmra.mxu1 %vm1285_vm5, %v4841_v16  ;;  %3575 = vmatmul.msk.bf16.gmra.mxu0 %vm1285_vm5, %v4295_v37  ;;  %5839 = vst [vmem:[#allocation56_spill] sm:$0xff] %v4867_v63 }
 0x131   : > { %v1974_v0 = vadd.f32 %v1898_v11, %v4739_v24  ;;  %v1752_v61 = vsel %vm4513_vm8, %v1750_v48, %v1751_v60  ;;  %v1805_v11 = vunpack.c.l.b16 %v1749_v57 }
 0x135   : > { %3540 = vmatmul.msk.bf16.gmra.mxu2 %vm1285_vm5, %v4850_v32  ;;  %v1382_v8 = vpop.f32.mrf.mxu0  ;;  %v1597_v22 = vpop.f32.mrf.mxu1 }
 0x136   : > { %v2032_v21 = vpop.f32.mrf.mxu3  ;;  %v4856_v18 = vadd.f32 %v1597_v22, %v1377_v44 }
 0x137   : > { %v2108_v5 = vadd.f32 %v2032_v21, %v1974_v0  ;;  %v1806_v0 = vunpack.c.l.b16 %v1752_v61  ;;  %v3777_v61 = vld [vmem:[%s4212_s25 + $0x98] sm:$0x1] }
 0x138   : > { %v1901_v24 = vpop.f32.mrf.mxu2 }
 0x139   : > { %v1975_v34 = vadd.f32 %v1901_v24, %v4756_v2  ;;  %v4878_v48 = vpack.c.b16 %v1806_v0, %v1805_v11  ;;  %v3776_v24 = vld [vmem:[%s4212_s25 + $0x94] sm:$0xf] }
 0x13a   : > { %v1755_v57 = vrot.slane %v3776_v24, 5 }
 0x13b   : > { %3561 = vmatmul.msk.bf16.gmra.mxu3 %vm1285_vm5, %v4784_v41  ;;  %5840 = vst [vmem:[#allocation57_spill] sm:$0xff] %v4878_v48  ;;  %v3778_v41 = vld [vmem:[%s4212_s25 + $0x90] sm:$0xf] }
 0x13c   : > { %v3525_v39 = vrot.slane %v3778_v41, 9 }
 0x13d   : > { %v1600_v44 = vpop.f32.mrf.mxu1  ;;  %v2181_v50 = vpop.f32.mrf.mxu0 }
 0x13e   : > { %v2035_v22 = vpop.f32.mrf.mxu3  ;;  %v4869_v21 = vadd.f32 %v1600_v44, %v1380_v56  ;;  %v4871_v2 = vadd.f32 %v2181_v50, %v2105_v47  ;;  %v1758_v56 = vrot.slane %v3777_v61, 5  ;;  %v1756_v24 = vsel %vm4513_vm8, %v3525_v39, %v1755_v57 }
 0x13f   : > { %v2109_v17 = vadd.f32 %v2035_v22, %v1975_v34 }
 0x140   : > { %v1903_v3 = vpop.f32.mrf.mxu2  ;;  %3511 = vmatmul.msk.bf16.gmra.mxu1 %vm1285_vm5, %v4867_v63  ;;  %3576 = vmatmul.msk.bf16.gmra.mxu0 %vm1285_vm5, %v4359_v6 }
 0x141   : > { %v1976_v60 = vadd.f32 %v1903_v3, %v4772_v13  ;;  %v1757_v13 = vrot.slane %v1755_v57, 4 }
 0x143   : > { %v1759_v61 = vsel %vm4513_vm8, %v1757_v13, %v1758_v56  ;;  %v3779_v13 = vld [vmem:[%s4212_s25 + $0xa0] sm:$0xf] }
 0x145   : > { %3541 = vmatmul.msk.bf16.gmra.mxu2 %vm1285_vm5, %v4878_v48  ;;  %v1602_v47 = vpop.f32.mrf.mxu1  ;;  %v2183_v34 = vpop.f32.mrf.mxu0 }
 0x146   : > { %v2037_v44 = vpop.f32.mrf.mxu3  ;;  %v4884_v50 = vadd.f32 %v1602_v47, %v1382_v8  ;;  %v4886_v22 = vadd.f32 %v2183_v34, %v2106_v36  ;;  %v4897_v8 = vld [vmem:[%s4212_s25 + $0xb4] sm:$0xff]  ;;  %v1808_v47 = vunpack.c.l.b16 %v1759_v61 }
 0x147   : > { %v2110_v11 = vadd.f32 %v2037_v44, %v1976_v60  ;;  %5841 = vst [vmem:[#allocation58_spill] sm:$0xff] %v4897_v8  ;;  %v1807_v60 = vunpack.c.l.b16 %v1756_v24 }
 0x148   : > { %v1906_v0 = vpop.f32.mrf.mxu2 }
 0x149   : > { %v1977_v3 = vadd.f32 %v1906_v0, %v4788_v20  ;;  %v4908_v44 = vpack.c.b16 %v1808_v47, %v1807_v60  ;;  %v1762_v0 = vrot.slane %v3779_v13, 5 }
 0x14b   : > { %3562 = vmatmul.msk.bf16.gmra.mxu3 %vm1285_vm5, %v4815_v54  ;;  %v3781_v54 = vld [vmem:[%s4212_s25 + $0x9c] sm:$0xf] }
 0x14c   : > { %v3526_v6 = vrot.slane %v3781_v54, 9 }
 0x14d   : > { %v4899_v36 = vpop.f32.mrf.mxu1  ;;  %v2186_v41 = vpop.f32.mrf.mxu0 }
 0x14e   : > { %v2040_v34 = vpop.f32.mrf.mxu3  ;;  %v4901_v20 = vadd.f32 %v2186_v41, %v2107_v55  ;;  %v1763_v47 = vsel %vm4513_vm8, %v3526_v6, %v1762_v0 }
 0x14f   : > { %v2111_v39 = vadd.f32 %v2040_v34, %v1977_v3  ;;  %v3780_v3 = vld [vmem:[%s4212_s25 + $0xa4] sm:$0x1] }
 0x150   : > { %v1908_v57 = vpop.f32.mrf.mxu2  ;;  %3512 = vmatmul.msk.bf16.gmra.mxu1 %vm1285_vm5, %v4897_v8  ;;  %3577 = vmatmul.msk.bf16.gmra.mxu0 %vm1285_vm5, %v4429_v52  ;;  %v1765_v61 = vrot.slane %v3780_v3, 5  ;;  %v1764_v52 = vrot.slane %v1762_v0, 4  ;;  %v1769_v0 = vrot.slane %v4381_v46, 5 }
 0x151   : > { %v1978_v56 = vadd.f32 %v1908_v57, %v4804_v59 }
 0x152   : > { %v1766_v57 = vsel %vm4513_vm8, %v1764_v52, %v1765_v61 }
 0x153   : > { %v1810_v3 = vunpack.c.l.b16 %v1766_v57 }
 0x155   : > { %3542 = vmatmul.msk.bf16.gmra.mxu2 %vm1285_vm5, %v4908_v44  ;;  %v4913_v55 = vpop.f32.mrf.mxu1  ;;  %v2188_v24 = vpop.f32.mrf.mxu0 }
 0x156   : > { %v2042_v41 = vpop.f32.mrf.mxu3  ;;  %v4916_v34 = vadd.f32 %v2188_v24, %v2108_v5  ;;  %v1809_v24 = vunpack.c.l.b16 %v1763_v47 }
 0x157   : > { %v2112_v48 = vadd.f32 %v2042_v41, %v1978_v56 }
 0x158   : > { %v1911_v59 = vpop.f32.mrf.mxu2  ;;  %v4935_v52 = vpack.c.b16 %v1810_v3, %v1809_v24 }
 0x159   : > { %v1979_v60 = vadd.f32 %v1911_v59, %v4817_v45  ;;  %v5843_v59 = vld [vmem:[#allocation25_spill] sm:$0xff] }
 0x15a   : > { %5842 = vst [vmem:[#allocation59_spill] sm:$0xff] %v4935_v52 }
 0x15b   : > { %3563 = vmatmul.msk.bf16.gmra.mxu3 %vm1285_vm5, %v4841_v16 }
 0x15d   : > { %v4926_v13 = vpop.f32.mrf.mxu1  ;;  %v2191_v5 = vpop.f32.mrf.mxu0 }
 0x15e   : > { %v2045_v54 = vpop.f32.mrf.mxu3  ;;  %v4928_v56 = vadd.f32 %v2191_v5, %v2109_v17  ;;  %v3782_v5 = vld [vmem:[%s4212_s25 + $0xa8] sm:$0xf] }
 0x15f   : > { %v2113_v41 = vadd.f32 %v2045_v54, %v1979_v60  ;;  %v1772_v60 = vrot.slane %v5843_v59, 5  ;;  %v3527_v54 = vrot.slane %v3782_v5, 9 }
 0x160   : > { %v1913_v45 = vpop.f32.mrf.mxu2  ;;  %3578 = vmatmul.msk.bf16.gmra.mxu0 %vm1285_vm5, %v4497_v58  ;;  %3586 = vmatmul.msk.bf16.vlgmr.msra.gmra.mxu1 %vm1285_vm5, %v4559_v12  ;;  %v1771_v12 = vrot.slane %v1769_v0, 4 }
 0x161   : > { %v1980_v6 = vadd.f32 %v1913_v45, %v4830_v49  ;;  %v1770_v46 = vsel %vm4513_vm8, %v3527_v54, %v1769_v0  ;;  %v5845_v54 = vld [vmem:[#allocation29_spill] sm:$0xff] }
 0x162   : > { %v1773_v3 = vsel %vm4513_vm8, %v1771_v12, %v1772_v60  ;;  %v1776_v12 = vrot.slane %v5845_v54, 5 }
 0x163   : > { %v1812_v59 = vunpack.c.l.b16 %v1773_v3 }
 0x165   : > { %3543 = vmatmul.msk.bf16.gmra.mxu2 %vm1285_vm5, %v4935_v52  ;;  %v4940_v61 = vpop.f32.mrf.mxu1  ;;  %v2193_v17 = vpop.f32.mrf.mxu0 }
 0x166   : > { %v2047_v47 = vpop.f32.mrf.mxu3  ;;  %v4943_v57 = vadd.f32 %v2193_v17, %v2110_v11  ;;  %v1811_v17 = vunpack.c.l.b16 %v1770_v46 }
 0x167   : > { %v2114_v16 = vadd.f32 %v2047_v47, %v1980_v6 }
 0x168   : > { %v1916_v49 = vpop.f32.mrf.mxu2  ;;  %v4962_v60 = vpack.c.b16 %v1812_v59, %v1811_v17 }
 0x169   : > { %v1981_v24 = vadd.f32 %v1916_v49, %v4843_v40  ;;  %v5844_v40 = vld [vmem:[#allocation22_spill] sm:$0xff] }
 0x16b   : > { %3564 = vmatmul.msk.bf16.gmra.mxu3 %vm1285_vm5, %v4867_v63 }
 0x16d   : > { %v4953_v45 = vpop.f32.mrf.mxu1  ;;  %v2196_v11 = vpop.f32.mrf.mxu0 }
 0x16e   : > { %v2050_v5 = vpop.f32.mrf.mxu3  ;;  %v4955_v58 = vadd.f32 %v2196_v11, %v2111_v39 }
 0x16f   : > { %v2115_v6 = vadd.f32 %v2050_v5, %v1981_v24  ;;  %v5846_v24 = vld [vmem:[#allocation30_spill] sm:$0xff]  ;;  %v5847_v5 = vld [vmem:[#allocation27_spill] sm:$0xff] }
 0x170   : > { %v1918_v47 = vpop.f32.mrf.mxu2  ;;  %3579 = vmatmul.msk.bf16.gmra.mxu0 %vm1285_vm5, %v5844_v40  ;;  %3587 = vmatmul.msk.bf16.gmra.mxu1 %vm1285_vm5, %v4580_v4  ;;  %v1779_v46 = vrot.slane %v5846_v24, 5  ;;  %v3528_v63 = vrot.slane %v5847_v5, 9  ;;  %v1778_v40 = vrot.slane %v1776_v12, 4 }
 0x171   : > { %v1982_v0 = vadd.f32 %v1918_v47, %v4856_v18 }
 0x172   : > { %v1777_v59 = vsel %vm4513_vm8, %v3528_v63, %v1776_v12  ;;  %v1780_v47 = vsel %vm4513_vm8, %v1778_v40, %v1779_v46 }
 0x173   : > { %v1814_v24 = vunpack.c.l.b16 %v1780_v47 }
 0x175   : > { %3544 = vmatmul.msk.bf16.gmra.mxu2 %vm1285_vm5, %v4962_v60  ;;  %v4967_v49 = vpop.f32.mrf.mxu1  ;;  %v2198_v39 = vpop.f32.mrf.mxu0 }
 0x176   : > { %v2052_v3 = vpop.f32.mrf.mxu3  ;;  %v4970_v11 = vadd.f32 %v2198_v39, %v2112_v48  ;;  %v1813_v39 = vunpack.c.l.b16 %v1777_v59 }
 0x177   : > { %v2116_v52 = vadd.f32 %v2052_v3, %v1982_v0 }
 0x178   : > { %v1921_v18 = vpop.f32.mrf.mxu2  ;;  %v4989_v40 = vpack.c.b16 %v1814_v24, %v1813_v39 }
 0x179   : > { %v1983_v17 = vadd.f32 %v1921_v18, %v4869_v21  ;;  %v5849_v18 = vld [vmem:[#allocation24_spill] sm:$0xff] }
 0x17a   : > { %5850 = vst [vmem:[#allocation29_spill] sm:$0xff] %v4989_v40 }
 0x17b   : > { %3565 = vmatmul.msk.bf16.gmra.mxu3 %vm1285_vm5, %v4897_v8 }
 0x17d   : > { %v4980_v54 = vpop.f32.mrf.mxu1  ;;  %v2201_v48 = vpop.f32.mrf.mxu0 }
 0x17e   : > { %v2055_v5 = vpop.f32.mrf.mxu3  ;;  %v4982_v0 = vadd.f32 %v2201_v48, %v2113_v41  ;;  %v5000_v48 = vld [vmem:[%s4212_s25 + $0xc0] sm:$0xff] }
 0x17f   : > { %v2117_v3 = vadd.f32 %v2055_v5, %v1983_v17  ;;  %v1606_v17 = vadd.f32 %v4899_v36, %v4675_v9  ;;  %5852 = vst [vmem:[#allocation27_spill] sm:$0xff] %v5000_v48 }
 0x180   : > { %5848 = vst [vmem:[#allocation25_spill] sm:$0xff] %v4982_v0  ;;  %v1923_v21 = vpop.f32.mrf.mxu2  ;;  %3580 = vmatmul.msk.bf16.gmra.mxu0 %vm1285_vm5, %v5849_v18  ;;  %3588 = vmatmul.msk.bf16.gmra.mxu1 %vm1285_vm5, %v4626_v27 }
 0x181   : > { %v1984_v63 = vadd.f32 %v1923_v21, %v4884_v50 }
 0x185   : > { %3545 = vmatmul.msk.bf16.gmra.mxu2 %vm1285_vm5, %v4989_v40  ;;  %v4993_v12 = vpop.f32.mrf.mxu1  ;;  %v2203_v46 = vpop.f32.mrf.mxu0 }
 0x186   : > { %v2057_v41 = vpop.f32.mrf.mxu3  ;;  %v4995_v59 = vadd.f32 %v2203_v46, %v2114_v16  ;;  %v1608_v16 = vadd.f32 %v4913_v55, %v4683_v30 }
 0x187   : > { %v2118_v47 = vadd.f32 %v2057_v41, %v1984_v63  ;;  %v5854_v63 = vld [vmem:[#allocation28_spill] sm:$0xff]  ;;  %v5017_v41 = vld [vmem:[%s4212_s25 + $0xc0] sm:$0xf] }
 0x188   : > { %5851 = vst [vmem:[#allocation30_spill] sm:$0xff] %v4995_v59  ;;  %v1926_v50 = vpop.f32.mrf.mxu2 }
 0x189   : > { %v1985_v39 = vadd.f32 %v1926_v50, %v1606_v17  ;;  %5855 = vst [vmem:[#allocation61_spill] sm:$0xff] %v5017_v41  ;;  %v5020_v17 = vld [vmem:[%s4212_s25 + $0xc4] sm:$0xf]  ;;  %v2141_v50 = vshll.u32 %v5017_v41, 16 }
 0x18a   : > { %5856 = vst [vmem:[#allocation62_spill] sm:$0xff] %v5020_v17 }
 0x18b   : > { %3566 = vmatmul.msk.bf16.gmra.mxu3 %vm1285_vm5, %v5000_v48  ;;  %v2143_v8 = vrot.slane %v2141_v50, 5 }
 0x18d   : > { %v5004_v24 = vpop.f32.mrf.mxu1  ;;  %v2206_v5 = vpop.f32.mrf.mxu0 }
 0x18e   : > { %v2060_v21 = vpop.f32.mrf.mxu3  ;;  %v5006_v0 = vadd.f32 %v2206_v5, %v2115_v6  ;;  %v2138_v6 = vshrl.u32 %v5017_v41, 16  ;;  %v2151_v5 = vshrl.u32 %v5020_v17, 16 }
 0x18f   : > { %v5010_v9 = vadd.f32 %v2060_v21, %v1985_v39  ;;  %v2147_v39 = vshll.u32 %v5020_v17, 16  ;;  %v2157_v17 = vshll.u32 %v5035_v15, 16 }
 0x190   : > { %5853 = vst [vmem:[#allocation60_spill] sm:$0xff] %v5006_v0  ;;  %v1928_v36 = vpop.f32.mrf.mxu2  ;;  %3581 = vmatmul.msk.bf16.gmra.mxu0 %vm1285_vm5, %v5854_v63  ;;  %3589 = vmatmul.msk.bf16.gmra.mxu1 %vm1285_vm5, %v4648_v26  ;;  %v2140_v0 = vrot.slane %v2138_v6, 4  ;;  %v2153_v18 = vrot.slane %v2151_v5, 4  ;;  %v1616_v5 = vadd.f32 %v4953_v45, %v4711_v31 }
 0x191   : > { %v1986_v46 = vadd.f32 %v1928_v36, %v1608_v16  ;;  %v1611_v36 = vadd.f32 %v4926_v13, %v4685_v38  ;;  %v2149_v63 = vrot.slane %v2147_v39, 5 }
 0x195   : > { %3607 = vmatmul.msk.bf16.vlgmr.msra.gmra.mxu2 %vm1285_vm5, %v4481_v43  ;;  %v5025_v30 = vpop.f32.mrf.mxu1  ;;  %v2208_v55 = vpop.f32.mrf.mxu0 }
 0x196   : > { %v2062_v21 = vpop.f32.mrf.mxu3  ;;  %v5030_v16 = vadd.f32 %v2208_v55, %v2116_v52  ;;  %v2144_v52 = vor.u32 %v2143_v8, %v2140_v0  ;;  %v2154_v55 = vor.u32 %v2153_v18, %v2149_v63  ;;  %v2159_v0 = vrot.slane %v2157_v17, 5 }
 0x197   : > { %v2120_v59 = vadd.f32 %v2062_v21, %v1986_v46 }
 0x198   : > { %v1931_v48 = vpop.f32.mrf.mxu2  ;;  %v2145_v50 = vrot.slane %v2144_v52, 4  ;;  %v2155_v8 = vrot.slane %v2154_v55, 4 }
 0x199   : > { %v1987_v43 = vadd.f32 %v1931_v48, %v1611_v36  ;;  %v1613_v48 = vadd.f32 %v4940_v61, %v4696_v33 }
 0x19a   : > { %v2150_v33 = vsel %vm4245_vm4, %v2145_v50, %v2149_v63  ;;  %v2160_v61 = vsel %vm4245_vm4, %v2155_v8, %v2159_v0  ;;  %v3029_v63 = vld [vmem:[%s5857_s6 + $0x78] sm:$0xff] }
 0x19b   : > { %3624 = vmatmul.msk.bf16.vlgmr.msra.gmra.mxu3 %vm1285_vm5, %v4396_v1  ;;  %v2163_v36 = vunpack.c.l.b16 %v2150_v33  ;;  %3052 = vmatpush.msrb.mxu2 %v3029_v63 }
 0x19d   : > { %v5039_v41 = vpop.f32.mrf.mxu1  ;;  %v2211_v40 = vpop.f32.mrf.mxu0 }
 0x19e   : > { %v2065_v38 = vpop.f32.mrf.mxu3  ;;  %v5042_v13 = vadd.f32 %v2211_v40, %v2117_v3 }
 0x19f   : > { %v2121_v46 = vadd.f32 %v2065_v38, %v1987_v43  ;;  %v2164_v43 = vunpack.c.l.b16 %v2160_v61  ;;  %v3028_v61 = vld [vmem:[%s5857_s6 + $0x70] sm:$0xff] }
 0x1a0   : > { %v1933_v6 = vpop.f32.mrf.mxu2  ;;  %3582 = vmatmul.msk.bf16.gmra.mxu0 %vm1285_vm5, %v4526_v25  ;;  %3590 = vmatmul.msk.bf16.gmra.mxu1 %vm1285_vm5, %v4668_v42 }
 0x1a1   : > { %v1988_v1 = vadd.f32 %v1933_v6, %v1613_v48  ;;  %v5070_v52 = vpack.c.b16 %v2164_v43, %v2163_v36  ;;  %3053 = vmatpush.msrb.mxu2 %v3028_v61  ;;  %v5858_v36 = vld [vmem:[#allocation46_spill] sm:$0xff] }
 0x1a5   : > { %3608 = vmatmul.msk.bf16.gmra.mxu2 %vm1285_vm5, %v4546_v19  ;;  %v5052_v3 = vpop.f32.mrf.mxu1  ;;  %v2213_v18 = vpop.f32.mrf.mxu0 }
 0x1a6   : > { %v2067_v40 = vpop.f32.mrf.mxu3  ;;  %v5058_v39 = vadd.f32 %v2213_v18, %v2118_v47  ;;  %v3045_v47 = vld [vmem:[%s5857_s6 + $0xf8] sm:$0xff] }
 0x1a7   : > { %v2122_v21 = vadd.f32 %v2067_v40, %v1988_v1  ;;  %3072 = vmatpush.msrb.mxu3 %v3045_v47 }
 0x1a8   : > { %v1936_v17 = vpop.f32.mrf.mxu2 }
 0x1a9   : > { %v1989_v19 = vadd.f32 %v1936_v17, %v1616_v5  ;;  %v1623_v5 = vadd.f32 %v4993_v12, %v4758_v29 }
 0x1ab   : > { %3625 = vmatmul.msk.bf16.gmra.mxu3 %vm1285_vm5, %v4476_v35  ;;  %v1618_v35 = vadd.f32 %v4967_v49, %v4726_v10  ;;  %v1621_v10 = vadd.f32 %v4980_v54, %v4743_v51 }
 0x1ad   : > { %v5072_v31 = vpop.f32.mrf.mxu1  ;;  %v2216_v45 = vpop.f32.mrf.mxu0 }
 0x1ae   : > { %v2070_v55 = vpop.f32.mrf.mxu3  ;;  %v5075_v38 = vadd.f32 %v2216_v45, %v5010_v9 }
 0x1af   : > { %v2123_v48 = vadd.f32 %v2070_v55, %v1989_v19  ;;  %v5859_v19 = vld [vmem:[#allocation35_spill] sm:$0xff]  ;;  %v5860_v55 = vld [vmem:[#allocation48_spill] sm:$0xff] }
 0x1b0   : > { %v1938_v6 = vpop.f32.mrf.mxu2  ;;  %3583 = vmatmul.msk.bf16.gmra.mxu0 %vm1285_vm5, %v5070_v52  ;;  %3591 = vmatmul.msk.bf16.gmra.mxu1 %vm1285_vm5, %v4732_v7  ;;  %v1626_v29 = vadd.f32 %v5004_v24, %v5860_v55 }
 0x1b1   : > { %v1990_v1 = vadd.f32 %v1938_v6, %v1618_v35 }
 0x1b5   : > { %3609 = vmatmul.msk.bf16.gmra.mxu2 %vm1285_vm5, %v4599_v53  ;;  %v5085_v50 = vpop.f32.mrf.mxu1  ;;  %v2218_v8 = vpop.f32.mrf.mxu0  ;;  %v3044_v53 = vld [vmem:[%s5857_s6 + $0xf0] sm:$0xff] }
 0x1b6   : > { %v2072_v9 = vpop.f32.mrf.mxu3  ;;  %v5087_v0 = vadd.f32 %v2218_v8, %v2120_v59  ;;  %3073 = vmatpush.msrb.mxu3 %v3044_v53  ;;  %v3043_v8 = vld [vmem:[%s5857_s6 + $0xe8] sm:$0xff] }
 0x1b7   : > { %v2124_v49 = vadd.f32 %v2072_v9, %v1990_v1  ;;  %v5861_v1 = vld [vmem:[#allocation33_spill] sm:$0xff] }
 0x1b8   : > { %v1941_v18 = vpop.f32.mrf.mxu2  ;;  %3074 = vmatpush.msrb.mxu3 %v3043_v8 }
 0x1b9   : > { %v1991_v33 = vadd.f32 %v1941_v18, %v1621_v10  ;;  %v5862_v18 = vld [vmem:[#allocation51_spill] sm:$0xff] }
 0x1bb   : > { %3626 = vmatmul.msk.bf16.gmra.mxu3 %vm1285_vm5, %v4543_v62 }
 0x1bd   : > { %v5099_v59 = vpop.f32.mrf.mxu1  ;;  %v2221_v40 = vpop.f32.mrf.mxu0 }
 0x1be   : > { %v2075_v51 = vpop.f32.mrf.mxu3  ;;  %v5101_v54 = vadd.f32 %v2221_v40, %v2121_v46  ;;  %v5863_v40 = vld [vmem:[#allocation52_spill] sm:$0xff] }
 0x1bf   : > { %v2125_v62 = vadd.f32 %v2075_v51, %v1991_v33  ;;  %v1628_v33 = vadd.f32 %v5025_v30, %v5862_v18 }
 0x1c0   : > { %v1943_v17 = vpop.f32.mrf.mxu2  ;;  %3592 = vmatmul.msk.bf16.gmra.mxu1 %vm1285_vm5, %v5858_v36  ;;  %3642 = vmatmul.msk.bf16.vlgmr.msra.gmra.mxu0 %vm1285_vm5, %v4580_v4  ;;  %v3027_v4 = vld [vmem:[%s5857_s6 + $0x68] sm:$0xff] }
 0x1c1   : > { %v1992_v43 = vadd.f32 %v1943_v17, %v1623_v5  ;;  %3054 = vmatpush.msrb.mxu2 %v3027_v4  ;;  %v5864_v5 = vld [vmem:[#allocation36_spill] sm:$0xff] }
 0x1c5   : > { %3610 = vmatmul.msk.bf16.gmra.mxu2 %vm1285_vm5, %v5859_v19  ;;  %v5111_v63 = vpop.f32.mrf.mxu1  ;;  %v2223_v47 = vpop.f32.mrf.mxu0 }
 0x1c6   : > { %v2077_v46 = vpop.f32.mrf.mxu3  ;;  %v5113_v45 = vadd.f32 %v2223_v47, %v2122_v21  ;;  %v5865_v47 = vld [vmem:[#allocation39_spill] sm:$0xff] }
 0x1c7   : > { %v2126_v12 = vadd.f32 %v2077_v46, %v1992_v43  ;;  %v1631_v30 = vadd.f32 %v5039_v41, %v5865_v47 }
 0x1c8   : > { %v1946_v35 = vpop.f32.mrf.mxu2 }
 0x1c9   : > { %v1993_v6 = vadd.f32 %v1946_v35, %v1626_v29  ;;  %v5866_v35 = vld [vmem:[#allocation34_spill] sm:$0xff] }
 0x1cb   : > { %3627 = vmatmul.msk.bf16.gmra.mxu3 %vm1285_vm5, %v5861_v1 }
 0x1cd   : > { %v5125_v21 = vpop.f32.mrf.mxu1  ;;  %v2226_v9 = vpop.f32.mrf.mxu0 }
 0x1ce   : > { %v2080_v24 = vpop.f32.mrf.mxu3  ;;  %v5127_v10 = vadd.f32 %v2226_v9, %v2123_v48  ;;  %v5867_v9 = vld [vmem:[#allocation40_spill] sm:$0xff] }
 0x1cf   : > { %v2127_v61 = vadd.f32 %v2080_v24, %v1993_v6  ;;  %v3042_v6 = vld [vmem:[%s5857_s6 + $0xe0] sm:$0xff]  ;;  %v1633_v24 = vadd.f32 %v5052_v3, %v5867_v9 }
 0x1d0   : > { %v1948_v53 = vpop.f32.mrf.mxu2  ;;  %3593 = vmatmul.msk.bf16.gmra.mxu1 %vm1285_vm5, %v5863_v40  ;;  %3643 = vmatmul.msk.bf16.gmra.mxu0 %vm1285_vm5, %v4626_v27  ;;  %v3026_v27 = vld [vmem:[%s5857_s6 + $0x60] sm:$0xff] }
 0x1d1   : > { %v1994_v51 = vadd.f32 %v1948_v53, %v1628_v33  ;;  %3055 = vmatpush.msrb.mxu2 %v3026_v27  ;;  %3075 = vmatpush.msrb.mxu3 %v3042_v6  ;;  %v5869_v3 = vld [vmem:[#allocation42_spill] sm:$0xff] }
 0x1d2   : > { %v1636_v47 = vadd.f32 %v5072_v31, %v5869_v3 }
 0x1d5   : > { %3611 = vmatmul.msk.bf16.gmra.mxu2 %vm1285_vm5, %v5864_v5  ;;  %v5137_v17 = vpop.f32.mrf.mxu1  ;;  %v2228_v43 = vpop.f32.mrf.mxu0 }
 0x1d6   : > { %v2082_v48 = vpop.f32.mrf.mxu3  ;;  %v5139_v19 = vadd.f32 %v2228_v43, %v2124_v49 }
 0x1d7   : > { %v2128_v46 = vadd.f32 %v2082_v48, %v1994_v51  ;;  %v5868_v51 = vld [vmem:[#allocation37_spill] sm:$0xff] }
 0x1d8   : > { %v1951_v55 = vpop.f32.mrf.mxu2 }
 0x1d9   : > { %v1995_v29 = vadd.f32 %v1951_v55, %v1631_v30 }
 0x1db   : > { %3628 = vmatmul.msk.bf16.gmra.mxu3 %vm1285_vm5, %v5866_v35 }
 0x1dd   : > { %v2231_v49 = vpop.f32.mrf.mxu0  ;;  %v2321_v1 = vpop.f32.mrf.mxu1 }
 0x1de   : > { %v2085_v4 = vpop.f32.mrf.mxu3  ;;  %v5151_v41 = vadd.f32 %v2231_v49, %v2125_v62  ;;  %v5154_v8 = vadd.f32 %v2321_v1, %v4871_v2  ;;  %v5870_v49 = vld [vmem:[#allocation43_spill] sm:$0xff] }
 0x1df   : > { %v2129_v18 = vadd.f32 %v2085_v4, %v1995_v29 }
 0x1e0   : > { %v1953_v33 = vpop.f32.mrf.mxu2  ;;  %3594 = vmatmul.msk.bf16.gmra.mxu1 %vm1285_vm5, %v4824_v23  ;;  %3644 = vmatmul.msk.bf16.gmra.mxu0 %vm1285_vm5, %v4648_v26  ;;  %v3025_v26 = vld [vmem:[%s5857_s6 + $0x58] sm:$0xff] }
 0x1e1   : > { %v1996_v53 = vadd.f32 %v1953_v33, %v1633_v24  ;;  %3056 = vmatpush.msrb.mxu2 %v3025_v26  ;;  %v5871_v24 = vld [vmem:[#allocation38_spill] sm:$0xff]  ;;  %v5873_v26 = vld [vmem:[#allocation47_spill] sm:$0xff] }
 0x1e5   : > { %3612 = vmatmul.msk.bf16.gmra.mxu2 %vm1285_vm5, %v5868_v51  ;;  %v2233_v62 = vpop.f32.mrf.mxu0  ;;  %v2323_v5 = vpop.f32.mrf.mxu1 }
 0x1e6   : > { %v2087_v43 = vpop.f32.mrf.mxu3  ;;  %v5164_v2 = vadd.f32 %v2233_v62, %v2126_v12  ;;  %v5167_v48 = vadd.f32 %v2323_v5, %v4886_v22  ;;  %v3041_v12 = vld [vmem:[%s5857_s6 + $0xd8] sm:$0xff] }
 0x1e7   : > { %v2130_v30 = vadd.f32 %v2087_v43, %v1996_v53  ;;  %3076 = vmatpush.msrb.mxu3 %v3041_v12 }
 0x1e8   : > { %v1956_v55 = vpop.f32.mrf.mxu2 }
 0x1e9   : > { %v1997_v29 = vadd.f32 %v1956_v55, %v1636_v47 }
 0x1eb   : > { %3629 = vmatmul.msk.bf16.gmra.mxu3 %vm1285_vm5, %v4270_v14  ;;  %v1638_v14 = vadd.f32 %v5085_v50, %v5870_v49  ;;  %v5872_v50 = vld [vmem:[#allocation45_spill] sm:$0xff] }
 0x1ec   : > { %v1641_v62 = vadd.f32 %v5099_v59, %v5872_v50  ;;  %v5875_v49 = vld [vmem:[#allocation41_spill] sm:$0xff]  ;;  %v5877_v50 = vld [vmem:[#allocation23_spill] sm:$0xff] }
 0x1ed   : > { %v2236_v22 = vpop.f32.mrf.mxu0  ;;  %v2326_v35 = vpop.f32.mrf.mxu1 }
 0x1ee   : > { %v2090_v27 = vpop.f32.mrf.mxu3  ;;  %v5179_v31 = vadd.f32 %v2236_v22, %v2127_v61  ;;  %v5182_v6 = vadd.f32 %v2326_v35, %v4901_v20  ;;  %v5874_v35 = vld [vmem:[#allocation57_spill] sm:$0xff] }
 0x1ef   : > { %v2131_v1 = vadd.f32 %v2090_v27, %v1997_v29 }
 0x1f0   : > { %v1958_v4 = vpop.f32.mrf.mxu2  ;;  %3595 = vmatmul.msk.bf16.gmra.mxu1 %vm1285_vm5, %v4850_v32  ;;  %3645 = vmatmul.msk.bf16.gmra.mxu0 %vm1285_vm5, %v4668_v42  ;;  %v3024_v42 = vld [vmem:[%s5857_s6 + $0x50] sm:$0xff] }
 0x1f1   : > { %v1998_v9 = vadd.f32 %v1958_v4, %v1638_v14  ;;  %3057 = vmatpush.msrb.mxu2 %v3024_v42  ;;  %v5878_v42 = vld [vmem:[#allocation53_spill] sm:$0xff] }
 0x1f5   : > { %3613 = vmatmul.msk.bf16.gmra.mxu2 %vm1285_vm5, %v5871_v24  ;;  %v2238_v61 = vpop.f32.mrf.mxu0  ;;  %v2328_v33 = vpop.f32.mrf.mxu1 }
 0x1f6   : > { %v2092_v53 = vpop.f32.mrf.mxu3  ;;  %v5192_v20 = vadd.f32 %v2238_v61, %v2128_v46  ;;  %v5195_v51 = vadd.f32 %v2328_v33, %v4916_v34  ;;  %v3040_v46 = vld [vmem:[%s5857_s6 + $0xd0] sm:$0xff] }
 0x1f7   : > { %v2132_v5 = vadd.f32 %v2092_v53, %v1998_v9  ;;  %3077 = vmatpush.msrb.mxu3 %v3040_v46  ;;  %v1648_v46 = vadd.f32 %v5137_v17, %v5878_v42 }
 0x1f8   : > { %v1961_v43 = vpop.f32.mrf.mxu2 }
 0x1f9   : > { %v1999_v3 = vadd.f32 %v1961_v43, %v1641_v62 }
 0x1fb   : > { %3630 = vmatmul.msk.bf16.gmra.mxu3 %vm1285_vm5, %v4295_v37  ;;  %v1643_v37 = vadd.f32 %v5111_v63, %v5873_v26  ;;  %v5876_v63 = vld [vmem:[#allocation50_spill] sm:$0xff]  ;;  %v5879_v26 = vld [vmem:[#allocation44_spill] sm:$0xff] }
 0x1fc   : > { %v1646_v24 = vadd.f32 %v5125_v21, %v5876_v63 }
 0x1fd   : > { %v2241_v34 = vpop.f32.mrf.mxu0  ;;  %v2331_v47 = vpop.f32.mrf.mxu1 }
 0x1fe   : > { %v2095_v55 = vpop.f32.mrf.mxu3  ;;  %v5207_v59 = vadd.f32 %v2241_v34, %v2129_v18  ;;  %v5210_v29 = vadd.f32 %v2331_v47, %v4928_v56 }
 0x1ff   : > { %v2133_v12 = vadd.f32 %v2095_v55, %v1999_v3 }
 0x200   : > { %v1963_v22 = vpop.f32.mrf.mxu2  ;;  %3596 = vmatmul.msk.bf16.gmra.mxu1 %vm1285_vm5, %v5874_v35  ;;  %3646 = vmatmul.msk.bf16.gmra.mxu0 %vm1285_vm5, %v4732_v7  ;;  %v3023_v7 = vld [vmem:[%s5857_s6 + $0x48] sm:$0xff] }
 0x201   : > { %v2000_v27 = vadd.f32 %v1963_v22, %v1643_v37  ;;  %3058 = vmatpush.msrb.mxu2 %v3023_v7  ;;  %v5882_v7 = vld [vmem:[#allocation49_spill] sm:$0xff] }
 0x205   : > { %3614 = vmatmul.msk.bf16.gmra.mxu2 %vm1285_vm5, %v5875_v49  ;;  %v2243_v18 = vpop.f32.mrf.mxu0  ;;  %v2333_v14 = vpop.f32.mrf.mxu1 }
 0x206   : > { %v2097_v4 = vpop.f32.mrf.mxu3  ;;  %v5220_v56 = vadd.f32 %v2243_v18, %v2130_v30  ;;  %v5223_v9 = vadd.f32 %v2333_v14, %v4943_v57  ;;  %v3039_v30 = vld [vmem:[%s5857_s6 + $0xc8] sm:$0xff] }
 0x207   : > { %v2134_v61 = vadd.f32 %v2097_v4, %v2000_v27  ;;  %3078 = vmatpush.msrb.mxu3 %v3039_v30  ;;  %v5880_v14 = vld [vmem:[#allocation26_spill] sm:$0xff] }
 0x208   : > { %v1966_v33 = vpop.f32.mrf.mxu2  ;;  %v3038_v4 = vld [vmem:[%s5857_s6 + $0xc0] sm:$0xff] }
 0x209   : > { %v2001_v53 = vadd.f32 %v1966_v33, %v1646_v24  ;;  %3079 = vmatpush.msrb.mxu3 %v3038_v4 }
 0x20b   : > { %3631 = vmatmul.msk.bf16.gmra.mxu3 %vm1285_vm5, %v5877_v50 }
 0x20d   : > { %v2246_v57 = vpop.f32.mrf.mxu0  ;;  %v2336_v62 = vpop.f32.mrf.mxu1 }
 0x20e   : > { %v2100_v43 = vpop.f32.mrf.mxu3  ;;  %v5235_v21 = vadd.f32 %v2246_v57, %v2131_v1  ;;  %v5238_v3 = vadd.f32 %v2336_v62, %v4955_v58 }
 0x20f   : > { %v2135_v34 = vadd.f32 %v2100_v43, %v2001_v53  ;;  %v5881_v53 = vld [vmem:[#allocation59_spill] sm:$0xff] }
 0x210   : > { %v1968_v47 = vpop.f32.mrf.mxu2  ;;  %3597 = vmatmul.msk.bf16.gmra.mxu1 %vm1285_vm5, %v4908_v44  ;;  %3647 = vmatmul.msk.bf16.gmra.mxu0 %vm1285_vm5, %v5858_v36  ;;  %v3022_v36 = vld [vmem:[%s5857_s6 + $0x40] sm:$0xff] }
 0x211   : > { %v2002_v55 = vadd.f32 %v1968_v47, %v1648_v46  ;;  %3059 = vmatpush.msrb.mxu2 %v3022_v36  ;;  %v5883_v47 = vld [vmem:[#allocation31_spill] sm:$0xff] }
 0x215   : > { %3615 = vmatmul.msk.bf16.gmra.mxu2 %vm1285_vm5, %v5879_v26  ;;  %v2248_v1 = vpop.f32.mrf.mxu0  ;;  %v2338_v37 = vpop.f32.mrf.mxu1 }
 0x216   : > { %v2102_v22 = vpop.f32.mrf.mxu3  ;;  %v5248_v58 = vadd.f32 %v2248_v1, %v2132_v5  ;;  %v5251_v27 = vadd.f32 %v2338_v37, %v4970_v11 }
 0x217   : > { %v2136_v17 = vadd.f32 %v2102_v22, %v2002_v55 }
 0x218   : > { %v2455_v49 = vpop.f32.mrf.mxu2 }
 0x219   : > { %v2535_v18 = vadd.f32 %v2455_v49, %v5154_v8  ;;  %v2991_v49 = vld [vmem:[%s5884_s3 + $0x78] sm:$0xff] }
 0x21a   : > { %2993 = vmatpush.msrb.mxu1 %v2991_v49  ;;  %v2299_v49 = vrot.slane %v5035_v15, 5 }
 0x21b   : > { %3632 = vmatmul.msk.bf16.gmra.mxu3 %vm1285_vm5, %v5880_v14 }
 0x21d   : > { %v2251_v5 = vpop.f32.mrf.mxu0  ;;  %v5262_v11 = vpop.f32.mrf.mxu1 }
 0x21e   : > { %v2611_v63 = vpop.f32.mrf.mxu3  ;;  %v5264_v24 = vadd.f32 %v2251_v5, %v2133_v12 }
 0x21f   : > { %v2691_v8 = vadd.f32 %v2611_v63, %v2535_v18  ;;  %v5885_v18 = vld [vmem:[#allocation54_spill] sm:$0xff] }
 0x220   : > { %v2457_v33 = vpop.f32.mrf.mxu2  ;;  %3598 = vmatmul.msk.bf16.gmra.mxu1 %vm1285_vm5, %v5881_v53  ;;  %3648 = vmatmul.msk.bf16.gmra.mxu0 %vm1285_vm5, %v5863_v40  ;;  %v3021_v40 = vld [vmem:[%s5857_s6 + $0x38] sm:$0xff] }
 0x221   : > { %v2536_v50 = vadd.f32 %v2457_v33, %v5167_v48  ;;  %v3037_v48 = vld [vmem:[%s5857_s6 + $0xb8] sm:$0xff]  ;;  %3060 = vmatpush.msrb.mxu2 %v3021_v40  ;;  %v5886_v33 = vld [vmem:[#allocation22_spill] sm:$0xff] }
 0x222   : > { %3080 = vmatpush.msrb.mxu3 %v3037_v48  ;;  %v5888_v48 = vld [vmem:[#allocation29_spill] sm:$0xff] }
 0x225   : > { %3616 = vmatmul.msk.bf16.gmra.mxu2 %vm1285_vm5, %v5882_v7  ;;  %v2253_v30 = vpop.f32.mrf.mxu0  ;;  %v5273_v57 = vpop.f32.mrf.mxu1 }
 0x226   : > { %v2613_v62 = vpop.f32.mrf.mxu3  ;;  %v5275_v43 = vadd.f32 %v2253_v30, %v2134_v61  ;;  %v5887_v30 = vld [vmem:[#allocation62_spill] sm:$0xff] }
 0x227   : > { %v2692_v12 = vadd.f32 %v2613_v62, %v2536_v50  ;;  %v3020_v50 = vld [vmem:[%s5857_s6 + $0x30] sm:$0xff]  ;;  %v2296_v62 = vrot.slane %v5887_v30, 5 }
 0x228   : > { %v2460_v42 = vpop.f32.mrf.mxu2  ;;  %3061 = vmatpush.msrb.mxu2 %v3020_v50 }
 0x229   : > { %v2537_v46 = vadd.f32 %v2460_v42, %v5182_v6 }
 0x22b   : > { %3633 = vmatmul.msk.bf16.gmra.mxu3 %vm1285_vm5, %v5883_v47 }
 0x22d   : > { %v2256_v55 = vpop.f32.mrf.mxu0  ;;  %v5286_v61 = vpop.f32.mrf.mxu1 }
 0x22e   : > { %v2616_v26 = vpop.f32.mrf.mxu3  ;;  %v5288_v1 = vadd.f32 %v2256_v55, %v2135_v34 }
 0x22f   : > { %v5290_v6 = vadd.f32 %v2616_v26, %v2537_v46  ;;  %v5889_v26 = vld [vmem:[#allocation61_spill] sm:$0xff] }
 0x230   : > { %v2462_v37 = vpop.f32.mrf.mxu2  ;;  %3599 = vmatmul.msk.bf16.gmra.mxu1 %vm1285_vm5, %v4962_v60  ;;  %3649 = vmatmul.msk.bf16.gmra.mxu0 %vm1285_vm5, %v4824_v23 }
 0x231   : > { %v2538_v22 = vadd.f32 %v2462_v37, %v5195_v51  ;;  %v3584_v37 = vrot.slane %v5889_v26, 9  ;;  %v5893_v26 = vld [vmem:[#allocation24_spill] sm:$0xff] }
 0x235   : > { %3617 = vmatmul.msk.bf16.gmra.mxu2 %vm1285_vm5, %v5885_v18  ;;  %v2258_v34 = vpop.f32.mrf.mxu0  ;;  %v2348_v14 = vpop.f32.mrf.mxu1  ;;  %v5891_v18 = vld [vmem:[#allocation55_spill] sm:$0xff] }
 0x236   : > { %v2618_v36 = vpop.f32.mrf.mxu3  ;;  %v5302_v4 = vadd.f32 %v2258_v34, %v2136_v17  ;;  %v5305_v5 = vadd.f32 %v2348_v14, %v5030_v16  ;;  %v3036_v17 = vld [vmem:[%s5857_s6 + $0xb0] sm:$0xff]  ;;  %v2297_v14 = vsel %vm4513_vm8, %v3584_v37, %v2296_v62 }
 0x237   : > { %v5307_v63 = vadd.f32 %v2618_v36, %v2538_v22  ;;  %3081 = vmatpush.msrb.mxu3 %v3036_v17  ;;  %v2298_v22 = vrot.slane %v2296_v62, 4 }
 0x238   : > { %v2465_v23 = vpop.f32.mrf.mxu2 }
 0x239   : > { %v2539_v51 = vadd.f32 %v2465_v23, %v5210_v29  ;;  %v2300_v15 = vsel %vm4513_vm8, %v2298_v22, %v2299_v49 }
 0x23a   : > { %v2304_v30 = vunpack.c.l.b16 %v2300_v15  ;;  %v2989_v15 = vld [vmem:[%s5884_s3 + $0x68] sm:$0xff] }
 0x23b   : > { %3634 = vmatmul.msk.bf16.gmra.mxu3 %vm1285_vm5, %v5886_v33 }
 0x23d   : > { %v2351_v16 = vpop.f32.mrf.mxu1  ;;  %v2751_v7 = vpop.f32.mrf.mxu0 }
 0x23e   : > { %v2621_v42 = vpop.f32.mrf.mxu3  ;;  %v5320_v29 = vadd.f32 %v2351_v16, %v5042_v13  ;;  %v2831_v46 = vadd.f32 %v2751_v7, %v2691_v8  ;;  %v2990_v13 = vld [vmem:[%s5884_s3 + $0x70] sm:$0xff]  ;;  %v5337_v8 = vld [vmem:[%s5890_s24] ss:$0 sm:$0xff]  ;;  %v2303_v7 = vunpack.c.l.b16 %v2297_v14  ;;  %s3415_s24 = sshll.u32 %s4204_s12, 1  ;;  %s781_s12 = sand.u32 1, %s3969_s30  }
 0x23f   : > { %v5322_v47 = vadd.f32 %v2621_v42, %v2539_v51  ;;  %2994 = vmatpush.msrb.mxu1 %v2990_v13  ;;  %s791_s1 = scalar_lea.vmem %s5901_s7, %s3415_s24  ;;  %s782_s24 = scalar_lea.vmem [#allocation10], %s781_s12 }
 0x240   : > { %v2467_v40 = vpop.f32.mrf.mxu2  ;;  %3600 = vmatmul.msk.bf16.gmra.mxu1 %vm1285_vm5, %v5888_v48  ;;  %3650 = vmatmul.msk.bf16.gmra.mxu0 %vm1285_vm5, %v4850_v32  ;;  %v2867_v23 = vadd.f32 %v5337_v8, %v2831_v46  ;;  %s3292_s27 = sshll.u32 %s782_s24, 4  ;;  %s3282_s7 = scalar_lea.sflag [#allocation4], %s781_s12  ;;  %s3293_s27 = int_to_ptr.vmem [resolvable:$true] %s3292_s27 }
 0x241   : > { %v2540_v55 = vadd.f32 %v2467_v40, %v5223_v9  ;;  %2995 = vmatpush.msrb.mxu1 %v2989_v15 }
 0x242   : > { %v2899_v62 = vmax.f32 %v2867_v23, 0.0 }
 0x245   : > { %3618 = vmatmul.msk.bf16.gmra.mxu2 %vm1285_vm5, %v5891_v18  ;;  %v2353_v32 = vpop.f32.mrf.mxu1  ;;  %v2753_v9 = vpop.f32.mrf.mxu0 }
 0x246   : > { %v2623_v36 = vpop.f32.mrf.mxu3  ;;  %v5347_v51 = vadd.f32 %v2353_v32, %v5058_v39  ;;  %v2832_v33 = vadd.f32 %v2753_v9, %v2692_v12  ;;  %v3019_v39 = vld [vmem:[%s5857_s6 + $0x28] sm:$0xff] }
 0x247   : > { %v5349_v50 = vadd.f32 %v2623_v36, %v2540_v55  ;;  %v3035_v12 = vld [vmem:[%s5857_s6 + $0xa8] sm:$0xff]  ;;  %v5361_v55 = vpack.c.b16 %v2304_v30, %v2303_v7  ;;  %3062 = vmatpush.msrb.mxu2 %v3019_v39 }
 0x248   : > { %v2470_v17 = vpop.f32.mrf.mxu2  ;;  %v2868_v16 = vadd.f32 %v5337_v8, %v2832_v33  ;;  %3082 = vmatpush.msrb.mxu3 %v3035_v12 }
 0x249   : > { %v2541_v42 = vadd.f32 %v2470_v17, %v5238_v3 }
 0x24a   : > { %v2900_v40 = vmax.f32 %v2868_v16, 0.0 }
 0x24b   : > { %3635 = vmatmul.msk.bf16.gmra.mxu3 %vm1285_vm5, %v5893_v26 }
 0x24c   : > { %v2931_v46 = vadd.f32 %v2900_v40, %v2899_v62  ;;  %v5895_v62 = vld [vmem:[#allocation28_spill] sm:$0xff]  ;;  %v3018_v40 = vld [vmem:[%s5857_s6 + $0x20] sm:$0xff] }
 0x24d   : > { %v2356_v37 = vpop.f32.mrf.mxu1  ;;  %v2756_v3 = vpop.f32.mrf.mxu0  ;;  %3063 = vmatpush.msrb.mxu2 %v3018_v40  ;;  %v5432_v40 = vld [vmem:[%s4212_s25 + $0xd0] sm:$0xf] }
 0x24e   : > { %v2626_v22 = vpop.f32.mrf.mxu3  ;;  %v5364_v49 = vadd.f32 %v2356_v37, %v5075_v38  ;;  %v2833_v13 = vadd.f32 %v2756_v3, %v5290_v6  ;;  %v5894_v6 = vld [vmem:[#allocation56_spill] sm:$0xff] }
 0x24f   : > { %v2697_v18 = vadd.f32 %v2626_v22, %v2541_v42 }
 0x250   : > { %v2472_v32 = vpop.f32.mrf.mxu2  ;;  %v2869_v9 = vadd.f32 %v5337_v8, %v2833_v13  ;;  %3601 = vmatmul.msk.bf16.gmra.mxu1 %vm1285_vm5, %v5361_v55  ;;  %3651 = vmatmul.msk.bf16.gmra.mxu0 %vm1285_vm5, %v5874_v35  ;;  %v2988_v13 = vld [vmem:[%s5884_s3 + $0x60] sm:$0xff] }
 0x251   : > { %v2542_v14 = vadd.f32 %v2472_v32, %v5251_v27  ;;  %2996 = vmatpush.msrb.mxu1 %v2988_v13 }
 0x252   : > { %v2901_v38 = vmax.f32 %v2869_v9, 0.0 }
 0x254   : > { %v2932_v36 = vadd.f32 %v2931_v46, %v2901_v38 }
 0x255   : > { %3619 = vmatmul.msk.bf16.gmra.mxu2 %vm1285_vm5, %v5894_v6  ;;  %v2358_v23 = vpop.f32.mrf.mxu1  ;;  %v2758_v33 = vpop.f32.mrf.mxu0 }
 0x256   : > { %v2628_v17 = vpop.f32.mrf.mxu3  ;;  %v5379_v16 = vadd.f32 %v2358_v23, %v5087_v0  ;;  %v2834_v35 = vadd.f32 %v2758_v33, %v5307_v63  ;;  %v3034_v0 = vld [vmem:[%s5857_s6 + $0xa0] sm:$0xff] }
 0x257   : > { %v5382_v7 = vadd.f32 %v2628_v17, %v2542_v14  ;;  %3083 = vmatpush.msrb.mxu3 %v3034_v0  ;;  %v5896_v14 = vld [vmem:[#allocation58_spill] sm:$0xff] }
 0x258   : > { %v5384_v27 = vpop.f32.mrf.mxu2  ;;  %v2870_v30 = vadd.f32 %v5337_v8, %v2834_v35 }
 0x25a   : > { %v2902_v42 = vmax.f32 %v2870_v30, 0.0  ;;  %v3017_v30 = vld [vmem:[%s5857_s6 + $0x18] sm:$0xff] }
 0x25b   : > { %3636 = vmatmul.msk.bf16.gmra.mxu3 %vm1285_vm5, %v5895_v62  ;;  %3064 = vmatpush.msrb.mxu2 %v3017_v30 }
 0x25c   : > { %v2933_v26 = vadd.f32 %v2932_v36, %v2902_v42  ;;  %v5897_v36 = vld [vmem:[#allocation60_spill] sm:$0xff]  ;;  %v5429_v42 = vld [vmem:[%s4212_s25 + $0xcc] sm:$0xf] }
 0x25d   : > { %v2361_v63 = vpop.f32.mrf.mxu1  ;;  %v2761_v39 = vpop.f32.mrf.mxu0  ;;  %v2411_v6 = vadd.f32 %v5286_v61, %v5897_v36  ;;  %v2571_v13 = vshll.u32 %v5429_v42, 16 }
 0x25e   : > { %v5395_v12 = vpop.f32.mrf.mxu3  ;;  %v5398_v46 = vadd.f32 %v2361_v63, %v5101_v54  ;;  %v2835_v37 = vadd.f32 %v2761_v39, %v5322_v47  ;;  %v2568_v39 = vshrl.u32 %v5429_v42, 16 }
 0x260   : > { %v5401_v3 = vpop.f32.mrf.mxu2  ;;  %v2871_v22 = vadd.f32 %v5337_v8, %v2835_v37  ;;  %3652 = vmatmul.msk.bf16.gmra.mxu0 %vm1285_vm5, %v4908_v44 }
 0x262   : > { %v2903_v32 = vmax.f32 %v2871_v22, 0.0 }
 0x264   : > { %v2934_v9 = vadd.f32 %v2933_v26, %v2903_v32  ;;  %v2577_v32 = vshll.u32 %v5432_v40, 16 }
 0x265   : > { %3620 = vmatmul.msk.bf16.gmra.mxu2 %vm1285_vm5, %v5896_v14  ;;  %v2363_v54 = vpop.f32.mrf.mxu1  ;;  %v2763_v47 = vpop.f32.mrf.mxu0 }
 0x266   : > { %v5411_v15 = vpop.f32.mrf.mxu3  ;;  %v5414_v38 = vadd.f32 %v2363_v54, %v5113_v45  ;;  %v2836_v44 = vadd.f32 %v2763_v47, %v5349_v50  ;;  %v3033_v45 = vld [vmem:[%s5857_s6 + $0x98] sm:$0xff]  ;;  %v2570_v54 = vrot.slane %v2568_v39, 4  ;;  %v2579_v36 = vrot.slane %v2577_v32, 5 }
 0x267   : > { %3084 = vmatpush.msrb.mxu3 %v3033_v45 }
 0x268   : > { %v2480_v23 = vpop.f32.mrf.mxu2  ;;  %v2872_v33 = vadd.f32 %v5337_v8, %v2836_v44  ;;  %v2573_v44 = vrot.slane %v2571_v13, 5 }
 0x269   : > { %v2545_v17 = vadd.f32 %v2480_v23, %v2411_v6  ;;  %v5898_v6 = vld [vmem:[#allocation25_spill] sm:$0xff] }
 0x26a   : > { %v2904_v35 = vmax.f32 %v2872_v33, 0.0  ;;  %v2409_v23 = vadd.f32 %v5262_v11, %v5898_v6  ;;  %v5899_v33 = vld [vmem:[#allocation27_spill] sm:$0xff]  ;;  %v2574_v39 = vor.u32 %v2573_v44, %v2570_v54  ;;  %v5900_v44 = vld [vmem:[#allocation30_spill] sm:$0xff] }
 0x26b   : > { %3637 = vmatmul.msk.bf16.gmra.mxu3 %vm1285_vm5, %v4526_v25  ;;  %v3016_v11 = vld [vmem:[%s5857_s6 + $0x10] sm:$0xff] }
 0x26c   : > { %v2935_v50 = vadd.f32 %v2934_v9, %v2904_v35  ;;  %v2581_v9 = vshrl.u32 %v5432_v40, 16  ;;  %3065 = vmatpush.msrb.mxu2 %v3016_v11 }
 0x26d   : > { %v2366_v61 = vpop.f32.mrf.mxu1  ;;  %v2766_v62 = vpop.f32.mrf.mxu0 }
 0x26e   : > { %v2636_v0 = vpop.f32.mrf.mxu3  ;;  %v5435_v25 = vadd.f32 %v2366_v61, %v5127_v10  ;;  %v2837_v26 = vadd.f32 %v2766_v62, %v2697_v18  ;;  %v2987_v18 = vld [vmem:[%s5884_s3 + $0x58] sm:$0xff] }
 0x26f   : > { %v5437_v63 = vadd.f32 %v2636_v0, %v2545_v17  ;;  %2997 = vmatpush.msrb.mxu1 %v2987_v18 }
 0x270   : > { %v2482_v37 = vpop.f32.mrf.mxu2  ;;  %v2873_v22 = vadd.f32 %v5337_v8, %v2837_v26  ;;  %3653 = vmatmul.msk.bf16.gmra.mxu0 %vm1285_vm5, %v5881_v53  ;;  %v2583_v53 = vrot.slane %v2581_v9, 4  ;;  %v2575_v9 = vrot.slane %v2574_v39, 4 }
 0x271   : > { %v2546_v10 = vadd.f32 %v2482_v37, %v5305_v5  ;;  %v5455_v5 = vld [vmem:[%s4212_s25 + $0xd4] sm:$0x1] }
 0x272   : > { %v2905_v14 = vmax.f32 %v2873_v22, 0.0  ;;  %v2584_v37 = vor.u32 %v2583_v53, %v2579_v36  ;;  %v2587_v22 = vshll.u32 %v5455_v5, 16 }
 0x274   : > { %v2936_v47 = vadd.f32 %v2935_v50, %v2905_v14  ;;  %v2543_v50 = vadd.f32 %v5384_v27, %v2409_v23  ;;  %v2589_v18 = vrot.slane %v2587_v22, 5 }
 0x275   : > { %3621 = vmatmul.msk.bf16.gmra.mxu2 %vm1285_vm5, %v5899_v33  ;;  %v2368_v17 = vpop.f32.mrf.mxu1  ;;  %v2768_v35 = vpop.f32.mrf.mxu0 }
 0x276   : > { %v2638_v30 = vpop.f32.mrf.mxu3  ;;  %v5458_v45 = vadd.f32 %v2368_v17, %v5139_v19  ;;  %v2838_v61 = vadd.f32 %v2768_v35, %v5382_v7  ;;  %v3032_v7 = vld [vmem:[%s5857_s6 + $0x90] sm:$0xff]  ;;  %v2699_v13 = vadd.f32 %v5395_v12, %v2543_v50 }
 0x277   : > { %v5462_v62 = vadd.f32 %v2638_v30, %v2546_v10  ;;  %3085 = vmatpush.msrb.mxu3 %v3032_v7  ;;  %v2585_v10 = vrot.slane %v2584_v37, 4  ;;  %v2986_v30 = vld [vmem:[%s5884_s3 + $0x50] sm:$0xff] }
 0x278   : > { %v2485_v0 = vpop.f32.mrf.mxu2  ;;  %v2874_v26 = vadd.f32 %v5337_v8, %v2838_v61  ;;  %2998 = vmatpush.msrb.mxu1 %v2986_v30 }
 0x279   : > { %v2547_v19 = vadd.f32 %v2485_v0, %v5320_v29  ;;  %v2410_v29 = vadd.f32 %v5273_v57, %v5900_v44  ;;  %v2590_v57 = vsel %vm4245_vm4, %v2585_v10, %v2589_v18 }
 0x27a   : > { %v2906_v27 = vmax.f32 %v2874_v26, 0.0  ;;  %v2594_v50 = vunpack.c.l.b16 %v2590_v57 }
 0x27b   : > { %3638 = vmatmul.msk.bf16.gmra.mxu3 %vm1285_vm5, %v5070_v52  ;;  %v2544_v12 = vadd.f32 %v5401_v3, %v2410_v29 }
 0x27c   : > { %v2937_v32 = vadd.f32 %v2936_v47, %v2906_v27  ;;  %v2580_v47 = vsel %vm4245_vm4, %v2575_v9, %v2579_v36 }
 0x27d   : > { %v2371_v14 = vpop.f32.mrf.mxu1  ;;  %v2771_v54 = vpop.f32.mrf.mxu0  ;;  %v2593_v61 = vunpack.c.l.b16 %v2580_v47  ;;  %v2700_v11 = vadd.f32 %v5411_v15, %v2544_v12  ;;  %v3031_v15 = vld [vmem:[%s5857_s6 + $0x88] sm:$0xff]  ;;  %v3030_v47 = vld [vmem:[%s5857_s6 + $0x80] sm:$0xff] }
 0x27e   : > { %v2641_v53 = vpop.f32.mrf.mxu3  ;;  %v5479_v6 = vadd.f32 %v2371_v14, %v5151_v41  ;;  %v2839_v23 = vadd.f32 %v2771_v54, %v2699_v13  ;;  %v3677_v41 = vld [vmem:[%s4212_s25 + $0xcc] sm:$0xff]  ;;  %3086 = vmatpush.msrb.mxu3 %v3031_v15  ;;  %s3294_s25 = sshll.u32 %s3290_s14, 4  ;;  %s3295_s25 = int_to_ptr.hbm [resolvable:$true] %s3294_s25 }
 0x27f   : > { %v2703_v33 = vadd.f32 %v2641_v53, %v2547_v19  ;;  %v2595_v39 = vpack.c.b16 %v2594_v50, %v2593_v61  ;;  %v2985_v54 = vld [vmem:[%s5884_s3 + $0x48] sm:$0xff] }
 0x280   : > { %v2487_v17 = vpop.f32.mrf.mxu2  ;;  %v2875_v52 = vadd.f32 %v5337_v8, %v2839_v23  ;;  %3654 = vmatmul.msk.bf16.gmra.mxu0 %vm1285_vm5, %v4962_v60  ;;  %2999 = vmatpush.msrb.mxu1 %v2985_v54 }
 0x281   : > { %v2548_v35 = vadd.f32 %v2487_v17, %v5347_v51  ;;  %v3015_v51 = vld [vmem:[%s5857_s6 + $0x8] sm:$0xff]  ;;  %v3014_v17 = vld [vmem:[%s5857_s6] sm:$0xff]  ;;  %3087 = vmatpush.msrb.mxu3 %v3030_v47 }
 0x282   : > { %v2907_v3 = vmax.f32 %v2875_v52, 0.0  ;;  %3066 = vmatpush.msrb.mxu2 %v3015_v51 }
 0x284   : > { %v2938_v60 = vadd.f32 %v2937_v32, %v2907_v3  ;;  %3067 = vmatpush.msrb.mxu2 %v3014_v17 }
 0x285   : > { %3622 = vmatmul.msk.bf16.gmra.mxu2 %vm1285_vm5, %v3677_v41  ;;  %v2773_v36 = vpop.f32.mrf.mxu0  ;;  %v2726_v41 = vrot.slane %v5432_v40, 5  ;;  %v2984_v40 = vld [vmem:[%s5884_s3 + $0x40] sm:$0xff] }
 0x286   : > { %v2643_v0 = vpop.f32.mrf.mxu3  ;;  %v2840_v28 = vadd.f32 %v2773_v36, %v2700_v11  ;;  %3000 = vmatpush.msrb.mxu1 %v2984_v40 }
 0x287   : > { %v2704_v26 = vadd.f32 %v2643_v0, %v2548_v35  ;;  %v2728_v36 = vrot.slane %v2726_v41, 4  ;;  %v2729_v0 = vrot.slane %v5455_v5, 5 }
 0x288   : > { %v2490_v37 = vpop.f32.mrf.mxu2  ;;  %v2876_v22 = vadd.f32 %v5337_v8, %v2840_v28 }
 0x289   : > { %v2549_v19 = vadd.f32 %v2490_v37, %v5364_v49  ;;  %v3013_v37 = vld [vmem:[%s791_s1] sm:$0x3]  ;;  %s3917_s1 = sshra.s32 %s3295_s25, 4  ;;  %s3918_s1 = int_to_ptr.hbm [resolvable:$true] %s3917_s1 }
 0x28a   : > { %v2908_v7 = vmax.f32 %v2876_v22, 0.0  ;;  %p3924_p3 = scmp.lt.s32.totalorder %s3918_s1, %s5906_s26 }
 0x28b   : > { %3639 = vmatmul.msk.bf16.gmra.mxu3 %vm1285_vm5, %v2595_v39 }
 0x28c   : > { %v2939_v27 = vadd.f32 %v2938_v60, %v2908_v7  ;;  %v3640_v60 = vrot.slane %v5429_v42, 9  ;;  %v2730_v42 = vsel %vm4513_vm8, %v2728_v36, %v2729_v0  ;;  %v2373_v0 = vpop.f32.mrf.mxu1 }
 0x28d   : > { %v2776_v13 = vpop.f32.mrf.mxu0  ;;  %v2734_v7 = vunpack.c.l.b16 %v2730_v42 }
 0x28e   : > { %v2646_v32 = vpop.f32.mrf.mxu3  ;;  %v2841_v9 = vadd.f32 %v2776_v13, %v5437_v63 }
 0x28f   : > { %v2705_v10 = vadd.f32 %v2646_v32, %v2549_v19  ;;  %v3049_v32 = vperm.slane %v3013_v37, 1 }
 0x290   : > { %v2492_v18 = vpop.f32.mrf.mxu2  ;;  %v2877_v14 = vadd.f32 %v5337_v8, %v2841_v9  ;;  %3655 = vmatmul.msk.bf16.gmra.mxu0 %vm1285_vm5, %v5888_v48 }
 0x291   : > { %v2550_v49 = vadd.f32 %v2492_v18, %v5379_v16 }
 0x292   : > { %v2909_v44 = vmax.f32 %v2877_v14, 0.0 }
 0x294   : > { %v2940_v29 = vadd.f32 %v2939_v27, %v2909_v44  ;;  %v3048_v27 = vperm.slane %v3013_v37, 0 }
 0x295   : > { %v2778_v53 = vpop.f32.mrf.mxu0 }
 0x296   : > { %v2648_v23 = vpop.f32.mrf.mxu3  ;;  %v2842_v63 = vadd.f32 %v2778_v53, %v5462_v62  ;;  %3068 = vmatmul.f32.vlgmr.msrb.gmra.mxu2 %v3048_v27 }
 0x297   : > { %v2706_v12 = vadd.f32 %v2648_v23, %v2550_v49 }
 0x298   : > { %v2495_v52 = vpop.f32.mrf.mxu2  ;;  %v2878_v48 = vadd.f32 %v5337_v8, %v2842_v63 }
 0x299   : > { %v2551_v16 = vadd.f32 %v2495_v52, %v5398_v46 }
 0x29a   : > { %v2910_v57 = vmax.f32 %v2878_v48, 0.0 }
 0x29b   : > { %3088 = vmatmul.f32.vlgmr.msrb.gmra.mxu3 %v3049_v32 }
 0x29c   : > { %v2941_v35 = vadd.f32 %v2940_v29, %v2910_v57 }
 0x29d   : > { %v2781_v62 = vpop.f32.mrf.mxu0 }
 0x29e   : > { %v2651_v30 = vpop.f32.mrf.mxu3  ;;  %v2843_v3 = vadd.f32 %v2781_v62, %v2703_v33 }
 0x29f   : > { %v2707_v61 = vadd.f32 %v2651_v30, %v2551_v16 }
 0x2a0   : > { %v2497_v50 = vpop.f32.mrf.mxu2  ;;  %v2879_v11 = vadd.f32 %v5337_v8, %v2843_v3  ;;  %3656 = vmatmul.msk.bf16.gmra.mxu0 %vm1285_vm5, %v5361_v55 }
 0x2a1   : > { %v2552_v46 = vadd.f32 %v2497_v50, %v5414_v38  ;;  %v2727_v38 = vsel %vm4513_vm8, %v3640_v60, %v2726_v41 }
 0x2a2   : > { %v2911_v33 = vmax.f32 %v2879_v11, 0.0  ;;  %v2733_v15 = vunpack.c.l.b16 %v2727_v38  ;;  %v2982_v11 = vld [vmem:[%s5884_s3 + $0x30] sm:$0xff] }
 0x2a4   : > { %v2942_v28 = vadd.f32 %v2941_v35, %v2911_v33  ;;  %v2735_v14 = vpack.c.b16 %v2734_v7, %v2733_v15 }
 0x2a5   : > { %v2783_v55 = vpop.f32.mrf.mxu0 }
 0x2a6   : > { %v2653_v5 = vpop.f32.mrf.mxu3  ;;  %v2844_v39 = vadd.f32 %v2783_v55, %v2704_v26 }
 0x2a7   : > { %v2708_v51 = vadd.f32 %v2653_v5, %v2552_v46  ;;  %v2376_v5 = vpop.f32.mrf.mxu1 }
 0x2a8   : > { %v2500_v22 = vpop.f32.mrf.mxu2  ;;  %v2880_v19 = vadd.f32 %v5337_v8, %v2844_v39  ;;  %v2981_v39 = vld [vmem:[%s5884_s3 + $0x28] sm:$0xff] }
 0x2a9   : > { %v2553_v13 = vadd.f32 %v2500_v22, %v5435_v25  ;;  %v2983_v25 = vld [vmem:[%s5884_s3 + $0x38] sm:$0xff] }
 0x2aa   : > { %v2912_v9 = vmax.f32 %v2880_v19, 0.0  ;;  %3001 = vmatpush.msrb.mxu1 %v2983_v25 }
 0x2ac   : > { %v2943_v18 = vadd.f32 %v2942_v28, %v2912_v9  ;;  %3002 = vmatpush.msrb.mxu1 %v2982_v11 }
 0x2ad   : > { %v2786_v34 = vpop.f32.mrf.mxu0 }
 0x2ae   : > { %v2656_v49 = vpop.f32.mrf.mxu3  ;;  %v2845_v54 = vadd.f32 %v2786_v34, %v2705_v10  ;;  %3003 = vmatpush.msrb.mxu1 %v2981_v39  ;;  %v2422_v34 = vadd.f32 %v2373_v0, %v5164_v2  ;;  %v2978_v39 = vld [vmem:[%s5884_s3 + $0x10] sm:$0xff] }
 0x2af   : > { %v2709_v26 = vadd.f32 %v2656_v49, %v2553_v13  ;;  %v2378_v32 = vpop.f32.mrf.mxu1 }
 0x2b0   : > { %v2502_v44 = vpop.f32.mrf.mxu2  ;;  %v2881_v29 = vadd.f32 %v5337_v8, %v2845_v54  ;;  %3657 = vmatmul.msk.bf16.gmra.mxu0 %vm1285_vm5, %v2735_v14 }
 0x2b1   : > { %v2554_v53 = vadd.f32 %v2502_v44, %v5458_v45 }
 0x2b2   : > { %v2913_v23 = vmax.f32 %v2881_v29, 0.0  ;;  %v2980_v29 = vld [vmem:[%s5884_s3 + $0x20] sm:$0xff] }
 0x2b3   : > { %3004 = vmatpush.msrb.mxu1 %v2980_v29 }
 0x2b4   : > { %v2944_v63 = vadd.f32 %v2943_v18, %v2913_v23 }
 0x2b5   : > { %v2788_v17 = vpop.f32.mrf.mxu0 }
 0x2b6   : > { %v2658_v52 = vpop.f32.mrf.mxu3  ;;  %v2846_v48 = vadd.f32 %v2788_v17, %v2706_v12 }
 0x2b7   : > { %v2710_v16 = vadd.f32 %v2658_v52, %v2554_v53  ;;  %v2423_v52 = vadd.f32 %v2376_v5, %v5179_v31  ;;  %v2979_v31 = vld [vmem:[%s5884_s3 + $0x18] sm:$0xff] }
 0x2b8   : > { %v2505_v10 = vpop.f32.mrf.mxu2  ;;  %v2882_v47 = vadd.f32 %v5337_v8, %v2846_v48  ;;  %3005 = vmatpush.msrb.mxu1 %v2979_v31 }
 0x2b9   : > { %v2555_v57 = vadd.f32 %v2505_v10, %v5479_v6 }
 0x2ba   : > { %v2914_v35 = vmax.f32 %v2882_v47, 0.0  ;;  %3006 = vmatpush.msrb.mxu1 %v2978_v39 }
 0x2bc   : > { %v2945_v62 = vadd.f32 %v2944_v63, %v2914_v35  ;;  %v2381_v63 = vpop.f32.mrf.mxu1 }
 0x2bd   : > { %v2791_v41 = vpop.f32.mrf.mxu0 }
 0x2be   : > { %v2661_v45 = vpop.f32.mrf.mxu3  ;;  %v2847_v30 = vadd.f32 %v2791_v41, %v2707_v61 }
 0x2bf   : > { %v2711_v3 = vadd.f32 %v2661_v45, %v2555_v57  ;;  %v2424_v45 = vadd.f32 %v2378_v32, %v5192_v20 }
 0x2c0   : > { %v2883_v50 = vadd.f32 %v5337_v8, %v2847_v30  ;;  %v2507_v40 = vpop.f32.mrf.mxu2 }
 0x2c1   : > { %v2556_v54 = vadd.f32 %v2507_v40, %v2422_v34  ;;  %v2425_v40 = vadd.f32 %v2381_v63, %v5207_v59 }
 0x2c2   : > { %v2915_v46 = vmax.f32 %v2883_v50, 0.0 }
 0x2c4   : > { %v2946_v12 = vadd.f32 %v2945_v62, %v2915_v46 }
 0x2c5   : > { %v2793_v60 = vpop.f32.mrf.mxu0 }
 0x2c6   : > { %v2848_v36 = vadd.f32 %v2793_v60, %v2708_v51  ;;  %v2663_v55 = vpop.f32.mrf.mxu3 }
 0x2c7   : > { %v2712_v25 = vadd.f32 %v2663_v55, %v2556_v54 }
 0x2c8   : > { %v2884_v6 = vadd.f32 %v5337_v8, %v2848_v36  ;;  %v2510_v22 = vpop.f32.mrf.mxu2 }
 0x2c9   : > { %v2557_v2 = vadd.f32 %v2510_v22, %v2423_v52 }
 0x2ca   : > { %v2916_v33 = vmax.f32 %v2884_v6, 0.0 }
 0x2cc   : > { %v2947_v28 = vadd.f32 %v2946_v12, %v2916_v33 }
 0x2cd   : > { %v2796_v61 = vpop.f32.mrf.mxu0 }
 0x2ce   : > { %v2849_v38 = vadd.f32 %v2796_v61, %v2709_v26  ;;  %v2666_v7 = vpop.f32.mrf.mxu3 }
 0x2cf   : > { %v2713_v35 = vadd.f32 %v2666_v7, %v2557_v2 }
 0x2d0   : > { %v2885_v42 = vadd.f32 %v5337_v8, %v2849_v38  ;;  %v2512_v18 = vpop.f32.mrf.mxu2 }
 0x2d1   : > { %v2558_v50 = vadd.f32 %v2512_v18, %v2424_v45 }
 0x2d2   : > { %v2917_v37 = vmax.f32 %v2885_v42, 0.0 }
 0x2d4   : > { %v2948_v51 = vadd.f32 %v2947_v28, %v2917_v37 }
 0x2d5   : > { %v2798_v19 = vpop.f32.mrf.mxu0 }
 0x2d6   : > { %v2850_v15 = vadd.f32 %v2798_v19, %v2710_v16  ;;  %v2668_v44 = vpop.f32.mrf.mxu3 }
 0x2d7   : > { %v2714_v60 = vadd.f32 %v2668_v44, %v2558_v50 }
 0x2d8   : > { %v2886_v27 = vadd.f32 %v5337_v8, %v2850_v15  ;;  %v2515_v16 = vpop.f32.mrf.mxu2 }
 0x2d9   : > { %v2559_v20 = vadd.f32 %v2515_v16, %v2425_v40 }
 0x2da   : > { %v2918_v13 = vmax.f32 %v2886_v27, 0.0 }
 0x2dc   : > { %v2949_v9 = vadd.f32 %v2948_v51, %v2918_v13 }
 0x2dd   : > { %v2801_v14 = vpop.f32.mrf.mxu0 }
 0x2de   : > { %v2851_v49 = vadd.f32 %v2801_v14, %v2711_v3  ;;  %v2671_v57 = vpop.f32.mrf.mxu3  ;;  %v2383_v3 = vpop.f32.mrf.mxu1 }
 0x2df   : > { %v2715_v42 = vadd.f32 %v2671_v57, %v2559_v20  ;;  %v2426_v22 = vadd.f32 %v2383_v3, %v5220_v56  ;;  %v2976_v57 = vld [vmem:[%s5884_s3] sm:$0xff] }
 0x2e0   : > { %v2887_v26 = vadd.f32 %v5337_v8, %v2851_v49  ;;  %v2517_v46 = vpop.f32.mrf.mxu2 }
 0x2e1   : > { %v2560_v59 = vadd.f32 %v2517_v46, %v2426_v22 }
 0x2e2   : > { %v2919_v53 = vmax.f32 %v2887_v26, 0.0 }
 0x2e4   : > { %v2950_v23 = vadd.f32 %v2949_v9, %v2919_v53  ;;  %v2977_v53 = vld [vmem:[%s5884_s3 + $0x8] sm:$0xff]  ;;  %s3919_s3 = scalar_lea.hbm %s3918_s1, 1 }
 0x2e5   : > { %v2803_v17 = vpop.f32.mrf.mxu0  ;;  %3007 = vmatpush.msrb.mxu1 %v2977_v53  ;;  %v3986_v53 = vmov 256.0   ;;  %p3920_p0 = scmp.ne.s32.totalorder %s3918_s1, %s3919_s3  ;;  %p3925_p4 = scmp.lt.s32.totalorder %s3923_s2, %s3919_s3 }
 0x2e6   : > { %v2852_v48 = vadd.f32 %v2803_v17, %v2712_v25  ;;  %v2673_v0 = vpop.f32.mrf.mxu3  ;;  %v2386_v55 = vpop.f32.mrf.mxu1 }
 0x2e7   : > { %v2716_v13 = vadd.f32 %v2673_v0, %v2560_v59  ;;  %v2427_v14 = vadd.f32 %v2386_v55, %v5235_v21  ;;  %3008 = vmatpush.msrb.mxu1 %v2976_v57  ;;  %v3122_v59 = vld [vmem:[#allocation2 + $0x50] sm:$0xff]  ;;  %p3921_p1 = pnand %p3920_p0, %p4145_p5  ;;  %p3926_p7 = por %p3925_p4, %p3924_p3 }
 0x2e8   : > { %v2888_v10 = vadd.f32 %v5337_v8, %v2852_v48  ;;  %v2520_v38 = vpop.f32.mrf.mxu2  ;;  %v3163_v57 = vld [vmem:[#allocation5 + $0x70] sm:$0xff] }
 0x2e9   : > { %v2561_v49 = vadd.f32 %v2520_v38, %v2427_v14  ;;  %v3119_v14 = vld [vmem:[#allocation2 + $0x38] sm:$0xff]  ;;  %p3922_p2 = pneg %p3921_p1 }
 0x2ea   : > { %v2920_v47 = vmax.f32 %v2888_v10, 0.0 }
 0x2eb   : > { %p3927_p8 = pnand %p3926_p7, %p3922_p2 }
 0x2ec   : > { %v2951_v62 = vadd.f32 %v2950_v23, %v2920_v47 }
 0x2ed   : > { %v2806_v41 = vpop.f32.mrf.mxu0 }
 0x2ee   : > { %v2853_v30 = vadd.f32 %v2806_v41, %v2713_v35  ;;  %v2676_v19 = vpop.f32.mrf.mxu3  ;;  %v2388_v27 = vpop.f32.mrf.mxu1 }
 0x2ef   : > { %v2717_v56 = vadd.f32 %v2676_v19, %v2561_v49  ;;  %v2428_v63 = vadd.f32 %v2388_v27, %v5248_v58  ;;  %v3121_v27 = vld [vmem:[#allocation2 + $0x48] sm:$0xff] }
 0x2f0   : > { %v2889_v11 = vadd.f32 %v5337_v8, %v2853_v30  ;;  %v2522_v9 = vpop.f32.mrf.mxu2 }
 0x2f1   : > { %v2562_v21 = vadd.f32 %v2522_v9, %v2428_v63 }
 0x2f2   : > { %v2921_v12 = vmax.f32 %v2889_v11, 0.0 }
 0x2f4   : > { %v2952_v36 = vadd.f32 %v2951_v62, %v2921_v12 }
 0x2f5   : > { %v2808_v6 = vpop.f32.mrf.mxu0 }
 0x2f6   : > { %v2854_v33 = vadd.f32 %v2808_v6, %v2714_v60  ;;  %v2678_v26 = vpop.f32.mrf.mxu3  ;;  %v2391_v25 = vpop.f32.mrf.mxu1  ;;  %v3127_v60 = vld [vmem:[#allocation2 + $0x78] sm:$0xff]  ;;  %v3126_v6 = vld [vmem:[#allocation2 + $0x70] sm:$0xff] }
 0x2f7   : > { %v2718_v10 = vadd.f32 %v2678_v26, %v2562_v21  ;;  %v2429_v62 = vadd.f32 %v2391_v25, %v5264_v24  ;;  %3129 = vmatpush.msra.mxu1 %v3127_v60  ;;  %v3117_v25 = vld [vmem:[#allocation2 + $0x28] sm:$0xff]  ;;  %v3116_v21 = vld [vmem:[#allocation2 + $0x20] sm:$0xff] }
 0x2f8   : > { %v2890_v28 = vadd.f32 %v5337_v8, %v2854_v33  ;;  %v2525_v52 = vpop.f32.mrf.mxu2  ;;  %v3094_v33 = vld [vmem:[%s5707_s11] sm:$0x1] }
 0x2f9   : > { %v2563_v58 = vadd.f32 %v2525_v52, %v2429_v62  ;;  %3130 = vmatpush.msra.mxu1 %v3126_v6  ;;  %v5596_v55 = vadd.f32 1e-05, %v3094_v33  ;;  %v3046_v62 = vld [vmem:[%s5902_s22] sm:$0x1] }
 0x2fa   : > { %v2922_v61 = vmax.f32 %v2890_v28, 0.0  ;;  %v3125_v28 = vld [vmem:[#allocation2 + $0x68] sm:$0xff]  ;;  %v3177_v33 = vld [vmem:[#allocation7 + $0x60] sm:$0xff] }
 0x2fb   : > { %3131 = vmatpush.msra.mxu1 %v3125_v28  ;;  %3767 = vrsqrt.f32 %v5596_v55  ;;  %v3160_v28 = vld [vmem:[#allocation5 + $0x58] sm:$0xff]  ;;  %vm3102_vm9 = vweird.f32 %v5596_v55 }
 0x2fc   : > { %v2953_v5 = vadd.f32 %v2952_v36, %v2922_v61  ;;  %3769 = vrcp.f32 %v3986_v53 }
 0x2fd   : > { %v2811_v37 = vpop.f32.mrf.mxu0 }
 0x2fe   : > { %v2855_v51 = vadd.f32 %v2811_v37, %v2715_v42  ;;  %v2681_v2 = vpop.f32.mrf.mxu3  ;;  %v2393_v45 = vpop.f32.mrf.mxu1  ;;  %v3124_v42 = vld [vmem:[#allocation2 + $0x60] sm:$0xff]  ;;  %v3123_v37 = vld [vmem:[#allocation2 + $0x58] sm:$0xff] }
 0x2ff   : > { %v2719_v11 = vadd.f32 %v2681_v2, %v2563_v58  ;;  %v2430_v36 = vadd.f32 %v2393_v45, %v5275_v43  ;;  %3132 = vmatpush.msra.mxu1 %v3124_v42  ;;  %v3114_v58 = vld [vmem:[#allocation2 + $0x10] sm:$0xff] }
 0x300   : > { %v2891_v15 = vadd.f32 %v5337_v8, %v2855_v51  ;;  %v2527_v3 = vpop.f32.mrf.mxu2 }
 0x301   : > { %v2564_v40 = vadd.f32 %v2527_v3, %v2430_v36  ;;  %3133 = vmatpush.msra.mxu1 %v3123_v37  ;;  %v3175_v37 = vld [vmem:[#allocation7 + $0x50] sm:$0xff] }
 0x302   : > { %v2923_v7 = vmax.f32 %v2891_v15, 0.0 }
 0x303   : > { %3134 = vmatpush.msra.mxu1 %v3122_v59 }
 0x304   : > { %v2954_v32 = vadd.f32 %v2953_v5, %v2923_v7 }
 0x305   : > { %v2813_v18 = vpop.f32.mrf.mxu0  ;;  %3135 = vmatpush.msra.mxu1 %v3121_v27 }
 0x306   : > { %v2856_v34 = vadd.f32 %v2813_v18, %v2716_v13  ;;  %v2683_v31 = vpop.f32.mrf.mxu3  ;;  %v2396_v20 = vpop.f32.mrf.mxu1  ;;  %v3120_v13 = vld [vmem:[#allocation2 + $0x40] sm:$0xff] }
 0x307   : > { %v2720_v43 = vadd.f32 %v2683_v31, %v2564_v40  ;;  %v2431_v22 = vadd.f32 %v2396_v20, %v5288_v1  ;;  %3136 = vmatpush.msra.mxu1 %v3120_v13  ;;  %v3113_v31 = vld [vmem:[#allocation2 + $0x8] sm:$0xff]  ;;  %v3157_v13 = vld [vmem:[#allocation5 + $0x40] sm:$0xff] }
 0x308   : > { %v2892_v54 = vadd.f32 %v5337_v8, %v2856_v34  ;;  %v2530_v38 = vpop.f32.mrf.mxu2 }
 0x309   : > { %v2565_v15 = vadd.f32 %v2530_v38, %v2431_v22  ;;  %3137 = vmatpush.msra.mxu1 %v3119_v14  ;;  %v3156_v14 = vld [vmem:[#allocation5 + $0x38] sm:$0xff] }
 0x30a   : > { %v2924_v44 = vmax.f32 %v2892_v54, 0.0 }
 0x30c   : > { %v2955_v29 = vadd.f32 %v2954_v32, %v2924_v44  ;;  %v5601_v32 = vpop.eup %3767  ;;  %v3118_v44 = vld [vmem:[#allocation2 + $0x30] sm:$0xff] }
 0x30d   : > { %v2816_v23 = vpop.f32.mrf.mxu0  ;;  %v3097_v26 = vmul.f32 %v5601_v32, %v5596_v55  ;;  %3138 = vmatpush.msra.mxu1 %v3118_v44  ;;  %v5608_v2 = vpop.eup %3769  ;;  %vm3103_vm10 = vweird.f32 %v5601_v32  ;;  %v3173_v55 = vld [vmem:[#allocation7 + $0x40] sm:$0xff] }
 0x30e   : > { %v2857_v17 = vadd.f32 %v2816_v23, %v2717_v56  ;;  %v2686_v19 = vpop.f32.mrf.mxu3  ;;  %v2398_v18 = vpop.f32.mrf.mxu1  ;;  %vm5623_vm11 = vmor %vm3102_vm9, %vm3103_vm10  ;;  %vm2973_vm12 = vweird.f32 %v5608_v2  ;;  %v3107_v44 = vld [vmem:[%s5704_s8] sm:$0x1] }
 0x30f   : > { %v2721_v34 = vadd.f32 %v2686_v19, %v2565_v15  ;;  %v2432_v56 = vadd.f32 %v2398_v18, %v5302_v4  ;;  %v3098_v52 = vmul.f32 %v5601_v32, %v3097_v26  ;;  %3139 = vmatpush.msra.mxu1 %v3117_v25  ;;  %v3158_v19 = vld [vmem:[#allocation5 + $0x48] sm:$0xff]  ;;  %v3155_v26 = vld [vmem:[#allocation5 + $0x30] sm:$0xff] }
 0x310   : > { %v2893_v48 = vadd.f32 %v5337_v8, %v2857_v17  ;;  %v2532_v1 = vpop.f32.mrf.mxu2  ;;  %v3174_v15 = vld [vmem:[#allocation7 + $0x48] sm:$0xff] }
 0x311   : > { %v2566_v23 = vadd.f32 %v2532_v1, %v2432_v56  ;;  %3140 = vmatpush.msra.mxu1 %v3116_v21  ;;  %v3099_v45 = vmul.f32 0.5, %v3098_v52  ;;  %v3152_v21 = vld [vmem:[#allocation5 + $0x18] sm:$0xff] }
 0x312   : > { %v2925_v16 = vmax.f32 %v2893_v48, 0.0 }
 0x313   : > { %v3100_v40 = vsub.f32 1.5, %v3099_v45  ;;  %v3165_v45 = vld [vmem:[#allocation7] sm:$0xff] }
 0x314   : > { %v2956_v47 = vadd.f32 %v2955_v29, %v2925_v16  ;;  %v3115_v16 = vld [vmem:[#allocation2 + $0x18] sm:$0xff] }
 0x315   : > { %v2818_v35 = vpop.f32.mrf.mxu0  ;;  %3141 = vmatpush.msra.mxu1 %v3115_v16  ;;  %v3151_v16 = vld [vmem:[#allocation5 + $0x10] sm:$0xff] }
 0x316   : > { %v2858_v41 = vadd.f32 %v2818_v35, %v2718_v10  ;;  %v2688_v17 = vpop.f32.mrf.mxu3 }
 0x317   : > { %v2722_v10 = vadd.f32 %v2688_v17, %v2566_v23  ;;  %3142 = vmatpush.msra.mxu1 %v3114_v58  ;;  %v3109_v17 = vld [vmem:[%s5705_s9] sm:$0x1]  ;;  %v3258_v58 = vld [vmem:[#allocation8 + $0x78] sm:$0xff] }
 0x318   : > { %v2894_v30 = vadd.f32 %v5337_v8, %v2858_v41 }
 0x319   : > { %v3069_v41 = vpop.f32.mrf.mxu2  ;;  %3143 = vmatpush.msra.mxu1 %v3113_v31 }
 0x31a   : > { %v2926_v50 = vmax.f32 %v2894_v30, 0.0  ;;  %v3180_v30 = vld [vmem:[#allocation7 + $0x78] sm:$0xff]  ;;  %v3070_v36 = vadd.f32 %v3069_v41, %v3046_v62  ;;  %v3167_v62 = vld [vmem:[#allocation7 + $0x10] sm:$0xff]  ;;  %v3166_v41 = vld [vmem:[#allocation7 + $0x8] sm:$0xff] }
 0x31b   : > { %3181 = vmatpush.msra.mxu2 %v3180_v30  ;;  %v3257_v30 = vld [vmem:[#allocation8 + $0x70] sm:$0xff] }
 0x31c   : > { %v2957_v46 = vadd.f32 %v2956_v47, %v2926_v50  ;;  %v3164_v47 = vld [vmem:[#allocation5 + $0x78] sm:$0xff]  ;;  %v3162_v50 = vld [vmem:[#allocation5 + $0x68] sm:$0xff] }
 0x31d   : > { %v2821_v12 = vpop.f32.mrf.mxu0  ;;  %3201 = vmatpush.msra.mxu3 %v3164_v47  ;;  %v3169_v47 = vld [vmem:[#allocation7 + $0x20] sm:$0xff] }
 0x31e   : > { %v2859_v0 = vadd.f32 %v2821_v12, %v2719_v11  ;;  %v3179_v11 = vld [vmem:[#allocation7 + $0x70] sm:$0xff]  ;;  %v3178_v12 = vld [vmem:[#allocation7 + $0x68] sm:$0xff]  ;;  %v3089_v6 = vpop.f32.mrf.mxu3 }
 0x31f   : > { %3202 = vmatpush.msra.mxu3 %v3163_v57  ;;  %3182 = vmatpush.msra.mxu2 %v3179_v11  ;;  %v3090_v42 = vadd.f32 %v3089_v6, %v3070_v36  ;;  %v3149_v57 = vld [vmem:[#allocation5] sm:$0xff]  ;;  %v3253_v6 = vld [vmem:[#allocation8 + $0x50] sm:$0xff] }
 0x320   : > { %v2895_v24 = vadd.f32 %v5337_v8, %v2859_v0  ;;  %v3161_v0 = vld [vmem:[#allocation5 + $0x60] sm:$0xff] }
 0x321   : > { %3203 = vmatpush.msra.mxu3 %v3162_v50  ;;  %3183 = vmatpush.msra.mxu2 %v3178_v12  ;;  %v3255_v50 = vld [vmem:[#allocation8 + $0x60] sm:$0xff] }
 0x322   : > { %v2927_v61 = vmax.f32 %v2895_v24, 0.0  ;;  %v3112_v24 = vld [vmem:[#allocation2] sm:$0xff] }
 0x323   : > { %3204 = vmatpush.msra.mxu3 %v3161_v0  ;;  %3144 = vmatpush.msra.mxu1 %v3112_v24  ;;  %v2992_v11 = vld [vmem:[%s5905_s0] sm:$0x1]  ;;  %v3254_v0 = vld [vmem:[#allocation8 + $0x58] sm:$0xff] }
 0x324   : > { %v2958_v5 = vadd.f32 %v2957_v46, %v2927_v61  ;;  %v2969_v46 = vmul.f32 256.0, %v5608_v2  ;;  %3184 = vmatpush.msra.mxu2 %v3177_v33  ;;  %v3128_v12 = vld [vmem:[%s5709_s13] sm:$0x1] }
 0x325   : > { %v2823_v39 = vpop.f32.mrf.mxu0  ;;  %3205 = vmatpush.msra.mxu3 %v3160_v28  ;;  %v3251_v24 = vld [vmem:[#allocation8 + $0x40] sm:$0xff]  ;;  %v3250_v28 = vld [vmem:[#allocation8 + $0x38] sm:$0xff] }
 0x326   : > { %v2860_v51 = vadd.f32 %v2823_v39, %v2720_v43  ;;  %v2970_v61 = vsub.f32 1.0, %v2969_v46  ;;  %v3159_v43 = vld [vmem:[#allocation5 + $0x50] sm:$0xff]  ;;  %v3101_v39 = vmul.f32 %v5601_v32, %v3100_v40  ;;  %v3252_v40 = vld [vmem:[#allocation8 + $0x48] sm:$0xff]  ;;  %v3225_v33 = vld [vmem:[%s5716_s20] sm:$0x1] }
 0x327   : > { %3206 = vmatpush.msra.mxu3 %v3159_v43  ;;  %v3246_v43 = vld [vmem:[#allocation8 + $0x18] sm:$0xff] }
 0x328   : > { %v2896_v7 = vadd.f32 %v5337_v8, %v2860_v51  ;;  %v2971_v59 = vmul.f32 %v5608_v2, %v2970_v61  ;;  %v3249_v61 = vld [vmem:[#allocation8 + $0x30] sm:$0xff]  ;;  %v3243_v51 = vld [vmem:[#allocation8] sm:$0xff] }
 0x329   : > { %3207 = vmatpush.msra.mxu3 %v3158_v19 }
 0x32a   : > { %v2928_v9 = vmax.f32 %v2896_v7, 0.0 }
 0x32b   : > { %3208 = vmatpush.msra.mxu3 %v3157_v13 }
 0x32c   : > { %v2959_v49 = vadd.f32 %v2958_v5, %v2928_v9  ;;  %v3092_v5 = vld [vmem:[%s5706_s10] sm:$0x1]  ;;  %v3105_v9 = vsel %vm5623_vm11, %v5601_v32, %v3101_v39  ;;  %v3171_v32 = vld [vmem:[#allocation7 + $0x30] sm:$0xff] }
 0x32d   : > { %v2826_v54 = vpop.f32.mrf.mxu0  ;;  %v3093_v27 = vsub.f32 %v3090_v42, %v3092_v5  ;;  %3209 = vmatpush.msra.mxu3 %v3156_v14  ;;  %v3247_v42 = vld [vmem:[#allocation8 + $0x20] sm:$0xff]  ;;  %v3245_v39 = vld [vmem:[#allocation8 + $0x10] sm:$0xff] }
 0x32e   : > { %v2861_v29 = vadd.f32 %v2826_v54, %v2721_v34  ;;  %v2972_v34 = vadd.f32 %v5608_v2, %v2971_v59 }
 0x32f   : > { %v3106_v54 = vmul.f32 %v3105_v9, %v3093_v27  ;;  %3210 = vmatpush.msra.mxu3 %v3155_v26  ;;  %v3221_v27 = vld [vmem:[%s5712_s16] sm:$0x1] }
 0x330   : > { %v2897_v63 = vadd.f32 %v5337_v8, %v2861_v29  ;;  %v3154_v29 = vld [vmem:[#allocation5 + $0x28] sm:$0xff]  ;;  %v2974_v53 = vsel %vm2973_vm12, %v5608_v2, %v2972_v34 }
 0x331   : > { %v3108_v23 = vmul.f32 %v3107_v44, %v3106_v54  ;;  %3211 = vmatpush.msra.mxu3 %v3154_v29  ;;  %v3170_v2 = vld [vmem:[#allocation7 + $0x28] sm:$0xff]  ;;  %v3240_v54 = vld [vmem:[%s5714_s18] sm:$0x1] }
 0x332   : > { %v2929_v48 = vmax.f32 %v2897_v63, 0.0  ;;  %v3153_v63 = vld [vmem:[#allocation5 + $0x20] sm:$0xff] }
 0x333   : > { %3212 = vmatpush.msra.mxu3 %v3153_v63 }
 0x334   : > { %v2960_v4 = vadd.f32 %v2959_v49, %v2929_v48  ;;  %v3172_v49 = vld [vmem:[#allocation7 + $0x38] sm:$0xff]  ;;  %v3110_v48 = vadd.f32 %v3109_v17, %v3108_v23 }
 0x335   : > { %v2828_v35 = vpop.f32.mrf.mxu0  ;;  %3213 = vmatpush.msra.mxu3 %v3152_v21 }
 0x336   : > { %v2862_v3 = vadd.f32 %v2828_v35, %v2722_v10  ;;  %v3111_v10 = vmax.f32 %v3110_v48, 0.0  ;;  %v3168_v35 = vld [vmem:[#allocation7 + $0x18] sm:$0xff] }
 0x337   : > { %3214 = vmatpush.msra.mxu3 %v3151_v16 }
 0x338   : > { %v2898_v60 = vadd.f32 %v5337_v8, %v2862_v3  ;;  %v3176_v8 = vld [vmem:[#allocation7 + $0x58] sm:$0xff]  ;;  %v3256_v3 = vld [vmem:[#allocation8 + $0x68] sm:$0xff] }
 0x339   : > { %3185 = vmatpush.msra.mxu2 %v3176_v8  ;;  %v3248_v8 = vld [vmem:[#allocation8 + $0x28] sm:$0xff] }
 0x33a   : > { %v2930_v20 = vmax.f32 %v2898_v60, 0.0 }
 0x33b   : > { %3186 = vmatpush.msra.mxu2 %v3175_v37  ;;  %v3244_v37 = vld [vmem:[#allocation8 + $0x8] sm:$0xff] }
 0x33c   : > { %v2961_v38 = vadd.f32 %v2960_v4, %v2930_v20  ;;  %v3150_v4 = vld [vmem:[#allocation5 + $0x8] sm:$0xff]  ;;  %v3226_v20 = vadd.f32 1e-05, %v3225_v33 }
 0x33d   : > { %3187 = vmatpush.msra.mxu2 %v3174_v15  ;;  %3215 = vmatpush.msra.mxu3 %v3150_v4 }
 0x33e   : > { %v2962_v22 = vrot.slane %v2961_v38, 4  ;;  %3771 = vrsqrt.f32 %v3226_v20  ;;  %vm3233_vm13 = vweird.f32 %v3226_v20 }
 0x33f   : > { %3188 = vmatpush.msra.mxu2 %v3173_v55  ;;  %3216 = vmatpush.msra.mxu3 %v3149_v57  ;;  %v3223_v55 = vld [vmem:[%s5715_s19] sm:$0x1] }
 0x340   : > { %v2963_v7 = vadd.f32 %v2962_v22, %v2961_v38 }
 0x341   : > { %3189 = vmatpush.msra.mxu2 %v3172_v49  ;;  %v3238_v49 = vld [vmem:[%s5713_s17] sm:$0x1] }
 0x342   : > { %v2964_v18 = vrot.slane %v2963_v7, 2 }
 0x343   : > { %3190 = vmatpush.msra.mxu2 %v3171_v32 }
 0x344   : > { %v2965_v1 = vadd.f32 %v2964_v18, %v2963_v7  ;;  %v3772_v38 = vpop.eup %3771 }
 0x345   : > { %3191 = vmatpush.msra.mxu2 %v3170_v2  ;;  %v3228_v5 = vmul.f32 %v3772_v38, %v3226_v20  ;;  %vm3234_vm14 = vweird.f32 %v3772_v38 }
 0x346   : > { %v2966_v56 = vrot.slane %v2965_v1, 1  ;;  %vm3235_vm15 = vmor %vm3233_vm13, %vm3234_vm14 }
 0x347   : > { %3192 = vmatpush.msra.mxu2 %v3169_v47  ;;  %v3229_v22 = vmul.f32 %v3772_v38, %v3228_v5 }
 0x348   : > { %v2967_v25 = vadd.f32 %v2966_v56, %v2965_v1  ;;  %v3259_v56 = vld [vmem:[%s5908_s4] sm:$0x1] }
 0x349   : > { %3193 = vmatpush.msra.mxu2 %v3168_v35  ;;  %v3230_v19 = vmul.f32 0.5, %v3229_v22 }
 0x34a   : > { %v2975_v52 = vmul.f32 %v2974_v53, %v2967_v25 }
 0x34b   : > { %3194 = vmatpush.msra.mxu2 %v3167_v62  ;;  %v3231_v59 = vsub.f32 1.5, %v3230_v19 }
 0x34c   : > { %3009 = vmatmul.f32.vlgmr.msrb.gmra.mxu1 %v2975_v52 }
 0x34d   : > { %3195 = vmatpush.msra.mxu2 %v3166_v41  ;;  %3260 = vmatpush.msrb.mxu1 %v3258_v58  ;;  %v3232_v13 = vmul.f32 %v3772_v38, %v3231_v59 }
 0x34f   : > { %3196 = vmatpush.msra.mxu2 %v3165_v45  ;;  %3261 = vmatpush.msrb.mxu1 %v3257_v30  ;;  %v3236_v14 = vsel %vm3235_vm15, %v3772_v38, %v3232_v13 }
 0x351   : > { %3262 = vmatpush.msrb.mxu1 %v3256_v3 }
 0x353   : > { %3263 = vmatpush.msrb.mxu1 %v3255_v50 }
 0x354   : > { %3145 = vmatmul.f32.vlgmr.msra.gmra.mxu1 %v3111_v10 }
 0x355   : > { %3264 = vmatpush.msrb.mxu1 %v3254_v0 }
 0x357   : > { %3265 = vmatpush.msrb.mxu1 %v3253_v6 }
 0x359   : > { %3266 = vmatpush.msrb.mxu1 %v3252_v40 }
 0x35b   : > { %3267 = vmatpush.msrb.mxu1 %v3251_v24 }
 0x35d   : > { %3268 = vmatpush.msrb.mxu1 %v3250_v28 }
 0x35f   : > { %3269 = vmatpush.msrb.mxu1 %v3249_v61 }
 0x361   : > { %3270 = vmatpush.msrb.mxu1 %v3248_v8 }
 0x363   : > { %3271 = vmatpush.msrb.mxu1 %v3247_v42 }
 0x365   : > { %3272 = vmatpush.msrb.mxu1 %v3246_v43 }
 0x367   : > { %3273 = vmatpush.msrb.mxu1 %v3245_v39 }
 0x369   : > { %3274 = vmatpush.msrb.mxu1 %v3244_v37 }
 0x36b   : > { %3275 = vmatpush.msrb.mxu1 %v3243_v51 }
 0x3c9   : > { %v3010_v46 = vpop.f32.mrf.mxu1 }
 0x3ca   : > { %v3011_v31 = vadd.f32 %v3010_v46, %v2992_v11 }
 0x3cc   : > { %3217 = vmatmul.f32.vlgmr.msra.gmra.mxu3 %v3011_v31 }
 0x3d1   : > { %v3146_v60 = vpop.f32.mrf.mxu1 }
 0x3d2   : > { %v3147_v36 = vadd.f32 %v3146_v60, %v3128_v12 }
 0x3d4   : > { %3197 = vmatmul.f32.vlgmr.msra.gmra.mxu2 %v3147_v36 }
 0x44f   : > { %v3218_v15 = vpop.f32.mrf.mxu3 }
 0x457   : > { %v3198_v7 = vpop.f32.mrf.mxu2 }
 0x458   : > { %v3219_v9 = vadd.f32 %v3218_v15, %v3198_v7 }
 0x45a   : > { %v3222_v18 = vadd.f32 %v3221_v27, %v3219_v9 }
 0x45c   : > { %v3224_v34 = vsub.f32 %v3222_v18, %v3223_v55 }
 0x45e   : > { %v3237_v1 = vmul.f32 %v3236_v14, %v3224_v34 }
 0x460   : > { %v3239_v26 = vmul.f32 %v3238_v49, %v3237_v1 }
 0x462   : > { %v3241_v44 = vadd.f32 %v3240_v54, %v3239_v26 }
 0x464   : > { %v3242_v32 = vmax.f32 %v3241_v44, 0.0 }
 0x466   : > { %3276 = vmatmul.f32.vlgmr.msrb.gmra.mxu1 %v3242_v32 }
 0x4e3   : > { %v3277_v29 = vpop.f32.mrf.mxu1 }
 0x4e4   : > { %v3278_v53 = vadd.f32 %v3277_v29, %v3259_v56 }
 0x4e6   : > { %3280 = vst [vmem:[%s782_s24] sm:$0x1] %v3278_v53 }
 0x4e7   : > { %3930 = shalt.err (!%p3927_p8)
}
 0x4e8   : > { %3698 = dma.vmem_to_hbm [thread:$0]  (%p4145_p5), %s3293_s27, 16, %s3295_s25, %s3282_s7  }
 0x4e9 PF: > { %s5909_s12 = sld [smem:[#allocation17_spill]] }
 0x4ea   : > { %s5910_s14 = sld [smem:[#allocation15_spill]] }
 0x4ef   : > { %p3725_p9 = scmp.ge.s32.totalorder %s5909_s12, 2 }
 0x4f0   : > { %s3306_s24 = sand.u32 1, %s5910_s14  }
 0x4f1   : > { %p3714_p10 = pnand %p3725_p9, %p4149_p6  ;;  %s3307_s5 = scalar_lea.sflag [#allocation4], %s3306_s24 }
 0x4f3   : > { %p3715_p11 = pneg %p3714_p10 }
 0x4f5   : > { %3960 = dma.done.wait (%p3715_p11), %s3307_s5, 16  }
 0x4f6   : > { %3962 = vsyncadd (%p3715_p11), %s3307_s5, 4294967280  ;;  %s5912_s25 = sld [smem:[#allocation18_spill]]  ;;  %s5915_s4 = smov %s3969_s30 }
 0x4f7   : > { %s5913_s3 = sld [smem:[#allocation16_spill]] }
 0x4f8   : > { %s5914_s24 = sld [smem:[#allocation19_spill]] }
 0x4fc   : > { %p36_p12 = scmp.ge.s32.totalorder %s5912_s25, 4  }
 0x4fd   : > { %s5916_s30 = smov %s5913_s3 }
 0x4fe   :  { %38 = sbr.rel (!%p36_p12) target bundleno = 19 (0x13), region = 175 }
 0x503   :  { %3312 = vsyncpa [#allocation3], 1 }
 0x504   :  { %3314 = vsyncpa [#allocation3 + $0x1], 1 }
 0x505   :  { %3315 = vsyncpa [#allocation6], 1 }
 0x506   :  { %3316 = vsyncpa [#allocation9], 1 }
 0x507   :  { %3317 = vsyncpa [#allocation4], 1 }
 0x508   :  { %3319 = vsyncpa [#allocation4 + $0x1], 1 }

</bundles_post_ra>
